<compile_context>
chip_gen: v7x
topology: tpu7x:2x2x1
jax: 0.10.0
libtpu: 0.0.40
codegen_flags: <defaults>
</compile_context>

<pallas_src>
import functools

import jax
import jax.numpy as jnp
from jax.experimental import pallas as pl
from jax.experimental.pallas import tpu as pltpu


def _attention_kernel(x_ref, gamma_ref, beta_ref, wq_ref, wk_ref, wv_ref, wo_ref,
                      o_ref, xn_sc, q_sc, k_sc, v_sc, *, heads, block_q, scale):
    qi = pl.program_id(1)

    # ---- Once per batch element (query-tile axis is "arbitrary", so qi == 0 runs before
    #      any other tile of this b): LayerNorm over the full sequence and the per-head
    #      K / V projections, cached in VMEM scratch for reuse by every query tile. ----
    @pl.when(qi == 0)
    def _():
        x = x_ref[0].astype(jnp.float32)                       # (N, D); stats in f32 (v5e-safe)
        mean = jnp.mean(x, axis=-1, keepdims=True)
        var = jnp.mean(jnp.square(x - mean), axis=-1, keepdims=True)
        xn = (x - mean) * jax.lax.rsqrt(var + 1e-5)
        xn = xn * gamma_ref[...].astype(jnp.float32) + beta_ref[...].astype(jnp.float32)
        xn_bf = xn.astype(jnp.bfloat16)                        # bf16 operands for the MXU
        xn_sc[...] = xn_bf
        # Per-head projections: head index is a leading-axis select (free), and the
        # immediate store into scratch bounds the live range of each intermediate.
        for h in range(heads):
            k_sc[h] = jnp.dot(xn_bf, wk_ref[h],
                              preferred_element_type=jnp.float32).astype(jnp.bfloat16)
            v_sc[h] = jnp.dot(xn_bf, wv_ref[h],
                              preferred_element_type=jnp.float32).astype(jnp.bfloat16)

    # ---- Query tile: rows [qi*block_q, (qi+1)*block_q) of the cached LayerNorm output. ----
    row0 = pl.multiple_of(qi * block_q, block_q)
    xn_q = xn_sc[pl.ds(row0, block_q), :]                      # (TQ, D) bf16
    for h in range(heads):
        qh = jnp.dot(xn_q, wq_ref[h], preferred_element_type=jnp.float32)   # (TQ, dh) f32
        q_sc[h] = (qh * scale).astype(jnp.bfloat16)            # fold 1/sqrt(dh) into q

    q = q_sc[...]                                              # (H, TQ, dh) bf16
    k = k_sc[...]                                              # (H, N,  dh) bf16
    v = v_sc[...]                                              # (H, N,  dh) bf16

    # Head-batched score matmul (batch dim = heads), f32 accumulation.
    s = jnp.einsum('hqd,hkd->hqk', q, k, preferred_element_type=jnp.float32)  # (H, TQ, N)
    m = jnp.max(s, axis=-1, keepdims=True)
    p = jnp.exp(s - m)                                         # softmax math stays f32
    l = jnp.sum(p, axis=-1, keepdims=True)
    p = p * pl.reciprocal(l, approx=True)                      # EUP reciprocal, no vector divide

    o = jnp.einsum('hqk,hkd->hqd', p.astype(jnp.bfloat16), v,
                   preferred_element_type=jnp.float32)         # (H, TQ, dh) f32
    o_bf = o.astype(jnp.bfloat16)

    # Output projection == sum over heads of o_h @ W_out[h]; leading-axis selects only
    # (equivalent to the 'b h n d -> b n (h d)' concat followed by to_out, without the
    # lane-axis concatenation).
    out = None
    for h in range(heads):
        contrib = jnp.dot(o_bf[h], wo_ref[h], preferred_element_type=jnp.float32)  # (TQ, D)
        out = contrib if out is None else out + contrib
    o_ref[0] = out.astype(o_ref.dtype)


def _pick_block_q(n, heads):
    """Largest query-tile size that divides N, respects the (8,128) sublane rule and keeps
    the f32 (heads, TQ, N) score block within a ~16 MiB budget (v7x 64 MiB VMEM)."""
    if n % 8 != 0:
        return n                               # single tile (block == full dim) is always legal
    budget = 16 * 1024 * 1024
    for cand in (512, 256, 128, 64, 32, 16, 8):
        if n % cand == 0 and heads * cand * n * 4 <= budget:
            return cand
    return 8


def _build_attention_call(B, N, D, heads, dh, block_q, out_dtype, single_buffer_weights):
    n_q = N // block_q

    def _const(shape):
        idx = lambda b, qi, _n=len(shape): (0,) * _n
        if single_buffer_weights:
            # Constant index map -> never re-fetched; a single buffer avoids spending VMEM
            # on a second (never used) pipeline buffer for the resident weights.
            return pl.BlockSpec(shape, idx, pipeline_mode=pl.Buffered(1))
        return pl.BlockSpec(shape, idx)

    kernel = functools.partial(_attention_kernel, heads=heads, block_q=block_q,
                               scale=dh ** -0.5)
    return pl.pallas_call(
        kernel,
        out_shape=jax.ShapeDtypeStruct((B, N, D), out_dtype),
        grid_spec=pltpu.PrefetchScalarGridSpec(
            num_scalar_prefetch=0,
            grid=(B, n_q),
            in_specs=[
                pl.BlockSpec((1, N, D), lambda b, qi: (b, 0, 0)),   # x (full sequence per b)
                _const((1, D)),                                      # LN gamma
                _const((1, D)),                                      # LN beta
                _const((heads, D, dh)),                              # W_q (head-major)
                _const((heads, D, dh)),                              # W_k
                _const((heads, D, dh)),                              # W_v
                _const((heads, dh, D)),                              # W_out (head-major)
            ],
            out_specs=pl.BlockSpec((1, block_q, D), lambda b, qi: (b, qi, 0)),
            scratch_shapes=[
                pltpu.VMEM((N, D), jnp.bfloat16),                # LayerNorm(x), cached per b
                pltpu.VMEM((heads, block_q, dh), jnp.bfloat16),  # q tile (pre-scaled)
                pltpu.VMEM((heads, N, dh), jnp.bfloat16),        # K cache
                pltpu.VMEM((heads, N, dh), jnp.bfloat16),        # V cache
            ],
        ),
        compiler_params=pltpu.CompilerParams(
            # The query-tile axis carries cached K/V scratch state -> must stay sequential
            # ("arbitrary").  The batch axis is sharded across TensorCores.
            dimension_semantics=("parallel", "arbitrary"),
            vmem_limit_bytes=64 * 1024 * 1024,
        ),
    )


def attention_forward(x, gamma, beta, w_qkv, w_out, *, heads, block_q=None):
    B, N, D = x.shape
    inner = w_qkv.shape[1] // 3
    dh = inner // heads
    if block_q is None:
        block_q = _pick_block_q(N, heads)
    assert N % block_q == 0

    # Head-major weight layout so every per-head select in the kernel is a leading-axis
    # index (no lane slicing); bf16 MXU operands (accumulation stays f32 in-kernel).
    wq = w_qkv[:, 0 * inner:1 * inner].reshape(D, heads, dh).transpose(1, 0, 2)
    wk = w_qkv[:, 1 * inner:2 * inner].reshape(D, heads, dh).transpose(1, 0, 2)
    wv = w_qkv[:, 2 * inner:3 * inner].reshape(D, heads, dh).transpose(1, 0, 2)
    wo = w_out.reshape(heads, dh, D)
    wq, wk, wv, wo = (w.astype(jnp.bfloat16) for w in (wq, wk, wv, wo))
    gamma2 = gamma.reshape(1, D).astype(jnp.float32)
    beta2 = beta.reshape(1, D).astype(jnp.float32)

    args = (x, gamma2, beta2, wq, wk, wv, wo)
    try:
        fn = _build_attention_call(B, N, D, heads, dh, block_q, x.dtype, True)
        return jax.block_until_ready(fn(*args))
    except Exception:
        # pl.Buffered(1) not supported by this JAX version -> default double buffering.
        fn = _build_attention_call(B, N, D, heads, dh, block_q, x.dtype, False)
        return fn(*args)


def attention_ref(x, gamma, beta, w_qkv, w_out, *, heads):
    # Pure-JAX (f32) reference mirroring the PyTorch forward.
    B, N, D = x.shape
    inner = w_out.shape[0]
    dh = inner // heads
    mean = jnp.mean(x, axis=-1, keepdims=True)
    var = jnp.mean((x - mean) ** 2, axis=-1, keepdims=True)
    xn = (x - mean) / jnp.sqrt(var + 1e-5) * gamma + beta
    qkv = xn @ w_qkv
    q, k, v = jnp.split(qkv, 3, axis=-1)

    def to_heads(t):
        return t.reshape(B, N, heads, dh).transpose(0, 2, 1, 3)   # b h n d

    q, k, v = map(to_heads, (q, k, v))
    s = jnp.einsum("bhnd,bhmd->bhnm", q, k) * (dh ** -0.5)
    p = jax.nn.softmax(s, axis=-1)
    o = jnp.einsum("bhnm,bhmd->bhnd", p, v)
    o = o.transpose(0, 2, 1, 3).reshape(B, N, inner)
    return o @ w_out


if __name__ == "__main__":
    # Small shapes consistent with Attention(dim=32, heads=4, dim_head=8)
    B, N, D = 2, 8, 32
    heads, dim_head = 4, 8
    inner = heads * dim_head

    key = jax.random.PRNGKey(0)
    kx, kqkv, kout = jax.random.split(key, 3)
    x = jax.random.normal(kx, (B, N, D), dtype=jnp.float32)
    # nn.LayerNorm defaults: gamma=1, beta=0
    gamma = jnp.ones((D,), dtype=jnp.float32)
    beta = jnp.zeros((D,), dtype=jnp.float32)
    # Linear weights stored as (in, out) so the math is x @ W
    w_qkv = jax.random.normal(kqkv, (D, inner * 3), dtype=jnp.float32) * 0.05
    w_out = jax.random.normal(kout, (inner, D), dtype=jnp.float32) * 0.05

    out = attention_forward(x, gamma, beta, w_qkv, w_out, heads=heads)
    out = jax.block_until_ready(out)

    ref = attention_ref(x, gamma, beta, w_qkv, w_out, heads=heads)
    assert out.shape == (B, N, D)
    # Looser tolerance than a pure-f32 kernel because MXU operands are bf16 (f32 accumulate).
    assert jnp.allclose(out, ref, atol=2e-2, rtol=2e-2), "mismatch vs reference"

    print("KERNEL_OK")
</pallas_src>

<mosaic_0001>
module attributes {stable_mosaic.version = 11 : i64} {
  func.func @_attention_kernel(%arg0: i32, %arg1: i32, %arg2: memref<1x8x32xf32, #tpu.memory_space<vmem>>, %arg3: memref<1x32xf32, #tpu.memory_space<vmem>>, %arg4: memref<1x32xf32, #tpu.memory_space<vmem>>, %arg5: memref<4x32x8xbf16, #tpu.memory_space<vmem>>, %arg6: memref<4x32x8xbf16, #tpu.memory_space<vmem>>, %arg7: memref<4x32x8xbf16, #tpu.memory_space<vmem>>, %arg8: memref<4x8x32xbf16, #tpu.memory_space<vmem>>, %arg9: memref<1x8x32xf32, #tpu.memory_space<vmem>>, %arg10: memref<8x32xbf16, #tpu.memory_space<vmem>>, %arg11: memref<4x8x8xbf16, #tpu.memory_space<vmem>>, %arg12: memref<4x8x8xbf16, #tpu.memory_space<vmem>>, %arg13: memref<4x8x8xbf16, #tpu.memory_space<vmem>>) attributes {dimension_semantics = [#tpu.dimension_semantics<parallel>, #tpu.dimension_semantics<arbitrary>], iteration_bounds = array<i64: 2, 1>, scalar_prefetch = 0 : i64, scratch_operands = 4 : i64, tpu.core_type = #tpu.core_type<tc>, window_params = [{transform_indices = @transform_0, window_bounds = array<i64: 1, 8, 32>}, {pipeline_mode = #tpu.pipeline_mode<synchronous>, transform_indices = @transform_1, window_bounds = array<i64: 1, 32>}, {pipeline_mode = #tpu.pipeline_mode<synchronous>, transform_indices = @transform_2, window_bounds = array<i64: 1, 32>}, {pipeline_mode = #tpu.pipeline_mode<synchronous>, transform_indices = @transform_3, window_bounds = array<i64: 4, 32, 8>}, {pipeline_mode = #tpu.pipeline_mode<synchronous>, transform_indices = @transform_4, window_bounds = array<i64: 4, 32, 8>}, {pipeline_mode = #tpu.pipeline_mode<synchronous>, transform_indices = @transform_5, window_bounds = array<i64: 4, 32, 8>}, {pipeline_mode = #tpu.pipeline_mode<synchronous>, transform_indices = @transform_6, window_bounds = array<i64: 4, 8, 32>}, {transform_indices = @transform_7, window_bounds = array<i64: 1, 8, 32>}]} {
    %c0_i32 = arith.constant 0 : i32
    %0 = arith.cmpi eq, %arg1, %c0_i32 : i32
    %1 = arith.extui %0 : i1 to i32
    %c0_i32_0 = arith.constant 0 : i32
    %2 = arith.cmpi ne, %1, %c0_i32_0 : i32
    scf.if %2 {
      %c0_61 = arith.constant 0 : index
      %c0_62 = arith.constant 0 : index
      %c0_63 = arith.constant 0 : index
      %86 = vector.load %arg2[%c0_61, %c0_62, %c0_63] : memref<1x8x32xf32, #tpu.memory_space<vmem>>, vector<1x8x32xf32>
      %87 = vector.shape_cast %86 : vector<1x8x32xf32> to vector<8x32xf32>
      %cst_64 = arith.constant dense<0.000000e+00> : vector<8xf32>
      %88 = vector.multi_reduction <add>, %87, %cst_64 [1] : vector<8x32xf32> to vector<8xf32>
      %89 = vector.shape_cast %88 : vector<8xf32> to vector<8x1xf32>
      %cst_65 = arith.constant 3.200000e+01 : f32
      %90 = vector.broadcast %cst_65 : f32 to vector<8x1xf32>
      %91 = arith.divf %89, %90 : vector<8x1xf32>
      %92 = vector.broadcast %91 : vector<8x1xf32> to vector<8x32xf32>
      %93 = arith.subf %87, %92 : vector<8x32xf32>
      %94 = arith.mulf %93, %93 : vector<8x32xf32>
      %cst_66 = arith.constant dense<0.000000e+00> : vector<8xf32>
      %95 = vector.multi_reduction <add>, %94, %cst_66 [1] : vector<8x32xf32> to vector<8xf32>
      %96 = vector.shape_cast %95 : vector<8xf32> to vector<8x1xf32>
      %cst_67 = arith.constant 3.200000e+01 : f32
      %97 = vector.broadcast %cst_67 : f32 to vector<8x1xf32>
      %98 = arith.divf %96, %97 : vector<8x1xf32>
      %99 = vector.broadcast %91 : vector<8x1xf32> to vector<8x32xf32>
      %100 = arith.subf %87, %99 : vector<8x32xf32>
      %cst_68 = arith.constant 9.99999974E-6 : f32
      %101 = vector.broadcast %cst_68 : f32 to vector<8x1xf32>
      %102 = arith.addf %98, %101 : vector<8x1xf32>
      %103 = math.rsqrt %102 : vector<8x1xf32>
      %104 = vector.broadcast %103 : vector<8x1xf32> to vector<8x32xf32>
      %105 = arith.mulf %100, %104 : vector<8x32xf32>
      %c0_69 = arith.constant 0 : index
      %c0_70 = arith.constant 0 : index
      %106 = vector.load %arg3[%c0_69, %c0_70] : memref<1x32xf32, #tpu.memory_space<vmem>>, vector<1x32xf32>
      %107 = vector.broadcast %106 : vector<1x32xf32> to vector<8x32xf32>
      %108 = arith.mulf %105, %107 : vector<8x32xf32>
      %c0_71 = arith.constant 0 : index
      %c0_72 = arith.constant 0 : index
      %109 = vector.load %arg4[%c0_71, %c0_72] : memref<1x32xf32, #tpu.memory_space<vmem>>, vector<1x32xf32>
      %110 = vector.broadcast %109 : vector<1x32xf32> to vector<8x32xf32>
      %111 = arith.addf %108, %110 : vector<8x32xf32>
      %112 = arith.truncf %111 : vector<8x32xf32> to vector<8x32xbf16>
      %c0_73 = arith.constant 0 : index
      %c0_74 = arith.constant 0 : index
      %113 = vector.load %arg10[%c0_73, %c0_74] : memref<8x32xbf16, #tpu.memory_space<vmem>>, vector<8x32xbf16>
      tpu.vector_store %arg10[%c0_73, %c0_74], %112 {strides = array<i32>} : memref<8x32xbf16, #tpu.memory_space<vmem>>, vector<8x32xbf16>,
      %c0_75 = arith.constant 0 : index
      %c0_76 = arith.constant 0 : index
      %c0_77 = arith.constant 0 : index
      %114 = vector.load %arg6[%c0_75, %c0_76, %c0_77] : memref<4x32x8xbf16, #tpu.memory_space<vmem>>, vector<1x32x8xbf16>
      %115 = vector.shape_cast %114 : vector<1x32x8xbf16> to vector<32x8xbf16>
      %cst_78 = arith.constant dense<0.000000e+00> : vector<8x8xf32>
      %116 = tpu.matmul %112, %115, %cst_78 {dimension_numbers = #tpu.dot_dimension_numbers<[1], [0], [0], [1], [0, 0, 1, 1], [], []>} : vector<8x32xbf16>, vector<32x8xbf16>, vector<8x8xf32> -> vector<8x8xf32>
      %117 = arith.truncf %116 : vector<8x8xf32> to vector<8x8xbf16>
      %c0_79 = arith.constant 0 : index
      %c0_80 = arith.constant 0 : index
      %c0_81 = arith.constant 0 : index
      %118 = vector.load %arg12[%c0_79, %c0_80, %c0_81] : memref<4x8x8xbf16, #tpu.memory_space<vmem>>, vector<1x8x8xbf16>
      %119 = vector.shape_cast %118 : vector<1x8x8xbf16> to vector<8x8xbf16>
      %120 = vector.shape_cast %117 : vector<8x8xbf16> to vector<1x8x8xbf16>
      tpu.vector_store %arg12[%c0_79, %c0_80, %c0_81], %120 {strides = array<i32>} : memref<4x8x8xbf16, #tpu.memory_space<vmem>>, vector<1x8x8xbf16>,
      %c0_82 = arith.constant 0 : index
      %c0_83 = arith.constant 0 : index
      %c0_84 = arith.constant 0 : index
      %121 = vector.load %arg7[%c0_82, %c0_83, %c0_84] : memref<4x32x8xbf16, #tpu.memory_space<vmem>>, vector<1x32x8xbf16>
      %122 = vector.shape_cast %121 : vector<1x32x8xbf16> to vector<32x8xbf16>
      %cst_85 = arith.constant dense<0.000000e+00> : vector<8x8xf32>
      %123 = tpu.matmul %112, %122, %cst_85 {dimension_numbers = #tpu.dot_dimension_numbers<[1], [0], [0], [1], [0, 0, 1, 1], [], []>} : vector<8x32xbf16>, vector<32x8xbf16>, vector<8x8xf32> -> vector<8x8xf32>
      %124 = arith.truncf %123 : vector<8x8xf32> to vector<8x8xbf16>
      %c0_86 = arith.constant 0 : index
      %c0_87 = arith.constant 0 : index
      %c0_88 = arith.constant 0 : index
      %125 = vector.load %arg13[%c0_86, %c0_87, %c0_88] : memref<4x8x8xbf16, #tpu.memory_space<vmem>>, vector<1x8x8xbf16>
      %126 = vector.shape_cast %125 : vector<1x8x8xbf16> to vector<8x8xbf16>
      %127 = vector.shape_cast %124 : vector<8x8xbf16> to vector<1x8x8xbf16>
      tpu.vector_store %arg13[%c0_86, %c0_87, %c0_88], %127 {strides = array<i32>} : memref<4x8x8xbf16, #tpu.memory_space<vmem>>, vector<1x8x8xbf16>,
      %c1_89 = arith.constant 1 : index
      %c0_90 = arith.constant 0 : index
      %c0_91 = arith.constant 0 : index
      %128 = vector.load %arg6[%c1_89, %c0_90, %c0_91] : memref<4x32x8xbf16, #tpu.memory_space<vmem>>, vector<1x32x8xbf16>
      %129 = vector.shape_cast %128 : vector<1x32x8xbf16> to vector<32x8xbf16>
      %cst_92 = arith.constant dense<0.000000e+00> : vector<8x8xf32>
      %130 = tpu.matmul %112, %129, %cst_92 {dimension_numbers = #tpu.dot_dimension_numbers<[1], [0], [0], [1], [0, 0, 1, 1], [], []>} : vector<8x32xbf16>, vector<32x8xbf16>, vector<8x8xf32> -> vector<8x8xf32>
      %131 = arith.truncf %130 : vector<8x8xf32> to vector<8x8xbf16>
      %c1_93 = arith.constant 1 : index
      %c0_94 = arith.constant 0 : index
      %c0_95 = arith.constant 0 : index
      %132 = vector.load %arg12[%c1_93, %c0_94, %c0_95] : memref<4x8x8xbf16, #tpu.memory_space<vmem>>, vector<1x8x8xbf16>
      %133 = vector.shape_cast %132 : vector<1x8x8xbf16> to vector<8x8xbf16>
      %134 = vector.shape_cast %131 : vector<8x8xbf16> to vector<1x8x8xbf16>
      tpu.vector_store %arg12[%c1_93, %c0_94, %c0_95], %134 {strides = array<i32>} : memref<4x8x8xbf16, #tpu.memory_space<vmem>>, vector<1x8x8xbf16>,
      %c1_96 = arith.constant 1 : index
      %c0_97 = arith.constant 0 : index
      %c0_98 = arith.constant 0 : index
      %135 = vector.load %arg7[%c1_96, %c0_97, %c0_98] : memref<4x32x8xbf16, #tpu.memory_space<vmem>>, vector<1x32x8xbf16>
      %136 = vector.shape_cast %135 : vector<1x32x8xbf16> to vector<32x8xbf16>
      %cst_99 = arith.constant dense<0.000000e+00> : vector<8x8xf32>
      %137 = tpu.matmul %112, %136, %cst_99 {dimension_numbers = #tpu.dot_dimension_numbers<[1], [0], [0], [1], [0, 0, 1, 1], [], []>} : vector<8x32xbf16>, vector<32x8xbf16>, vector<8x8xf32> -> vector<8x8xf32>
      %138 = arith.truncf %137 : vector<8x8xf32> to vector<8x8xbf16>
      %c1_100 = arith.constant 1 : index
      %c0_101 = arith.constant 0 : index
      %c0_102 = arith.constant 0 : index
      %139 = vector.load %arg13[%c1_100, %c0_101, %c0_102] : memref<4x8x8xbf16, #tpu.memory_space<vmem>>, vector<1x8x8xbf16>
      %140 = vector.shape_cast %139 : vector<1x8x8xbf16> to vector<8x8xbf16>
      %141 = vector.shape_cast %138 : vector<8x8xbf16> to vector<1x8x8xbf16>
      tpu.vector_store %arg13[%c1_100, %c0_101, %c0_102], %141 {strides = array<i32>} : memref<4x8x8xbf16, #tpu.memory_space<vmem>>, vector<1x8x8xbf16>,
      %c2_103 = arith.constant 2 : index
      %c0_104 = arith.constant 0 : index
      %c0_105 = arith.constant 0 : index
      %142 = vector.load %arg6[%c2_103, %c0_104, %c0_105] : memref<4x32x8xbf16, #tpu.memory_space<vmem>>, vector<1x32x8xbf16>
      %143 = vector.shape_cast %142 : vector<1x32x8xbf16> to vector<32x8xbf16>
      %cst_106 = arith.constant dense<0.000000e+00> : vector<8x8xf32>
      %144 = tpu.matmul %112, %143, %cst_106 {dimension_numbers = #tpu.dot_dimension_numbers<[1], [0], [0], [1], [0, 0, 1, 1], [], []>} : vector<8x32xbf16>, vector<32x8xbf16>, vector<8x8xf32> -> vector<8x8xf32>
      %145 = arith.truncf %144 : vector<8x8xf32> to vector<8x8xbf16>
      %c2_107 = arith.constant 2 : index
      %c0_108 = arith.constant 0 : index
      %c0_109 = arith.constant 0 : index
      %146 = vector.load %arg12[%c2_107, %c0_108, %c0_109] : memref<4x8x8xbf16, #tpu.memory_space<vmem>>, vector<1x8x8xbf16>
      %147 = vector.shape_cast %146 : vector<1x8x8xbf16> to vector<8x8xbf16>
      %148 = vector.shape_cast %145 : vector<8x8xbf16> to vector<1x8x8xbf16>
      tpu.vector_store %arg12[%c2_107, %c0_108, %c0_109], %148 {strides = array<i32>} : memref<4x8x8xbf16, #tpu.memory_space<vmem>>, vector<1x8x8xbf16>,
      %c2_110 = arith.constant 2 : index
      %c0_111 = arith.constant 0 : index
      %c0_112 = arith.constant 0 : index
      %149 = vector.load %arg7[%c2_110, %c0_111, %c0_112] : memref<4x32x8xbf16, #tpu.memory_space<vmem>>, vector<1x32x8xbf16>
      %150 = vector.shape_cast %149 : vector<1x32x8xbf16> to vector<32x8xbf16>
      %cst_113 = arith.constant dense<0.000000e+00> : vector<8x8xf32>
      %151 = tpu.matmul %112, %150, %cst_113 {dimension_numbers = #tpu.dot_dimension_numbers<[1], [0], [0], [1], [0, 0, 1, 1], [], []>} : vector<8x32xbf16>, vector<32x8xbf16>, vector<8x8xf32> -> vector<8x8xf32>
      %152 = arith.truncf %151 : vector<8x8xf32> to vector<8x8xbf16>
      %c2_114 = arith.constant 2 : index
      %c0_115 = arith.constant 0 : index
      %c0_116 = arith.constant 0 : index
      %153 = vector.load %arg13[%c2_114, %c0_115, %c0_116] : memref<4x8x8xbf16, #tpu.memory_space<vmem>>, vector<1x8x8xbf16>
      %154 = vector.shape_cast %153 : vector<1x8x8xbf16> to vector<8x8xbf16>
      %155 = vector.shape_cast %152 : vector<8x8xbf16> to vector<1x8x8xbf16>
      tpu.vector_store %arg13[%c2_114, %c0_115, %c0_116], %155 {strides = array<i32>} : memref<4x8x8xbf16, #tpu.memory_space<vmem>>, vector<1x8x8xbf16>,
      %c3_117 = arith.constant 3 : index
      %c0_118 = arith.constant 0 : index
      %c0_119 = arith.constant 0 : index
      %156 = vector.load %arg6[%c3_117, %c0_118, %c0_119] : memref<4x32x8xbf16, #tpu.memory_space<vmem>>, vector<1x32x8xbf16>
      %157 = vector.shape_cast %156 : vector<1x32x8xbf16> to vector<32x8xbf16>
      %cst_120 = arith.constant dense<0.000000e+00> : vector<8x8xf32>
      %158 = tpu.matmul %112, %157, %cst_120 {dimension_numbers = #tpu.dot_dimension_numbers<[1], [0], [0], [1], [0, 0, 1, 1], [], []>} : vector<8x32xbf16>, vector<32x8xbf16>, vector<8x8xf32> -> vector<8x8xf32>
      %159 = arith.truncf %158 : vector<8x8xf32> to vector<8x8xbf16>
      %c3_121 = arith.constant 3 : index
      %c0_122 = arith.constant 0 : index
      %c0_123 = arith.constant 0 : index
      %160 = vector.load %arg12[%c3_121, %c0_122, %c0_123] : memref<4x8x8xbf16, #tpu.memory_space<vmem>>, vector<1x8x8xbf16>
      %161 = vector.shape_cast %160 : vector<1x8x8xbf16> to vector<8x8xbf16>
      %162 = vector.shape_cast %159 : vector<8x8xbf16> to vector<1x8x8xbf16>
      tpu.vector_store %arg12[%c3_121, %c0_122, %c0_123], %162 {strides = array<i32>} : memref<4x8x8xbf16, #tpu.memory_space<vmem>>, vector<1x8x8xbf16>,
      %c3_124 = arith.constant 3 : index
      %c0_125 = arith.constant 0 : index
      %c0_126 = arith.constant 0 : index
      %163 = vector.load %arg7[%c3_124, %c0_125, %c0_126] : memref<4x32x8xbf16, #tpu.memory_space<vmem>>, vector<1x32x8xbf16>
      %164 = vector.shape_cast %163 : vector<1x32x8xbf16> to vector<32x8xbf16>
      %cst_127 = arith.constant dense<0.000000e+00> : vector<8x8xf32>
      %165 = tpu.matmul %112, %164, %cst_127 {dimension_numbers = #tpu.dot_dimension_numbers<[1], [0], [0], [1], [0, 0, 1, 1], [], []>} : vector<8x32xbf16>, vector<32x8xbf16>, vector<8x8xf32> -> vector<8x8xf32>
      %166 = arith.truncf %165 : vector<8x8xf32> to vector<8x8xbf16>
      %c3_128 = arith.constant 3 : index
      %c0_129 = arith.constant 0 : index
      %c0_130 = arith.constant 0 : index
      %167 = vector.load %arg13[%c3_128, %c0_129, %c0_130] : memref<4x8x8xbf16, #tpu.memory_space<vmem>>, vector<1x8x8xbf16>
      %168 = vector.shape_cast %167 : vector<1x8x8xbf16> to vector<8x8xbf16>
      %169 = vector.shape_cast %166 : vector<8x8xbf16> to vector<1x8x8xbf16>
      tpu.vector_store %arg13[%c3_128, %c0_129, %c0_130], %169 {strides = array<i32>} : memref<4x8x8xbf16, #tpu.memory_space<vmem>>, vector<1x8x8xbf16>,
    } else {
    }
    %c8_i32 = arith.constant 8 : i32
    %3 = arith.muli %arg1, %c8_i32 : i32
    %4 = tpu.assume_multiple %3, 8 : i32
    %5 = arith.index_cast %4 : i32 to index
    %c0 = arith.constant 0 : index
    %6 = vector.load %arg10[%5, %c0] : memref<8x32xbf16, #tpu.memory_space<vmem>>, vector<8x32xbf16>
    %c0_1 = arith.constant 0 : index
    %c0_2 = arith.constant 0 : index
    %c0_3 = arith.constant 0 : index
    %7 = vector.load %arg5[%c0_1, %c0_2, %c0_3] : memref<4x32x8xbf16, #tpu.memory_space<vmem>>, vector<1x32x8xbf16>
    %8 = vector.shape_cast %7 : vector<1x32x8xbf16> to vector<32x8xbf16>
    %cst = arith.constant dense<0.000000e+00> : vector<8x8xf32>
    %9 = tpu.matmul %6, %8, %cst {dimension_numbers = #tpu.dot_dimension_numbers<[1], [0], [0], [1], [0, 0, 1, 1], [], []>} : vector<8x32xbf16>, vector<32x8xbf16>, vector<8x8xf32> -> vector<8x8xf32>
    %cst_4 = arith.constant 0.353553385 : f32
    %10 = vector.broadcast %cst_4 : f32 to vector<8x8xf32>
    %11 = arith.mulf %9, %10 : vector<8x8xf32>
    %12 = arith.truncf %11 : vector<8x8xf32> to vector<8x8xbf16>
    %c0_5 = arith.constant 0 : index
    %c0_6 = arith.constant 0 : index
    %c0_7 = arith.constant 0 : index
    %13 = vector.load %arg11[%c0_5, %c0_6, %c0_7] : memref<4x8x8xbf16, #tpu.memory_space<vmem>>, vector<1x8x8xbf16>
    %14 = vector.shape_cast %13 : vector<1x8x8xbf16> to vector<8x8xbf16>
    %15 = vector.shape_cast %12 : vector<8x8xbf16> to vector<1x8x8xbf16>
    tpu.vector_store %arg11[%c0_5, %c0_6, %c0_7], %15 {strides = array<i32>} : memref<4x8x8xbf16, #tpu.memory_space<vmem>>, vector<1x8x8xbf16>,
    %c1 = arith.constant 1 : index
    %c0_8 = arith.constant 0 : index
    %c0_9 = arith.constant 0 : index
    %16 = vector.load %arg5[%c1, %c0_8, %c0_9] : memref<4x32x8xbf16, #tpu.memory_space<vmem>>, vector<1x32x8xbf16>
    %17 = vector.shape_cast %16 : vector<1x32x8xbf16> to vector<32x8xbf16>
    %cst_10 = arith.constant dense<0.000000e+00> : vector<8x8xf32>
    %18 = tpu.matmul %6, %17, %cst_10 {dimension_numbers = #tpu.dot_dimension_numbers<[1], [0], [0], [1], [0, 0, 1, 1], [], []>} : vector<8x32xbf16>, vector<32x8xbf16>, vector<8x8xf32> -> vector<8x8xf32>
    %cst_11 = arith.constant 0.353553385 : f32
    %19 = vector.broadcast %cst_11 : f32 to vector<8x8xf32>
    %20 = arith.mulf %18, %19 : vector<8x8xf32>
    %21 = arith.truncf %20 : vector<8x8xf32> to vector<8x8xbf16>
    %c1_12 = arith.constant 1 : index
    %c0_13 = arith.constant 0 : index
    %c0_14 = arith.constant 0 : index
    %22 = vector.load %arg11[%c1_12, %c0_13, %c0_14] : memref<4x8x8xbf16, #tpu.memory_space<vmem>>, vector<1x8x8xbf16>
    %23 = vector.shape_cast %22 : vector<1x8x8xbf16> to vector<8x8xbf16>
    %24 = vector.shape_cast %21 : vector<8x8xbf16> to vector<1x8x8xbf16>
    tpu.vector_store %arg11[%c1_12, %c0_13, %c0_14], %24 {strides = array<i32>} : memref<4x8x8xbf16, #tpu.memory_space<vmem>>, vector<1x8x8xbf16>,
    %c2 = arith.constant 2 : index
    %c0_15 = arith.constant 0 : index
    %c0_16 = arith.constant 0 : index
    %25 = vector.load %arg5[%c2, %c0_15, %c0_16] : memref<4x32x8xbf16, #tpu.memory_space<vmem>>, vector<1x32x8xbf16>
    %26 = vector.shape_cast %25 : vector<1x32x8xbf16> to vector<32x8xbf16>
    %cst_17 = arith.constant dense<0.000000e+00> : vector<8x8xf32>
    %27 = tpu.matmul %6, %26, %cst_17 {dimension_numbers = #tpu.dot_dimension_numbers<[1], [0], [0], [1], [0, 0, 1, 1], [], []>} : vector<8x32xbf16>, vector<32x8xbf16>, vector<8x8xf32> -> vector<8x8xf32>
    %cst_18 = arith.constant 0.353553385 : f32
    %28 = vector.broadcast %cst_18 : f32 to vector<8x8xf32>
    %29 = arith.mulf %27, %28 : vector<8x8xf32>
    %30 = arith.truncf %29 : vector<8x8xf32> to vector<8x8xbf16>
    %c2_19 = arith.constant 2 : index
    %c0_20 = arith.constant 0 : index
    %c0_21 = arith.constant 0 : index
    %31 = vector.load %arg11[%c2_19, %c0_20, %c0_21] : memref<4x8x8xbf16, #tpu.memory_space<vmem>>, vector<1x8x8xbf16>
    %32 = vector.shape_cast %31 : vector<1x8x8xbf16> to vector<8x8xbf16>
    %33 = vector.shape_cast %30 : vector<8x8xbf16> to vector<1x8x8xbf16>
    tpu.vector_store %arg11[%c2_19, %c0_20, %c0_21], %33 {strides = array<i32>} : memref<4x8x8xbf16, #tpu.memory_space<vmem>>, vector<1x8x8xbf16>,
    %c3 = arith.constant 3 : index
    %c0_22 = arith.constant 0 : index
    %c0_23 = arith.constant 0 : index
    %34 = vector.load %arg5[%c3, %c0_22, %c0_23] : memref<4x32x8xbf16, #tpu.memory_space<vmem>>, vector<1x32x8xbf16>
    %35 = vector.shape_cast %34 : vector<1x32x8xbf16> to vector<32x8xbf16>
    %cst_24 = arith.constant dense<0.000000e+00> : vector<8x8xf32>
    %36 = tpu.matmul %6, %35, %cst_24 {dimension_numbers = #tpu.dot_dimension_numbers<[1], [0], [0], [1], [0, 0, 1, 1], [], []>} : vector<8x32xbf16>, vector<32x8xbf16>, vector<8x8xf32> -> vector<8x8xf32>
    %cst_25 = arith.constant 0.353553385 : f32
    %37 = vector.broadcast %cst_25 : f32 to vector<8x8xf32>
    %38 = arith.mulf %36, %37 : vector<8x8xf32>
    %39 = arith.truncf %38 : vector<8x8xf32> to vector<8x8xbf16>
    %c3_26 = arith.constant 3 : index
    %c0_27 = arith.constant 0 : index
    %c0_28 = arith.constant 0 : index
    %40 = vector.load %arg11[%c3_26, %c0_27, %c0_28] : memref<4x8x8xbf16, #tpu.memory_space<vmem>>, vector<1x8x8xbf16>
    %41 = vector.shape_cast %40 : vector<1x8x8xbf16> to vector<8x8xbf16>
    %42 = vector.shape_cast %39 : vector<8x8xbf16> to vector<1x8x8xbf16>
    tpu.vector_store %arg11[%c3_26, %c0_27, %c0_28], %42 {strides = array<i32>} : memref<4x8x8xbf16, #tpu.memory_space<vmem>>, vector<1x8x8xbf16>,
    %c0_29 = arith.constant 0 : index
    %c0_30 = arith.constant 0 : index
    %c0_31 = arith.constant 0 : index
    %43 = vector.load %arg11[%c0_29, %c0_30, %c0_31] : memref<4x8x8xbf16, #tpu.memory_space<vmem>>, vector<4x8x8xbf16>
    %c0_32 = arith.constant 0 : index
    %c0_33 = arith.constant 0 : index
    %c0_34 = arith.constant 0 : index
    %44 = vector.load %arg12[%c0_32, %c0_33, %c0_34] : memref<4x8x8xbf16, #tpu.memory_space<vmem>>, vector<4x8x8xbf16>
    %c0_35 = arith.constant 0 : index
    %c0_36 = arith.constant 0 : index
    %c0_37 = arith.constant 0 : index
    %45 = vector.load %arg13[%c0_35, %c0_36, %c0_37] : memref<4x8x8xbf16, #tpu.memory_space<vmem>>, vector<4x8x8xbf16>
    "tpu.trace_start"() <{level = 10 : i32, message = "hqd,hkd->hqk"}> : () -> ()
    %cst_38 = arith.constant dense<0.000000e+00> : vector<4x8x8xf32>
    %46 = tpu.matmul %43, %44, %cst_38 {dimension_numbers = #tpu.dot_dimension_numbers<[2], [2], [1], [1], [0, 0, 0, 1, 1, 1], [0], [0]>} : vector<4x8x8xbf16>, vector<4x8x8xbf16>, vector<4x8x8xf32> -> vector<4x8x8xf32>
    "tpu.trace_stop"() : () -> ()
    %cst_39 = arith.constant dense<0xFF800000> : vector<4x8xf32>
    %47 = vector.multi_reduction <maximumf>, %46, %cst_39 [2] : vector<4x8x8xf32> to vector<4x8xf32>
    %48 = vector.shape_cast %47 : vector<4x8xf32> to vector<4x8x1xf32>
    %49 = vector.broadcast %48 : vector<4x8x1xf32> to vector<4x8x8xf32>
    %50 = arith.subf %46, %49 : vector<4x8x8xf32>
    %51 = math.exp %50 : vector<4x8x8xf32>
    %cst_40 = arith.constant dense<0.000000e+00> : vector<4x8xf32>
    %52 = vector.multi_reduction <add>, %51, %cst_40 [2] : vector<4x8x8xf32> to vector<4x8xf32>
    %53 = vector.shape_cast %52 : vector<4x8xf32> to vector<4x8x1xf32>
    %54 = tpu.reciprocal %53 {approx = true} : vector<4x8x1xf32> -> vector<4x8x1xf32>
    %55 = vector.broadcast %54 : vector<4x8x1xf32> to vector<4x8x8xf32>
    %56 = arith.mulf %51, %55 : vector<4x8x8xf32>
    %57 = arith.truncf %56 : vector<4x8x8xf32> to vector<4x8x8xbf16>
    "tpu.trace_start"() <{level = 10 : i32, message = "hqk,hkd->hqd"}> : () -> ()
    %cst_41 = arith.constant dense<0.000000e+00> : vector<4x8x8xf32>
    %58 = tpu.matmul %57, %45, %cst_41 {dimension_numbers = #tpu.dot_dimension_numbers<[2], [1], [1], [2], [0, 0, 0, 1, 1, 2], [0], [0]>} : vector<4x8x8xbf16>, vector<4x8x8xbf16>, vector<4x8x8xf32> -> vector<4x8x8xf32>
    "tpu.trace_stop"() : () -> ()
    %59 = arith.truncf %58 : vector<4x8x8xf32> to vector<4x8x8xbf16>
    %60 = vector.extract_strided_slice %59 {offsets = [0, 0, 0], sizes = [1, 8, 8], strides = [1, 1, 1]} : vector<4x8x8xbf16> to vector<1x8x8xbf16>
    %61 = vector.shape_cast %60 : vector<1x8x8xbf16> to vector<8x8xbf16>
    %c0_42 = arith.constant 0 : index
    %c0_43 = arith.constant 0 : index
    %c0_44 = arith.constant 0 : index
    %62 = vector.load %arg8[%c0_42, %c0_43, %c0_44] : memref<4x8x32xbf16, #tpu.memory_space<vmem>>, vector<1x8x32xbf16>
    %63 = vector.shape_cast %62 : vector<1x8x32xbf16> to vector<8x32xbf16>
    %cst_45 = arith.constant dense<0.000000e+00> : vector<8x32xf32>
    %64 = tpu.matmul %61, %63, %cst_45 {dimension_numbers = #tpu.dot_dimension_numbers<[1], [0], [0], [1], [0, 0, 1, 1], [], []>} : vector<8x8xbf16>, vector<8x32xbf16>, vector<8x32xf32> -> vector<8x32xf32>
    %65 = vector.extract_strided_slice %59 {offsets = [1, 0, 0], sizes = [1, 8, 8], strides = [1, 1, 1]} : vector<4x8x8xbf16> to vector<1x8x8xbf16>
    %66 = vector.shape_cast %65 : vector<1x8x8xbf16> to vector<8x8xbf16>
    %c1_46 = arith.constant 1 : index
    %c0_47 = arith.constant 0 : index
    %c0_48 = arith.constant 0 : index
    %67 = vector.load %arg8[%c1_46, %c0_47, %c0_48] : memref<4x8x32xbf16, #tpu.memory_space<vmem>>, vector<1x8x32xbf16>
    %68 = vector.shape_cast %67 : vector<1x8x32xbf16> to vector<8x32xbf16>
    %cst_49 = arith.constant dense<0.000000e+00> : vector<8x32xf32>
    %69 = tpu.matmul %66, %68, %cst_49 {dimension_numbers = #tpu.dot_dimension_numbers<[1], [0], [0], [1], [0, 0, 1, 1], [], []>} : vector<8x8xbf16>, vector<8x32xbf16>, vector<8x32xf32> -> vector<8x32xf32>
    %70 = arith.addf %64, %69 : vector<8x32xf32>
    %71 = vector.extract_strided_slice %59 {offsets = [2, 0, 0], sizes = [1, 8, 8], strides = [1, 1, 1]} : vector<4x8x8xbf16> to vector<1x8x8xbf16>
    %72 = vector.shape_cast %71 : vector<1x8x8xbf16> to vector<8x8xbf16>
    %c2_50 = arith.constant 2 : index
    %c0_51 = arith.constant 0 : index
    %c0_52 = arith.constant 0 : index
    %73 = vector.load %arg8[%c2_50, %c0_51, %c0_52] : memref<4x8x32xbf16, #tpu.memory_space<vmem>>, vector<1x8x32xbf16>
    %74 = vector.shape_cast %73 : vector<1x8x32xbf16> to vector<8x32xbf16>
    %cst_53 = arith.constant dense<0.000000e+00> : vector<8x32xf32>
    %75 = tpu.matmul %72, %74, %cst_53 {dimension_numbers = #tpu.dot_dimension_numbers<[1], [0], [0], [1], [0, 0, 1, 1], [], []>} : vector<8x8xbf16>, vector<8x32xbf16>, vector<8x32xf32> -> vector<8x32xf32>
    %76 = arith.addf %70, %75 : vector<8x32xf32>
    %77 = vector.extract_strided_slice %59 {offsets = [3, 0, 0], sizes = [1, 8, 8], strides = [1, 1, 1]} : vector<4x8x8xbf16> to vector<1x8x8xbf16>
    %78 = vector.shape_cast %77 : vector<1x8x8xbf16> to vector<8x8xbf16>
    %c3_54 = arith.constant 3 : index
    %c0_55 = arith.constant 0 : index
    %c0_56 = arith.constant 0 : index
    %79 = vector.load %arg8[%c3_54, %c0_55, %c0_56] : memref<4x8x32xbf16, #tpu.memory_space<vmem>>, vector<1x8x32xbf16>
    %80 = vector.shape_cast %79 : vector<1x8x32xbf16> to vector<8x32xbf16>
    %cst_57 = arith.constant dense<0.000000e+00> : vector<8x32xf32>
    %81 = tpu.matmul %78, %80, %cst_57 {dimension_numbers = #tpu.dot_dimension_numbers<[1], [0], [0], [1], [0, 0, 1, 1], [], []>} : vector<8x8xbf16>, vector<8x32xbf16>, vector<8x32xf32> -> vector<8x32xf32>
    %82 = arith.addf %76, %81 : vector<8x32xf32>
    %c0_58 = arith.constant 0 : index
    %c0_59 = arith.constant 0 : index
    %c0_60 = arith.constant 0 : index
    %83 = vector.load %arg9[%c0_58, %c0_59, %c0_60] : memref<1x8x32xf32, #tpu.memory_space<vmem>>, vector<1x8x32xf32>
    %84 = vector.shape_cast %83 : vector<1x8x32xf32> to vector<8x32xf32>
    %85 = vector.shape_cast %82 : vector<8x32xf32> to vector<1x8x32xf32>
    tpu.vector_store %arg9[%c0_58, %c0_59, %c0_60], %85 {strides = array<i32>} : memref<1x8x32xf32, #tpu.memory_space<vmem>>, vector<1x8x32xf32>,
    return
  }
  func.func @transform_0(%arg0: i32, %arg1: i32) -> (i32, i32, i32) {
    %c0_i32 = arith.constant 0 : i32
    %c0_i32_0 = arith.constant 0 : i32
    %c0_i32_1 = arith.constant 0 : i32
    return %arg0, %c0_i32, %c0_i32_0 : i32, i32, i32
  }
  func.func @transform_1(%arg0: i32, %arg1: i32) -> (i32, i32) {
    %c0_i32 = arith.constant 0 : i32
    %c0_i32_0 = arith.constant 0 : i32
    %c0_i32_1 = arith.constant 0 : i32
    return %c0_i32, %c0_i32_0 : i32, i32
  }
  func.func @transform_2(%arg0: i32, %arg1: i32) -> (i32, i32) {
    %c0_i32 = arith.constant 0 : i32
    %c0_i32_0 = arith.constant 0 : i32
    %c0_i32_1 = arith.constant 0 : i32
    return %c0_i32, %c0_i32_0 : i32, i32
  }
  func.func @transform_3(%arg0: i32, %arg1: i32) -> (i32, i32, i32) {
    %c0_i32 = arith.constant 0 : i32
    %c0_i32_0 = arith.constant 0 : i32
    %c0_i32_1 = arith.constant 0 : i32
    %c0_i32_2 = arith.constant 0 : i32
    return %c0_i32, %c0_i32_0, %c0_i32_1 : i32, i32, i32
  }
  func.func @transform_4(%arg0: i32, %arg1: i32) -> (i32, i32, i32) {
    %c0_i32 = arith.constant 0 : i32
    %c0_i32_0 = arith.constant 0 : i32
    %c0_i32_1 = arith.constant 0 : i32
    %c0_i32_2 = arith.constant 0 : i32
    return %c0_i32, %c0_i32_0, %c0_i32_1 : i32, i32, i32
  }
  func.func @transform_5(%arg0: i32, %arg1: i32) -> (i32, i32, i32) {
    %c0_i32 = arith.constant 0 : i32
    %c0_i32_0 = arith.constant 0 : i32
    %c0_i32_1 = arith.constant 0 : i32
    %c0_i32_2 = arith.constant 0 : i32
    return %c0_i32, %c0_i32_0, %c0_i32_1 : i32, i32, i32
  }
  func.func @transform_6(%arg0: i32, %arg1: i32) -> (i32, i32, i32) {
    %c0_i32 = arith.constant 0 : i32
    %c0_i32_0 = arith.constant 0 : i32
    %c0_i32_1 = arith.constant 0 : i32
    %c0_i32_2 = arith.constant 0 : i32
    return %c0_i32, %c0_i32_0, %c0_i32_1 : i32, i32, i32
  }
  func.func @transform_7(%arg0: i32, %arg1: i32) -> (i32, i32, i32) {
    %c0_i32 = arith.constant 0 : i32
    %c0_i32_0 = arith.constant 0 : i32
    return %arg0, %arg1, %c0_i32 : i32, i32, i32
  }
}

module attributes {stable_mosaic.version = 11 : i64} {
  func.func @_attention_kernel(%arg0: i32, %arg1: i32, %arg2: memref<1x8x32xf32, #tpu.memory_space<vmem>>, %arg3: memref<1x32xf32, #tpu.memory_space<vmem>>, %arg4: memref<1x32xf32, #tpu.memory_space<vmem>>, %arg5: memref<4x32x8xbf16, #tpu.memory_space<vmem>>, %arg6: memref<4x32x8xbf16, #tpu.memory_space<vmem>>, %arg7: memref<4x32x8xbf16, #tpu.memory_space<vmem>>, %arg8: memref<4x8x32xbf16, #tpu.memory_space<vmem>>, %arg9: memref<1x8x32xf32, #tpu.memory_space<vmem>>, %arg10: memref<8x32xbf16, #tpu.memory_space<vmem>>, %arg11: memref<4x8x8xbf16, #tpu.memory_space<vmem>>, %arg12: memref<4x8x8xbf16, #tpu.memory_space<vmem>>, %arg13: memref<4x8x8xbf16, #tpu.memory_space<vmem>>) attributes {dimension_semantics = [#tpu.dimension_semantics<parallel>, #tpu.dimension_semantics<arbitrary>], iteration_bounds = array<i64: 2, 1>, scalar_prefetch = 0 : i64, scratch_operands = 4 : i64, tpu.core_type = #tpu.core_type<tc>, window_params = [{transform_indices = @transform_0, window_bounds = array<i64: 1, 8, 32>}, {pipeline_mode = #tpu.pipeline_mode<synchronous>, transform_indices = @transform_1, window_bounds = array<i64: 1, 32>}, {pipeline_mode = #tpu.pipeline_mode<synchronous>, transform_indices = @transform_2, window_bounds = array<i64: 1, 32>}, {pipeline_mode = #tpu.pipeline_mode<synchronous>, transform_indices = @transform_3, window_bounds = array<i64: 4, 32, 8>}, {pipeline_mode = #tpu.pipeline_mode<synchronous>, transform_indices = @transform_4, window_bounds = array<i64: 4, 32, 8>}, {pipeline_mode = #tpu.pipeline_mode<synchronous>, transform_indices = @transform_5, window_bounds = array<i64: 4, 32, 8>}, {pipeline_mode = #tpu.pipeline_mode<synchronous>, transform_indices = @transform_6, window_bounds = array<i64: 4, 8, 32>}, {transform_indices = @transform_7, window_bounds = array<i64: 1, 8, 32>}]} {
    %c0_i32 = arith.constant 0 : i32
    %0 = arith.cmpi eq, %arg1, %c0_i32 : i32
    %1 = arith.extui %0 : i1 to i32
    %c0_i32_0 = arith.constant 0 : i32
    %2 = arith.cmpi ne, %1, %c0_i32_0 : i32
    scf.if %2 {
      %c0_61 = arith.constant 0 : index
      %c0_62 = arith.constant 0 : index
      %c0_63 = arith.constant 0 : index
      %86 = vector.load %arg2[%c0_61, %c0_62, %c0_63] : memref<1x8x32xf32, #tpu.memory_space<vmem>>, vector<1x8x32xf32>
      %87 = vector.shape_cast %86 : vector<1x8x32xf32> to vector<8x32xf32>
      %cst_64 = arith.constant dense<0.000000e+00> : vector<8xf32>
      %88 = vector.multi_reduction <add>, %87, %cst_64 [1] : vector<8x32xf32> to vector<8xf32>
      %89 = vector.shape_cast %88 : vector<8xf32> to vector<8x1xf32>
      %cst_65 = arith.constant 3.200000e+01 : f32
      %90 = vector.broadcast %cst_65 : f32 to vector<8x1xf32>
      %91 = arith.divf %89, %90 : vector<8x1xf32>
      %92 = vector.broadcast %91 : vector<8x1xf32> to vector<8x32xf32>
      %93 = arith.subf %87, %92 : vector<8x32xf32>
      %94 = arith.mulf %93, %93 : vector<8x32xf32>
      %cst_66 = arith.constant dense<0.000000e+00> : vector<8xf32>
      %95 = vector.multi_reduction <add>, %94, %cst_66 [1] : vector<8x32xf32> to vector<8xf32>
      %96 = vector.shape_cast %95 : vector<8xf32> to vector<8x1xf32>
      %cst_67 = arith.constant 3.200000e+01 : f32
      %97 = vector.broadcast %cst_67 : f32 to vector<8x1xf32>
      %98 = arith.divf %96, %97 : vector<8x1xf32>
      %99 = vector.broadcast %91 : vector<8x1xf32> to vector<8x32xf32>
      %100 = arith.subf %87, %99 : vector<8x32xf32>
      %cst_68 = arith.constant 9.99999974E-6 : f32
      %101 = vector.broadcast %cst_68 : f32 to vector<8x1xf32>
      %102 = arith.addf %98, %101 : vector<8x1xf32>
      %103 = math.rsqrt %102 : vector<8x1xf32>
      %104 = vector.broadcast %103 : vector<8x1xf32> to vector<8x32xf32>
      %105 = arith.mulf %100, %104 : vector<8x32xf32>
      %c0_69 = arith.constant 0 : index
      %c0_70 = arith.constant 0 : index
      %106 = vector.load %arg3[%c0_69, %c0_70] : memref<1x32xf32, #tpu.memory_space<vmem>>, vector<1x32xf32>
      %107 = vector.broadcast %106 : vector<1x32xf32> to vector<8x32xf32>
      %108 = arith.mulf %105, %107 : vector<8x32xf32>
      %c0_71 = arith.constant 0 : index
      %c0_72 = arith.constant 0 : index
      %109 = vector.load %arg4[%c0_71, %c0_72] : memref<1x32xf32, #tpu.memory_space<vmem>>, vector<1x32xf32>
      %110 = vector.broadcast %109 : vector<1x32xf32> to vector<8x32xf32>
      %111 = arith.addf %108, %110 : vector<8x32xf32>
      %112 = arith.truncf %111 : vector<8x32xf32> to vector<8x32xbf16>
      %c0_73 = arith.constant 0 : index
      %c0_74 = arith.constant 0 : index
      %113 = vector.load %arg10[%c0_73, %c0_74] : memref<8x32xbf16, #tpu.memory_space<vmem>>, vector<8x32xbf16>
      tpu.vector_store %arg10[%c0_73, %c0_74], %112 {strides = array<i32>} : memref<8x32xbf16, #tpu.memory_space<vmem>>, vector<8x32xbf16>,
      %c0_75 = arith.constant 0 : index
      %c0_76 = arith.constant 0 : index
      %c0_77 = arith.constant 0 : index
      %114 = vector.load %arg6[%c0_75, %c0_76, %c0_77] : memref<4x32x8xbf16, #tpu.memory_space<vmem>>, vector<1x32x8xbf16>
      %115 = vector.shape_cast %114 : vector<1x32x8xbf16> to vector<32x8xbf16>
      %cst_78 = arith.constant dense<0.000000e+00> : vector<8x8xf32>
      %116 = tpu.matmul %112, %115, %cst_78 {dimension_numbers = #tpu.dot_dimension_numbers<[1], [0], [0], [1], [0, 0, 1, 1], [], []>} : vector<8x32xbf16>, vector<32x8xbf16>, vector<8x8xf32> -> vector<8x8xf32>
      %117 = arith.truncf %116 : vector<8x8xf32> to vector<8x8xbf16>
      %c0_79 = arith.constant 0 : index
      %c0_80 = arith.constant 0 : index
      %c0_81 = arith.constant 0 : index
      %118 = vector.load %arg12[%c0_79, %c0_80, %c0_81] : memref<4x8x8xbf16, #tpu.memory_space<vmem>>, vector<1x8x8xbf16>
      %119 = vector.shape_cast %118 : vector<1x8x8xbf16> to vector<8x8xbf16>
      %120 = vector.shape_cast %117 : vector<8x8xbf16> to vector<1x8x8xbf16>
      tpu.vector_store %arg12[%c0_79, %c0_80, %c0_81], %120 {strides = array<i32>} : memref<4x8x8xbf16, #tpu.memory_space<vmem>>, vector<1x8x8xbf16>,
      %c0_82 = arith.constant 0 : index
      %c0_83 = arith.constant 0 : index
      %c0_84 = arith.constant 0 : index
      %121 = vector.load %arg7[%c0_82, %c0_83, %c0_84] : memref<4x32x8xbf16, #tpu.memory_space<vmem>>, vector<1x32x8xbf16>
      %122 = vector.shape_cast %121 : vector<1x32x8xbf16> to vector<32x8xbf16>
      %cst_85 = arith.constant dense<0.000000e+00> : vector<8x8xf32>
      %123 = tpu.matmul %112, %122, %cst_85 {dimension_numbers = #tpu.dot_dimension_numbers<[1], [0], [0], [1], [0, 0, 1, 1], [], []>} : vector<8x32xbf16>, vector<32x8xbf16>, vector<8x8xf32> -> vector<8x8xf32>
      %124 = arith.truncf %123 : vector<8x8xf32> to vector<8x8xbf16>
      %c0_86 = arith.constant 0 : index
      %c0_87 = arith.constant 0 : index
      %c0_88 = arith.constant 0 : index
      %125 = vector.load %arg13[%c0_86, %c0_87, %c0_88] : memref<4x8x8xbf16, #tpu.memory_space<vmem>>, vector<1x8x8xbf16>
      %126 = vector.shape_cast %125 : vector<1x8x8xbf16> to vector<8x8xbf16>
      %127 = vector.shape_cast %124 : vector<8x8xbf16> to vector<1x8x8xbf16>
      tpu.vector_store %arg13[%c0_86, %c0_87, %c0_88], %127 {strides = array<i32>} : memref<4x8x8xbf16, #tpu.memory_space<vmem>>, vector<1x8x8xbf16>,
      %c1_89 = arith.constant 1 : index
      %c0_90 = arith.constant 0 : index
      %c0_91 = arith.constant 0 : index
      %128 = vector.load %arg6[%c1_89, %c0_90, %c0_91] : memref<4x32x8xbf16, #tpu.memory_space<vmem>>, vector<1x32x8xbf16>
      %129 = vector.shape_cast %128 : vector<1x32x8xbf16> to vector<32x8xbf16>
      %cst_92 = arith.constant dense<0.000000e+00> : vector<8x8xf32>
      %130 = tpu.matmul %112, %129, %cst_92 {dimension_numbers = #tpu.dot_dimension_numbers<[1], [0], [0], [1], [0, 0, 1, 1], [], []>} : vector<8x32xbf16>, vector<32x8xbf16>, vector<8x8xf32> -> vector<8x8xf32>
      %131 = arith.truncf %130 : vector<8x8xf32> to vector<8x8xbf16>
      %c1_93 = arith.constant 1 : index
      %c0_94 = arith.constant 0 : index
      %c0_95 = arith.constant 0 : index
      %132 = vector.load %arg12[%c1_93, %c0_94, %c0_95] : memref<4x8x8xbf16, #tpu.memory_space<vmem>>, vector<1x8x8xbf16>
      %133 = vector.shape_cast %132 : vector<1x8x8xbf16> to vector<8x8xbf16>
      %134 = vector.shape_cast %131 : vector<8x8xbf16> to vector<1x8x8xbf16>
      tpu.vector_store %arg12[%c1_93, %c0_94, %c0_95], %134 {strides = array<i32>} : memref<4x8x8xbf16, #tpu.memory_space<vmem>>, vector<1x8x8xbf16>,
      %c1_96 = arith.constant 1 : index
      %c0_97 = arith.constant 0 : index
      %c0_98 = arith.constant 0 : index
      %135 = vector.load %arg7[%c1_96, %c0_97, %c0_98] : memref<4x32x8xbf16, #tpu.memory_space<vmem>>, vector<1x32x8xbf16>
      %136 = vector.shape_cast %135 : vector<1x32x8xbf16> to vector<32x8xbf16>
      %cst_99 = arith.constant dense<0.000000e+00> : vector<8x8xf32>
      %137 = tpu.matmul %112, %136, %cst_99 {dimension_numbers = #tpu.dot_dimension_numbers<[1], [0], [0], [1], [0, 0, 1, 1], [], []>} : vector<8x32xbf16>, vector<32x8xbf16>, vector<8x8xf32> -> vector<8x8xf32>
      %138 = arith.truncf %137 : vector<8x8xf32> to vector<8x8xbf16>
      %c1_100 = arith.constant 1 : index
      %c0_101 = arith.constant 0 : index
      %c0_102 = arith.constant 0 : index
      %139 = vector.load %arg13[%c1_100, %c0_101, %c0_102] : memref<4x8x8xbf16, #tpu.memory_space<vmem>>, vector<1x8x8xbf16>
      %140 = vector.shape_cast %139 : vector<1x8x8xbf16> to vector<8x8xbf16>
      %141 = vector.shape_cast %138 : vector<8x8xbf16> to vector<1x8x8xbf16>
      tpu.vector_store %arg13[%c1_100, %c0_101, %c0_102], %141 {strides = array<i32>} : memref<4x8x8xbf16, #tpu.memory_space<vmem>>, vector<1x8x8xbf16>,
      %c2_103 = arith.constant 2 : index
      %c0_104 = arith.constant 0 : index
      %c0_105 = arith.constant 0 : index
      %142 = vector.load %arg6[%c2_103, %c0_104, %c0_105] : memref<4x32x8xbf16, #tpu.memory_space<vmem>>, vector<1x32x8xbf16>
      %143 = vector.shape_cast %142 : vector<1x32x8xbf16> to vector<32x8xbf16>
      %cst_106 = arith.constant dense<0.000000e+00> : vector<8x8xf32>
      %144 = tpu.matmul %112, %143, %cst_106 {dimension_numbers = #tpu.dot_dimension_numbers<[1], [0], [0], [1], [0, 0, 1, 1], [], []>} : vector<8x32xbf16>, vector<32x8xbf16>, vector<8x8xf32> -> vector<8x8xf32>
      %145 = arith.truncf %144 : vector<8x8xf32> to vector<8x8xbf16>
      %c2_107 = arith.constant 2 : index
      %c0_108 = arith.constant 0 : index
      %c0_109 = arith.constant 0 : index
      %146 = vector.load %arg12[%c2_107, %c0_108, %c0_109] : memref<4x8x8xbf16, #tpu.memory_space<vmem>>, vector<1x8x8xbf16>
      %147 = vector.shape_cast %146 : vector<1x8x8xbf16> to vector<8x8xbf16>
      %148 = vector.shape_cast %145 : vector<8x8xbf16> to vector<1x8x8xbf16>
      tpu.vector_store %arg12[%c2_107, %c0_108, %c0_109], %148 {strides = array<i32>} : memref<4x8x8xbf16, #tpu.memory_space<vmem>>, vector<1x8x8xbf16>,
      %c2_110 = arith.constant 2 : index
      %c0_111 = arith.constant 0 : index
      %c0_112 = arith.constant 0 : index
      %149 = vector.load %arg7[%c2_110, %c0_111, %c0_112] : memref<4x32x8xbf16, #tpu.memory_space<vmem>>, vector<1x32x8xbf16>
      %150 = vector.shape_cast %149 : vector<1x32x8xbf16> to vector<32x8xbf16>
      %cst_113 = arith.constant dense<0.000000e+00> : vector<8x8xf32>
      %151 = tpu.matmul %112, %150, %cst_113 {dimension_numbers = #tpu.dot_dimension_numbers<[1], [0], [0], [1], [0, 0, 1, 1], [], []>} : vector<8x32xbf16>, vector<32x8xbf16>, vector<8x8xf32> -> vector<8x8xf32>
      %152 = arith.truncf %151 : vector<8x8xf32> to vector<8x8xbf16>
      %c2_114 = arith.constant 2 : index
      %c0_115 = arith.constant 0 : index
      %c0_116 = arith.constant 0 : index
      %153 = vector.load %arg13[%c2_114, %c0_115, %c0_116] : memref<4x8x8xbf16, #tpu.memory_space<vmem>>, vector<1x8x8xbf16>
      %154 = vector.shape_cast %153 : vector<1x8x8xbf16> to vector<8x8xbf16>
      %155 = vector.shape_cast %152 : vector<8x8xbf16> to vector<1x8x8xbf16>
      tpu.vector_store %arg13[%c2_114, %c0_115, %c0_116], %155 {strides = array<i32>} : memref<4x8x8xbf16, #tpu.memory_space<vmem>>, vector<1x8x8xbf16>,
      %c3_117 = arith.constant 3 : index
      %c0_118 = arith.constant 0 : index
      %c0_119 = arith.constant 0 : index
      %156 = vector.load %arg6[%c3_117, %c0_118, %c0_119] : memref<4x32x8xbf16, #tpu.memory_space<vmem>>, vector<1x32x8xbf16>
      %157 = vector.shape_cast %156 : vector<1x32x8xbf16> to vector<32x8xbf16>
      %cst_120 = arith.constant dense<0.000000e+00> : vector<8x8xf32>
      %158 = tpu.matmul %112, %157, %cst_120 {dimension_numbers = #tpu.dot_dimension_numbers<[1], [0], [0], [1], [0, 0, 1, 1], [], []>} : vector<8x32xbf16>, vector<32x8xbf16>, vector<8x8xf32> -> vector<8x8xf32>
      %159 = arith.truncf %158 : vector<8x8xf32> to vector<8x8xbf16>
      %c3_121 = arith.constant 3 : index
      %c0_122 = arith.constant 0 : index
      %c0_123 = arith.constant 0 : index
      %160 = vector.load %arg12[%c3_121, %c0_122, %c0_123] : memref<4x8x8xbf16, #tpu.memory_space<vmem>>, vector<1x8x8xbf16>
      %161 = vector.shape_cast %160 : vector<1x8x8xbf16> to vector<8x8xbf16>
      %162 = vector.shape_cast %159 : vector<8x8xbf16> to vector<1x8x8xbf16>
      tpu.vector_store %arg12[%c3_121, %c0_122, %c0_123], %162 {strides = array<i32>} : memref<4x8x8xbf16, #tpu.memory_space<vmem>>, vector<1x8x8xbf16>,
      %c3_124 = arith.constant 3 : index
      %c0_125 = arith.constant 0 : index
      %c0_126 = arith.constant 0 : index
      %163 = vector.load %arg7[%c3_124, %c0_125, %c0_126] : memref<4x32x8xbf16, #tpu.memory_space<vmem>>, vector<1x32x8xbf16>
      %164 = vector.shape_cast %163 : vector<1x32x8xbf16> to vector<32x8xbf16>
      %cst_127 = arith.constant dense<0.000000e+00> : vector<8x8xf32>
      %165 = tpu.matmul %112, %164, %cst_127 {dimension_numbers = #tpu.dot_dimension_numbers<[1], [0], [0], [1], [0, 0, 1, 1], [], []>} : vector<8x32xbf16>, vector<32x8xbf16>, vector<8x8xf32> -> vector<8x8xf32>
      %166 = arith.truncf %165 : vector<8x8xf32> to vector<8x8xbf16>
      %c3_128 = arith.constant 3 : index
      %c0_129 = arith.constant 0 : index
      %c0_130 = arith.constant 0 : index
      %167 = vector.load %arg13[%c3_128, %c0_129, %c0_130] : memref<4x8x8xbf16, #tpu.memory_space<vmem>>, vector<1x8x8xbf16>
      %168 = vector.shape_cast %167 : vector<1x8x8xbf16> to vector<8x8xbf16>
      %169 = vector.shape_cast %166 : vector<8x8xbf16> to vector<1x8x8xbf16>
      tpu.vector_store %arg13[%c3_128, %c0_129, %c0_130], %169 {strides = array<i32>} : memref<4x8x8xbf16, #tpu.memory_space<vmem>>, vector<1x8x8xbf16>,
    } else {
    }
    %c8_i32 = arith.constant 8 : i32
    %3 = arith.muli %arg1, %c8_i32 : i32
    %4 = tpu.assume_multiple %3, 8 : i32
    %5 = arith.index_cast %4 : i32 to index
    %c0 = arith.constant 0 : index
    %6 = vector.load %arg10[%5, %c0] : memref<8x32xbf16, #tpu.memory_space<vmem>>, vector<8x32xbf16>
    %c0_1 = arith.constant 0 : index
    %c0_2 = arith.constant 0 : index
    %c0_3 = arith.constant 0 : index
    %7 = vector.load %arg5[%c0_1, %c0_2, %c0_3] : memref<4x32x8xbf16, #tpu.memory_space<vmem>>, vector<1x32x8xbf16>
    %8 = vector.shape_cast %7 : vector<1x32x8xbf16> to vector<32x8xbf16>
    %cst = arith.constant dense<0.000000e+00> : vector<8x8xf32>
    %9 = tpu.matmul %6, %8, %cst {dimension_numbers = #tpu.dot_dimension_numbers<[1], [0], [0], [1], [0, 0, 1, 1], [], []>} : vector<8x32xbf16>, vector<32x8xbf16>, vector<8x8xf32> -> vector<8x8xf32>
    %cst_4 = arith.constant 0.353553385 : f32
    %10 = vector.broadcast %cst_4 : f32 to vector<8x8xf32>
    %11 = arith.mulf %9, %10 : vector<8x8xf32>
    %12 = arith.truncf %11 : vector<8x8xf32> to vector<8x8xbf16>
    %c0_5 = arith.constant 0 : index
    %c0_6 = arith.constant 0 : index
    %c0_7 = arith.constant 0 : index
    %13 = vector.load %arg11[%c0_5, %c0_6, %c0_7] : memref<4x8x8xbf16, #tpu.memory_space<vmem>>, vector<1x8x8xbf16>
    %14 = vector.shape_cast %13 : vector<1x8x8xbf16> to vector<8x8xbf16>
    %15 = vector.shape_cast %12 : vector<8x8xbf16> to vector<1x8x8xbf16>
    tpu.vector_store %arg11[%c0_5, %c0_6, %c0_7], %15 {strides = array<i32>} : memref<4x8x8xbf16, #tpu.memory_space<vmem>>, vector<1x8x8xbf16>,
    %c1 = arith.constant 1 : index
    %c0_8 = arith.constant 0 : index
    %c0_9 = arith.constant 0 : index
    %16 = vector.load %arg5[%c1, %c0_8, %c0_9] : memref<4x32x8xbf16, #tpu.memory_space<vmem>>, vector<1x32x8xbf16>
    %17 = vector.shape_cast %16 : vector<1x32x8xbf16> to vector<32x8xbf16>
    %cst_10 = arith.constant dense<0.000000e+00> : vector<8x8xf32>
    %18 = tpu.matmul %6, %17, %cst_10 {dimension_numbers = #tpu.dot_dimension_numbers<[1], [0], [0], [1], [0, 0, 1, 1], [], []>} : vector<8x32xbf16>, vector<32x8xbf16>, vector<8x8xf32> -> vector<8x8xf32>
    %cst_11 = arith.constant 0.353553385 : f32
    %19 = vector.broadcast %cst_11 : f32 to vector<8x8xf32>
    %20 = arith.mulf %18, %19 : vector<8x8xf32>
    %21 = arith.truncf %20 : vector<8x8xf32> to vector<8x8xbf16>
    %c1_12 = arith.constant 1 : index
    %c0_13 = arith.constant 0 : index
    %c0_14 = arith.constant 0 : index
    %22 = vector.load %arg11[%c1_12, %c0_13, %c0_14] : memref<4x8x8xbf16, #tpu.memory_space<vmem>>, vector<1x8x8xbf16>
    %23 = vector.shape_cast %22 : vector<1x8x8xbf16> to vector<8x8xbf16>
    %24 = vector.shape_cast %21 : vector<8x8xbf16> to vector<1x8x8xbf16>
    tpu.vector_store %arg11[%c1_12, %c0_13, %c0_14], %24 {strides = array<i32>} : memref<4x8x8xbf16, #tpu.memory_space<vmem>>, vector<1x8x8xbf16>,
    %c2 = arith.constant 2 : index
    %c0_15 = arith.constant 0 : index
    %c0_16 = arith.constant 0 : index
    %25 = vector.load %arg5[%c2, %c0_15, %c0_16] : memref<4x32x8xbf16, #tpu.memory_space<vmem>>, vector<1x32x8xbf16>
    %26 = vector.shape_cast %25 : vector<1x32x8xbf16> to vector<32x8xbf16>
    %cst_17 = arith.constant dense<0.000000e+00> : vector<8x8xf32>
    %27 = tpu.matmul %6, %26, %cst_17 {dimension_numbers = #tpu.dot_dimension_numbers<[1], [0], [0], [1], [0, 0, 1, 1], [], []>} : vector<8x32xbf16>, vector<32x8xbf16>, vector<8x8xf32> -> vector<8x8xf32>
    %cst_18 = arith.constant 0.353553385 : f32
    %28 = vector.broadcast %cst_18 : f32 to vector<8x8xf32>
    %29 = arith.mulf %27, %28 : vector<8x8xf32>
    %30 = arith.truncf %29 : vector<8x8xf32> to vector<8x8xbf16>
    %c2_19 = arith.constant 2 : index
    %c0_20 = arith.constant 0 : index
    %c0_21 = arith.constant 0 : index
    %31 = vector.load %arg11[%c2_19, %c0_20, %c0_21] : memref<4x8x8xbf16, #tpu.memory_space<vmem>>, vector<1x8x8xbf16>
    %32 = vector.shape_cast %31 : vector<1x8x8xbf16> to vector<8x8xbf16>
    %33 = vector.shape_cast %30 : vector<8x8xbf16> to vector<1x8x8xbf16>
    tpu.vector_store %arg11[%c2_19, %c0_20, %c0_21], %33 {strides = array<i32>} : memref<4x8x8xbf16, #tpu.memory_space<vmem>>, vector<1x8x8xbf16>,
    %c3 = arith.constant 3 : index
    %c0_22 = arith.constant 0 : index
    %c0_23 = arith.constant 0 : index
    %34 = vector.load %arg5[%c3, %c0_22, %c0_23] : memref<4x32x8xbf16, #tpu.memory_space<vmem>>, vector<1x32x8xbf16>
    %35 = vector.shape_cast %34 : vector<1x32x8xbf16> to vector<32x8xbf16>
    %cst_24 = arith.constant dense<0.000000e+00> : vector<8x8xf32>
    %36 = tpu.matmul %6, %35, %cst_24 {dimension_numbers = #tpu.dot_dimension_numbers<[1], [0], [0], [1], [0, 0, 1, 1], [], []>} : vector<8x32xbf16>, vector<32x8xbf16>, vector<8x8xf32> -> vector<8x8xf32>
    %cst_25 = arith.constant 0.353553385 : f32
    %37 = vector.broadcast %cst_25 : f32 to vector<8x8xf32>
    %38 = arith.mulf %36, %37 : vector<8x8xf32>
    %39 = arith.truncf %38 : vector<8x8xf32> to vector<8x8xbf16>
    %c3_26 = arith.constant 3 : index
    %c0_27 = arith.constant 0 : index
    %c0_28 = arith.constant 0 : index
    %40 = vector.load %arg11[%c3_26, %c0_27, %c0_28] : memref<4x8x8xbf16, #tpu.memory_space<vmem>>, vector<1x8x8xbf16>
    %41 = vector.shape_cast %40 : vector<1x8x8xbf16> to vector<8x8xbf16>
    %42 = vector.shape_cast %39 : vector<8x8xbf16> to vector<1x8x8xbf16>
    tpu.vector_store %arg11[%c3_26, %c0_27, %c0_28], %42 {strides = array<i32>} : memref<4x8x8xbf16, #tpu.memory_space<vmem>>, vector<1x8x8xbf16>,
    %c0_29 = arith.constant 0 : index
    %c0_30 = arith.constant 0 : index
    %c0_31 = arith.constant 0 : index
    %43 = vector.load %arg11[%c0_29, %c0_30, %c0_31] : memref<4x8x8xbf16, #tpu.memory_space<vmem>>, vector<4x8x8xbf16>
    %c0_32 = arith.constant 0 : index
    %c0_33 = arith.constant 0 : index
    %c0_34 = arith.constant 0 : index
    %44 = vector.load %arg12[%c0_32, %c0_33, %c0_34] : memref<4x8x8xbf16, #tpu.memory_space<vmem>>, vector<4x8x8xbf16>
    %c0_35 = arith.constant 0 : index
    %c0_36 = arith.constant 0 : index
    %c0_37 = arith.constant 0 : index
    %45 = vector.load %arg13[%c0_35, %c0_36, %c0_37] : memref<4x8x8xbf16, #tpu.memory_space<vmem>>, vector<4x8x8xbf16>
    "tpu.trace_start"() <{level = 10 : i32, message = "hqd,hkd->hqk"}> : () -> ()
    %cst_38 = arith.constant dense<0.000000e+00> : vector<4x8x8xf32>
    %46 = tpu.matmul %43, %44, %cst_38 {dimension_numbers = #tpu.dot_dimension_numbers<[2], [2], [1], [1], [0, 0, 0, 1, 1, 1], [0], [0]>} : vector<4x8x8xbf16>, vector<4x8x8xbf16>, vector<4x8x8xf32> -> vector<4x8x8xf32>
    "tpu.trace_stop"() : () -> ()
    %cst_39 = arith.constant dense<0xFF800000> : vector<4x8xf32>
    %47 = vector.multi_reduction <maximumf>, %46, %cst_39 [2] : vector<4x8x8xf32> to vector<4x8xf32>
    %48 = vector.shape_cast %47 : vector<4x8xf32> to vector<4x8x1xf32>
    %49 = vector.broadcast %48 : vector<4x8x1xf32> to vector<4x8x8xf32>
    %50 = arith.subf %46, %49 : vector<4x8x8xf32>
    %51 = math.exp %50 : vector<4x8x8xf32>
    %cst_40 = arith.constant dense<0.000000e+00> : vector<4x8xf32>
    %52 = vector.multi_reduction <add>, %51, %cst_40 [2] : vector<4x8x8xf32> to vector<4x8xf32>
    %53 = vector.shape_cast %52 : vector<4x8xf32> to vector<4x8x1xf32>
    %54 = tpu.reciprocal %53 {approx = true} : vector<4x8x1xf32> -> vector<4x8x1xf32>
    %55 = vector.broadcast %54 : vector<4x8x1xf32> to vector<4x8x8xf32>
    %56 = arith.mulf %51, %55 : vector<4x8x8xf32>
    %57 = arith.truncf %56 : vector<4x8x8xf32> to vector<4x8x8xbf16>
    "tpu.trace_start"() <{level = 10 : i32, message = "hqk,hkd->hqd"}> : () -> ()
    %cst_41 = arith.constant dense<0.000000e+00> : vector<4x8x8xf32>
    %58 = tpu.matmul %57, %45, %cst_41 {dimension_numbers = #tpu.dot_dimension_numbers<[2], [1], [1], [2], [0, 0, 0, 1, 1, 2], [0], [0]>} : vector<4x8x8xbf16>, vector<4x8x8xbf16>, vector<4x8x8xf32> -> vector<4x8x8xf32>
    "tpu.trace_stop"() : () -> ()
    %59 = arith.truncf %58 : vector<4x8x8xf32> to vector<4x8x8xbf16>
    %60 = vector.extract_strided_slice %59 {offsets = [0, 0, 0], sizes = [1, 8, 8], strides = [1, 1, 1]} : vector<4x8x8xbf16> to vector<1x8x8xbf16>
    %61 = vector.shape_cast %60 : vector<1x8x8xbf16> to vector<8x8xbf16>
    %c0_42 = arith.constant 0 : index
    %c0_43 = arith.constant 0 : index
    %c0_44 = arith.constant 0 : index
    %62 = vector.load %arg8[%c0_42, %c0_43, %c0_44] : memref<4x8x32xbf16, #tpu.memory_space<vmem>>, vector<1x8x32xbf16>
    %63 = vector.shape_cast %62 : vector<1x8x32xbf16> to vector<8x32xbf16>
    %cst_45 = arith.constant dense<0.000000e+00> : vector<8x32xf32>
    %64 = tpu.matmul %61, %63, %cst_45 {dimension_numbers = #tpu.dot_dimension_numbers<[1], [0], [0], [1], [0, 0, 1, 1], [], []>} : vector<8x8xbf16>, vector<8x32xbf16>, vector<8x32xf32> -> vector<8x32xf32>
    %65 = vector.extract_strided_slice %59 {offsets = [1, 0, 0], sizes = [1, 8, 8], strides = [1, 1, 1]} : vector<4x8x8xbf16> to vector<1x8x8xbf16>
    %66 = vector.shape_cast %65 : vector<1x8x8xbf16> to vector<8x8xbf16>
    %c1_46 = arith.constant 1 : index
    %c0_47 = arith.constant 0 : index
    %c0_48 = arith.constant 0 : index
    %67 = vector.load %arg8[%c1_46, %c0_47, %c0_48] : memref<4x8x32xbf16, #tpu.memory_space<vmem>>, vector<1x8x32xbf16>
    %68 = vector.shape_cast %67 : vector<1x8x32xbf16> to vector<8x32xbf16>
    %cst_49 = arith.constant dense<0.000000e+00> : vector<8x32xf32>
    %69 = tpu.matmul %66, %68, %cst_49 {dimension_numbers = #tpu.dot_dimension_numbers<[1], [0], [0], [1], [0, 0, 1, 1], [], []>} : vector<8x8xbf16>, vector<8x32xbf16>, vector<8x32xf32> -> vector<8x32xf32>
    %70 = arith.addf %64, %69 : vector<8x32xf32>
    %71 = vector.extract_strided_slice %59 {offsets = [2, 0, 0], sizes = [1, 8, 8], strides = [1, 1, 1]} : vector<4x8x8xbf16> to vector<1x8x8xbf16>
    %72 = vector.shape_cast %71 : vector<1x8x8xbf16> to vector<8x8xbf16>
    %c2_50 = arith.constant 2 : index
    %c0_51 = arith.constant 0 : index
    %c0_52 = arith.constant 0 : index
    %73 = vector.load %arg8[%c2_50, %c0_51, %c0_52] : memref<4x8x32xbf16, #tpu.memory_space<vmem>>, vector<1x8x32xbf16>
    %74 = vector.shape_cast %73 : vector<1x8x32xbf16> to vector<8x32xbf16>
    %cst_53 = arith.constant dense<0.000000e+00> : vector<8x32xf32>
    %75 = tpu.matmul %72, %74, %cst_53 {dimension_numbers = #tpu.dot_dimension_numbers<[1], [0], [0], [1], [0, 0, 1, 1], [], []>} : vector<8x8xbf16>, vector<8x32xbf16>, vector<8x32xf32> -> vector<8x32xf32>
    %76 = arith.addf %70, %75 : vector<8x32xf32>
    %77 = vector.extract_strided_slice %59 {offsets = [3, 0, 0], sizes = [1, 8, 8], strides = [1, 1, 1]} : vector<4x8x8xbf16> to vector<1x8x8xbf16>
    %78 = vector.shape_cast %77 : vector<1x8x8xbf16> to vector<8x8xbf16>
    %c3_54 = arith.constant 3 : index
    %c0_55 = arith.constant 0 : index
    %c0_56 = arith.constant 0 : index
    %79 = vector.load %arg8[%c3_54, %c0_55, %c0_56] : memref<4x8x32xbf16, #tpu.memory_space<vmem>>, vector<1x8x32xbf16>
    %80 = vector.shape_cast %79 : vector<1x8x32xbf16> to vector<8x32xbf16>
    %cst_57 = arith.constant dense<0.000000e+00> : vector<8x32xf32>
    %81 = tpu.matmul %78, %80, %cst_57 {dimension_numbers = #tpu.dot_dimension_numbers<[1], [0], [0], [1], [0, 0, 1, 1], [], []>} : vector<8x8xbf16>, vector<8x32xbf16>, vector<8x32xf32> -> vector<8x32xf32>
    %82 = arith.addf %76, %81 : vector<8x32xf32>
    %c0_58 = arith.constant 0 : index
    %c0_59 = arith.constant 0 : index
    %c0_60 = arith.constant 0 : index
    %83 = vector.load %arg9[%c0_58, %c0_59, %c0_60] : memref<1x8x32xf32, #tpu.memory_space<vmem>>, vector<1x8x32xf32>
    %84 = vector.shape_cast %83 : vector<1x8x32xf32> to vector<8x32xf32>
    %85 = vector.shape_cast %82 : vector<8x32xf32> to vector<1x8x32xf32>
    tpu.vector_store %arg9[%c0_58, %c0_59, %c0_60], %85 {strides = array<i32>} : memref<1x8x32xf32, #tpu.memory_space<vmem>>, vector<1x8x32xf32>,
    return
  }
  func.func @transform_0(%arg0: i32, %arg1: i32) -> (i32, i32, i32) {
    %c0_i32 = arith.constant 0 : i32
    %c0_i32_0 = arith.constant 0 : i32
    %c0_i32_1 = arith.constant 0 : i32
    return %arg0, %c0_i32, %c0_i32_0 : i32, i32, i32
  }
  func.func @transform_1(%arg0: i32, %arg1: i32) -> (i32, i32) {
    %c0_i32 = arith.constant 0 : i32
    %c0_i32_0 = arith.constant 0 : i32
    %c0_i32_1 = arith.constant 0 : i32
    return %c0_i32, %c0_i32_0 : i32, i32
  }
  func.func @transform_2(%arg0: i32, %arg1: i32) -> (i32, i32) {
    %c0_i32 = arith.constant 0 : i32
    %c0_i32_0 = arith.constant 0 : i32
    %c0_i32_1 = arith.constant 0 : i32
    return %c0_i32, %c0_i32_0 : i32, i32
  }
  func.func @transform_3(%arg0: i32, %arg1: i32) -> (i32, i32, i32) {
    %c0_i32 = arith.constant 0 : i32
    %c0_i32_0 = arith.constant 0 : i32
    %c0_i32_1 = arith.constant 0 : i32
    %c0_i32_2 = arith.constant 0 : i32
    return %c0_i32, %c0_i32_0, %c0_i32_1 : i32, i32, i32
  }
  func.func @transform_4(%arg0: i32, %arg1: i32) -> (i32, i32, i32) {
    %c0_i32 = arith.constant 0 : i32
    %c0_i32_0 = arith.constant 0 : i32
    %c0_i32_1 = arith.constant 0 : i32
    %c0_i32_2 = arith.constant 0 : i32
    return %c0_i32, %c0_i32_0, %c0_i32_1 : i32, i32, i32
  }
  func.func @transform_5(%arg0: i32, %arg1: i32) -> (i32, i32, i32) {
    %c0_i32 = arith.constant 0 : i32
    %c0_i32_0 = arith.constant 0 : i32
    %c0_i32_1 = arith.constant 0 : i32
    %c0_i32_2 = arith.constant 0 : i32
    return %c0_i32, %c0_i32_0, %c0_i32_1 : i32, i32, i32
  }
  func.func @transform_6(%arg0: i32, %arg1: i32) -> (i32, i32, i32) {
    %c0_i32 = arith.constant 0 : i32
    %c0_i32_0 = arith.constant 0 : i32
    %c0_i32_1 = arith.constant 0 : i32
    %c0_i32_2 = arith.constant 0 : i32
    return %c0_i32, %c0_i32_0, %c0_i32_1 : i32, i32, i32
  }
  func.func @transform_7(%arg0: i32, %arg1: i32) -> (i32, i32, i32) {
    %c0_i32 = arith.constant 0 : i32
    %c0_i32_0 = arith.constant 0 : i32
    return %arg0, %arg1, %c0_i32 : i32, i32, i32
  }
}

</mosaic_0001>

<bundles_post_ra>
// kernel: tpu_custom_call.1
= control target key start
LH: loop header
LB: loop body
LE: loop exit
PB: predicated region body
PF: predicated region fallthrough
CT: control target
= control target key end

     0   :  { %s3273_s0 = inlined_call_operand.hbm [shape: f32[2,8,32], index: 0, kind: input, shape index: {}]   ;;  %s3274_s1 = inlined_call_operand.hbm [shape: f32[1,32], index: 1, kind: input, shape index: {}]   ;;  %s3275_s2 = inlined_call_operand.hbm [shape: f32[1,32], index: 2, kind: input, shape index: {}]   ;;  %s3276_s3 = inlined_call_operand.hbm [shape: bf16[4,32,8], index: 3, kind: input, shape index: {}]   ;;  %s3277_s4 = inlined_call_operand.hbm [shape: bf16[4,32,8], index: 4, kind: input, shape index: {}]   ;;  %s3278_s5 = inlined_call_operand.hbm [shape: bf16[4,32,8], index: 5, kind: input, shape index: {}]   ;;  %s3279_s6 = inlined_call_operand.hbm [shape: bf16[4,8,32], index: 6, kind: input, shape index: {}]   ;;  %s3280_s7 = inlined_call_operand.hbm [shape: f32[2,8,32], index: 7, kind: output, shape index: {}]  }
   0x1   :  { %3286 = sst [smem:[#allocation24_spill]] %s3274_s1 }
   0x2   :  { %3287 = sst [smem:[#allocation25_spill]] %s3276_s3 }
   0x3   :  { %12 = vsyncpa [#allocation7], 0 }
   0x4   :  { %14 = vsyncpa [#allocation7 + $0x1], 0 }
   0x5   :  { %15 = vsyncpa [#allocation10], 0 }
   0x6   :  { %16 = vsyncpa [#allocation13], 0 }
   0x7   :  { %17 = vsyncpa [#allocation16], 0 }
   0x8   :  { %18 = vsyncpa [#allocation8], 0 }
   0x9   :  { %20 = vsyncpa [#allocation8 + $0x1], 0  ;;  %s2775_s24 = smov 0   ;;  %s2777_s25 = smov 0  }
   0xa   :  { %s2779_s26 = smov 0   ;;  %s2781_s27 = smov 0  }
   0xb   :  { %s2783_s28 = smov 0   ;;  %s2785_s29 = smov 0  }
   0xc LB: > { %s3284_s30 = sadd.s32 4294967295, %s2721_s29   ;;  %p1947_p0 = scmp.ge.s32.totalorder %s2721_s29, 1  ;;  %s2721_s29 = sphi %s2785_s29, %s26_s29   ;;  %s2717_s28 = sphi %s2783_s28, %s3310_s28   ;;  %s2713_s27 = sphi %s2781_s27, %s3309_s27   ;;  %s2709_s26 = sphi %s2779_s26, %s3308_s26   ;;  %s2705_s25 = sphi %s2777_s25, %s3307_s25   ;;  %s2701_s24 = sphi %s2775_s24, %s3306_s24  }
   0xd   : > { %p2809_p1 = scmp.eq.s32.totalorder %s3284_s30, 0  ;;  %p223_p2 = scmp.lt.s32.totalorder %s2721_s29, 3 }
   0xe   : > { %s2723_s10 = smov [#allocation9]   ;;  %s2724_s12 = smov [#allocation12]  }
   0xf   : > { %s3288_s8 = scalar_select %p2809_p1, 1, 0 }
  0x10   : > { %p2814_p3 = pnand %p1947_p0, %p223_p2  ;;  %s236_s11 = sshll.u32 %s2723_s10, 4  ;;  %s237_s11 = int_to_ptr.vmem [resolvable:$true] %s236_s11 }
  0x11   : > { %s257_s13 = sshll.u32 %s2724_s12, 4  ;;  %s2725_s15 = smov [#allocation15]   ;;  %s2827_s13 = int_to_ptr.vmem [resolvable:$true] %s257_s13 }
  0x12   : > { %s3289_s9 = scalar_select %p2814_p3, 1, 0 }
  0x13   : > { %p2288_p5 = pneg %p2814_p3  ;;  %s2829_s16 = sshll.u32 %s2725_s15, 4  ;;  %s284_s16 = int_to_ptr.vmem [resolvable:$true] %s2829_s16 }
  0x14   : > { %s3291_s1 = sld [smem:[#allocation24_spill]] }
  0x15   : > { %p2823_p6 = pnand %p2288_p5, %p2809_p1 }
  0x17   : > { %p2839_p8 = pneg %p2823_p6 }
  0x1a   : > { %s2429_s19 = scalar_lea.hbm %s3291_s1, 16 }
  0x1b   : > { %p2430_p7 = scmp.ne.s32.totalorder %s3291_s1, %s2429_s19  ;;  %p2436_p11 = scmp.lt.u32.totalorder %s2429_s19, %s3291_s1 }
  0x1d   : > { %p2432_p9 = pnand %p2839_p8, %p2430_p7 }
  0x1f   : > { %p2433_p10 = pneg %p2432_p9 }
  0x21   : > { %p2438_p12 = pnand %p2436_p11, %p2433_p10 }
  0x23   : > { %2441 = shalt.err (!%p2438_p12)
}
  0x24   : > { %s2442_s12 = scalar_lea.vmem %s237_s11, 16  ;;  %s2449_s15 = scalar_lea.vmem %s237_s11, 32 }
  0x25   : > { %p2443_p13 = scmp.ne.s32.totalorder %s237_s11, %s2442_s12  ;;  %p2450_p5 = scmp.lt.s32.totalorder %s237_s11, %s237_s11 }
  0x26   : > { %p2451_p4 = scmp.lt.s32.totalorder %s2449_s15, %s2442_s12 }
  0x27   : > { %p2445_p0 = pnand %p2443_p13, %p2839_p8 }
  0x28   : > { %p2452_p3 = por %p2451_p4, %p2450_p5 }
  0x29   : > { %p2446_p2 = pneg %p2445_p0 }
  0x2b   : > { %p2453_p1 = pnand %p2452_p3, %p2446_p2 }
  0x2d   : > { %2456 = shalt.err (!%p2453_p1)
}
  0x2e   : > { %2291 = dma.hbm_to_vmem [thread:$0]  (!%p2823_p6), %s3291_s1, 16, %s237_s11, [#allocation10]  }
  0x2f   : > { %s3293_s3 = sld [smem:[#allocation25_spill]] }
  0x35   : > { %s2457_s21 = scalar_lea.hbm %s3293_s3, 1024 }
  0x36   : > { %p2458_p7 = scmp.ne.s32.totalorder %s3293_s3, %s2457_s21  ;;  %p2464_p1 = scmp.lt.u32.totalorder %s2457_s21, %s3293_s3 }
  0x38   : > { %p2460_p9 = pnand %p2458_p7, %p2839_p8 }
  0x3a   : > { %p2461_p4 = pneg %p2460_p9 }
  0x3c   : > { %p2466_p3 = pnand %p2464_p1, %p2461_p4 }
  0x3e   : > { %2469 = shalt.err (!%p2466_p3)
}
  0x3f   : > { %s2470_s11 = scalar_lea.vmem %s2827_s13, 1024  ;;  %p2478_p13 = scmp.lt.s32.totalorder %s2827_s13, %s2827_s13 }
  0x40   : > { %p2471_p10 = scmp.ne.s32.totalorder %s2827_s13, %s2470_s11  ;;  %p2479_p0 = scmp.lt.s32.totalorder %s2470_s11, %s2470_s11 }
  0x42   : > { %p2473_p11 = pnand %p2471_p10, %p2839_p8  ;;  %p2480_p2 = por %p2479_p0, %p2478_p13 }
  0x44   : > { %p2474_p12 = pneg %p2473_p11 }
  0x46   : > { %p2481_p5 = pnand %p2480_p2, %p2474_p12 }
  0x48   : > { %2484 = shalt.err (!%p2481_p5)
}
  0x49   : > { %s2726_s17 = smov 64   ;;  %s2727_s18 = smov 4  }
  0x4a   : > { %2297 = dma.hbm_to_vmem [thread:$0]  (!%p2823_p6), %s3293_s3, 1024, %s2827_s13, [#allocation13], %s2726_s17, %s2726_s17, %s2727_s18  }
  0x4b   : > { %s2485_s10 = scalar_lea.hbm %s3278_s5, 1024 }
  0x4c   : > { %p2486_p7 = scmp.ne.s32.totalorder %s3278_s5, %s2485_s10  ;;  %p2492_p1 = scmp.lt.u32.totalorder %s2485_s10, %s3278_s5 }
  0x4e   : > { %p2488_p9 = pnand %p2486_p7, %p2839_p8 }
  0x50   : > { %p2489_p4 = pneg %p2488_p9 }
  0x52   : > { %p2494_p3 = pnand %p2492_p1, %p2489_p4 }
  0x54   : > { %2497 = shalt.err (!%p2494_p3)
}
  0x55   : > { %s2498_s19 = scalar_lea.vmem %s284_s16, 1024  ;;  %p2506_p13 = scmp.lt.s32.totalorder %s284_s16, %s284_s16 }
  0x56   : > { %p2499_p10 = scmp.ne.s32.totalorder %s284_s16, %s2498_s19  ;;  %p2507_p0 = scmp.lt.s32.totalorder %s2498_s19, %s2498_s19 }
  0x58   : > { %p2501_p11 = pnand %p2499_p10, %p2839_p8  ;;  %p2508_p2 = por %p2507_p0, %p2506_p13 }
  0x5a   : > { %p2502_p12 = pneg %p2501_p11 }
  0x5c   : > { %p2509_p5 = pnand %p2508_p2, %p2502_p12 }
  0x5e   : > { %2512 = shalt.err (!%p2509_p5)
}
  0x5f   : > { %2303 = dma.hbm_to_vmem [thread:$0]  (!%p2823_p6), %s3278_s5, 1024, %s284_s16, [#allocation16], %s2726_s17, %s2726_s17, %s2727_s18  }
  0x60   : > { %s2728_s20 = smov [#allocation11]   ;;  %s2729_s23 = smov [#allocation14]  }
  0x61   : > { %s247_s21 = sshll.u32 %s2728_s20, 4  ;;  %s270_s10 = sshll.u32 %s2729_s23, 4  ;;  %s248_s21 = int_to_ptr.vmem [resolvable:$true] %s247_s21  ;;  %s271_s10 = int_to_ptr.vmem [resolvable:$true] %s270_s10 }
  0x62   : > { %s2513_s11 = scalar_lea.hbm %s3275_s2, 16 }
  0x63   : > { %p2514_p7 = scmp.ne.s32.totalorder %s3275_s2, %s2513_s11  ;;  %p2520_p1 = scmp.lt.u32.totalorder %s2513_s11, %s3275_s2 }
  0x65   : > { %p2516_p9 = pnand %p2514_p7, %p2839_p8 }
  0x67   : > { %p2517_p4 = pneg %p2516_p9 }
  0x69   : > { %p2522_p3 = pnand %p2520_p1, %p2517_p4 }
  0x6b   : > { %2525 = shalt.err (!%p2522_p3)
}
  0x6c   : > { %s2526_s16 = scalar_lea.vmem %s248_s21, 16  ;;  %s2533_s13 = scalar_lea.vmem %s248_s21, 32 }
  0x6d   : > { %p2527_p10 = scmp.ne.s32.totalorder %s248_s21, %s2526_s16  ;;  %p2534_p13 = scmp.lt.s32.totalorder %s248_s21, %s248_s21 }
  0x6e   : > { %p2535_p0 = scmp.lt.s32.totalorder %s2533_s13, %s2526_s16 }
  0x6f   : > { %p2529_p11 = pnand %p2527_p10, %p2839_p8 }
  0x70   : > { %p2536_p2 = por %p2535_p0, %p2534_p13 }
  0x71   : > { %p2530_p12 = pneg %p2529_p11 }
  0x73   : > { %p2537_p5 = pnand %p2536_p2, %p2530_p12 }
  0x75   : > { %2540 = shalt.err (!%p2537_p5)
}
  0x76   : > { %2294 = dma.hbm_to_vmem [thread:$0]  (!%p2823_p6), %s3275_s2, 16, %s248_s21, [#allocation10]  }
  0x77   : > { %s2541_s12 = scalar_lea.hbm %s3277_s4, 1024 }
  0x78   : > { %p2542_p7 = scmp.ne.s32.totalorder %s3277_s4, %s2541_s12  ;;  %p2548_p1 = scmp.lt.u32.totalorder %s2541_s12, %s3277_s4 }
  0x7a   : > { %p2544_p9 = pnand %p2542_p7, %p2839_p8 }
  0x7c   : > { %p2545_p4 = pneg %p2544_p9 }
  0x7e   : > { %p2550_p3 = pnand %p2548_p1, %p2545_p4 }
  0x80   : > { %2553 = shalt.err (!%p2550_p3)
}
  0x81   : > { %s2554_s16 = scalar_lea.vmem %s271_s10, 1024  ;;  %p2562_p13 = scmp.lt.s32.totalorder %s271_s10, %s271_s10 }
  0x82   : > { %p2555_p10 = scmp.ne.s32.totalorder %s271_s10, %s2554_s16  ;;  %p2563_p0 = scmp.lt.s32.totalorder %s2554_s16, %s2554_s16 }
  0x84   : > { %p2557_p11 = pnand %p2555_p10, %p2839_p8  ;;  %p2564_p2 = por %p2563_p0, %p2562_p13 }
  0x86   : > { %p2558_p12 = pneg %p2557_p11 }
  0x88   : > { %p2565_p5 = pnand %p2564_p2, %p2558_p12 }
  0x8a   : > { %2568 = shalt.err (!%p2565_p5)
}
  0x8b   : > { %2300 = dma.hbm_to_vmem [thread:$0]  (!%p2823_p6), %s3277_s4, 1024, %s271_s10, [#allocation13], %s2726_s17, %s2726_s17, %s2727_s18  }
  0x8c   : > { %s2730_s1 = smov [#allocation17]   ;;  %s2569_s12 = scalar_lea.hbm %s3279_s6, 256 }
  0x8d   : > { %s296_s20 = sshll.u32 %s2730_s1, 4  ;;  %p2570_p7 = scmp.ne.s32.totalorder %s3279_s6, %s2569_s12  ;;  %s297_s20 = int_to_ptr.vmem [resolvable:$true] %s296_s20 }
  0x8e   : > { %p2576_p1 = scmp.lt.u32.totalorder %s2569_s12, %s3279_s6 }
  0x8f   : > { %p2572_p9 = pnand %p2570_p7, %p2839_p8 }
  0x91   : > { %p2573_p4 = pneg %p2572_p9 }
  0x93   : > { %p2578_p3 = pnand %p2576_p1, %p2573_p4 }
  0x95   : > { %2581 = shalt.err (!%p2578_p3)
}
  0x96   : > { %s2582_s10 = scalar_lea.vmem %s297_s20, 256  ;;  %p2590_p13 = scmp.lt.s32.totalorder %s297_s20, %s297_s20 }
  0x97   : > { %p2583_p10 = scmp.ne.s32.totalorder %s297_s20, %s2582_s10  ;;  %p2591_p0 = scmp.lt.s32.totalorder %s2582_s10, %s2582_s10 }
  0x99   : > { %p2585_p11 = pnand %p2583_p10, %p2839_p8  ;;  %p2592_p2 = por %p2591_p0, %p2590_p13 }
  0x9b   : > { %p2586_p12 = pneg %p2585_p11 }
  0x9d   : > { %p2593_p5 = pnand %p2592_p2, %p2586_p12 }
  0x9f   : > { %2596 = shalt.err (!%p2593_p5)
}
  0xa0   : > { %2306 = dma.hbm_to_vmem [thread:$0]  (!%p2823_p6), %s3279_s6, 256, %s297_s20, [#allocation16], %s2726_s17, %s2726_s17, %s2727_s18  }
  0xa1   : > { %s1946_s14 = sadd.s32 4294967294, %s2721_s29   ;;  %s38_s22 = sadd.s32 1, %s2717_s28 }
  0xa2   : > { %p40_p8 = scmp.ge.s32.totalorder %s38_s22, 2  ;;  %s45_s13 = sadd.s32 1, %s2709_s26 }
  0xa3   : > { %p52_p7 = scmp.ne.s32.totalorder %s2709_s26, %s2705_s25  ;;  %p53_p9 = scmp.eq.s32.totalorder %s2721_s29, 0 }
  0xa4   : > { %s3312_s22 = smov (%p40_p8, %s38_s22), 0  ;;  %p58_p1 = scmp.ne.s32.totalorder %s2705_s25, %s2701_s24 }
  0xa5   : > { %p2971_p4 = por %p53_p9, %p52_p7  ;;  %s42_s17 = ssub.s32 %s2717_s28, %s3312_s22 }
  0xa6   : > { %s3295_s18 = sadd.s32 4294967295, %s2721_s29   ;;  %p43_p3 = scmp.eq.s32.totalorder %s42_s17, 0 }
  0xa7   : > { %p210_p6 = scmp.eq.s32.totalorder %s3295_s18, 1  ;;  %p3296_p10 = scmp.ne.s32.totalorder %s3288_s8, 0 }
  0xa8   : > { %p216_p13 = scmp.eq.s32.totalorder %s1946_s14, 1  ;;  %p2321_p2 = scmp.lt.s32.totalorder %s2721_s29, 2 }
  0xa9   : > { %p2983_p11 = por %p3296_p10, %p58_p1  ;;  %p2987_p12 = por %p210_p6, %p52_p7 }
  0xaa   : > { %s2992_s23 = scalar_select %p43_p3, %s2709_s26, %s45_s13  }
  0xab   : > { %s3298_s3 = scalar_select %p2987_p12, 1, 0 }
  0xac   : > { %p2994_p0 = por %p216_p13, %p58_p1  ;;  %s310_s15 = sand.u32 1, %s2709_s26  }
  0xad   : > { %s1956_s11 = sshll.u32 %s2717_s28, 7  ;;  %s1955_s19 = sshll.u32 %s310_s15, 3 }
  0xae   : > { %s3299_s12 = scalar_select %p2994_p0, 1, 0 }
  0xaf   : > { %s3004_s16 = scalar_lea.hbm %s3273_s0, %s1956_s11  ;;  %s314_s21 = scalar_lea.vmem [#allocation6], %s1955_s19 }
  0xb0   : > { %s321_s14 = sshll.u32 %s314_s21, 4  ;;  %p3008_p5 = pnand %p2321_p2, %p2971_p4  ;;  %s3012_s14 = int_to_ptr.vmem [resolvable:$true] %s321_s14 }
  0xb1   : > { %s311_s17 = scalar_lea.sflag [#allocation7], %s310_s15  ;;  %s2597_s18 = scalar_lea.hbm %s3004_s16, 128 }
  0xb2   : > { %p2598_p8 = scmp.ne.s32.totalorder %s3004_s16, %s2597_s18  ;;  %p2599_p7 = pneg %p3008_p5 }
  0xb3   : > { %s2602_s1 = scalar_lea.hbm %s3273_s0, 256  ;;  %p2603_p4 = scmp.lt.u32.totalorder %s3004_s16, %s3273_s0 }
  0xb4   : > { %p2600_p9 = pnand %p2599_p7, %p2598_p8  ;;  %p2604_p6 = scmp.lt.u32.totalorder %s2602_s1, %s2597_s18 }
  0xb5   : > { %p2606_p10 = scmp.lt.u32.totalorder %s2597_s18, %s3004_s16 }
  0xb6   : > { %p2601_p1 = pneg %p2600_p9  ;;  %p2605_p3 = por %p2604_p6, %p2603_p4 }
  0xb8   : > { %p2607_p13 = por %p2606_p10, %p2605_p3 }
  0xba   : > { %p2608_p2 = pnand %p2607_p13, %p2601_p1 }
  0xbc   : > { %2611 = shalt.err (!%p2608_p2)
}
  0xbd   : > { %s2612_s15 = scalar_lea.vmem %s3012_s14, 128  ;;  %s2731_s21 = smov [#allocation6]  }
  0xbe   : > { %p2613_p8 = scmp.ne.s32.totalorder %s3012_s14, %s2612_s15  ;;  %s2617_s11 = sshll.u32 %s2731_s21, 4  ;;  %s2618_s11 = int_to_ptr.vmem [resolvable:$false] %s2617_s11 }
  0xbf   : > { %s2619_s19 = scalar_lea.vmem %s2618_s11, 256  ;;  %p2620_p12 = scmp.lt.s32.totalorder %s3012_s14, %s2618_s11 }
  0xc0   : > { %p2615_p9 = pnand %p2613_p8, %p2599_p7  ;;  %p2621_p4 = scmp.lt.s32.totalorder %s2619_s19, %s2612_s15 }
  0xc2   : > { %p2616_p0 = pneg %p2615_p9  ;;  %p2622_p6 = por %p2621_p4, %p2620_p12 }
  0xc4   : > { %p2623_p3 = pnand %p2622_p6, %p2616_p0 }
  0xc6   : > { %2626 = shalt.err (!%p2623_p3)
}
  0xc7   : > { %2310 = dma.hbm_to_vmem [thread:$0]  (!%p3008_p5), %s3004_s16, 128, %s3012_s14, %s311_s17  }
  0xc8   : > { %p3301_p1 = scmp.ne.s32.totalorder %s3289_s9, 0 }
  0xc9   : > { %s3042_s18 = sand.u32 (!%p3301_p1), 1, %s2705_s25  }
  0xca   : > { %330 = sbr.rel (%p3301_p1) target bundleno = 1810 (0x712), region = 48  ;;  %s1958_s1 = sshll.u32 (!%p3301_p1), %s3042_s18, 3 }
  0xcb   : > { %s333_s30 = scalar_lea.sflag (!%p3301_p1), [#allocation7], %s3042_s18  ;;  %s336_s10 = scalar_lea.vmem (!%p3301_p1), [#allocation6], %s1958_s1 }
  0xd1   : > { %2680 = dma.done.wait (%p2983_p11), %s333_s30, 128  }
  0xd2   : > { %2682 = vsyncadd (%p2983_p11), %s333_s30, 4294967168  ;;  %p3302_p12 = scmp.ne.s32.totalorder %s3288_s8, 0 }
  0xd4   : > { %2684 = dma.done.wait (%p3302_p12), [#allocation10], 32  }
  0xd5   : > { %2686 = vsyncadd (%p3302_p12), [#allocation10], 4294967264 }
  0xd6   : > { %2688 = dma.done.wait (%p3302_p12), [#allocation13], 2048  }
  0xd7   : > { %2690 = vsyncadd (%p3302_p12), [#allocation13], 4294965248 }
  0xd8   : > { %2692 = dma.done.wait (%p3302_p12), [#allocation16], 1280  }
  0xd9   : > { %2694 = vsyncadd (%p3302_p12), [#allocation16], 4294966016  ;;  %vm397_vm0 = vcmask 261120   ;;  %v396_v0 = vld [vmem:[%s336_s10] sm:$0xff]  ;;  %v2387_v7 = vld [vmem:[#allocation14] sm:$0xff]   ;;  %v2732_v9 = vmov 0.0  }
  0xda   : > { %v398_v1 = vsel %vm397_vm0, %v396_v0, 0.0  ;;  %v2388_v8 = vld [vmem:[#allocation14 + $0x20] sm:$0xff]   ;;  %2080 = vmatprep.subr.bf16.mxu1 %v2732_v9  ;;  %2112 = vmatprep.subr.bf16.mxu0 %v2732_v9  ;;  %v2389_v10 = vld [vmem:[#allocation14 + $0x8] sm:$0xff]   ;;  %vm2733_vm1 = vmmov 0   ;;  %v1966_v16 = vld [vmem:[#allocation9] ss:$0 sm:$0xff] }
  0xdb   : > { %399 = vadd.xlane.f32.xlu0 %v398_v1  ;;  %2081 = vmatpush3.bf16.msra.mxu1 %v2387_v7  ;;  %v2390_v11 = vld [vmem:[#allocation14 + $0x28] sm:$0xff]   ;;  %v1967_v18 = vld [vmem:[#allocation11] ss:$0 sm:$0xff]  ;;  %v2391_v21 = vld [vmem:[#allocation15] sm:$0xff]   ;;  %vm429_vm2 = vcmask 257024   ;;  %vm491_vm3 = vcmask 60416  }
  0xdc   : > { %2113 = vmatpush3.bf16.msra.mxu0 %v2388_v8  ;;  %2082 = vmatprep.subr.bf16.mxu1 %v2732_v9  ;;  %v2392_v22 = vld [vmem:[#allocation14 + $0x30] sm:$0xff]   ;;  %v2393_v24 = vld [vmem:[#allocation15 + $0x8] sm:$0xff]   ;;  %v2394_v25 = vld [vmem:[#allocation14 + $0x38] sm:$0xff]   ;;  %vm1176_vm4 = vcmask 64512   ;;  %vm1412_vm5 = vcmask 1043456   ;;  %s2017_s8 = sshll.u32 %s2713_s27, 7 }
  0xdd   : > { %2114 = vmatprep.subr.bf16.mxu0 %v2732_v9  ;;  %2084 = vmatprep.mubr.msk.bf16.mxu1 %vm2733_vm1, %v2732_v9  ;;  %v2395_v26 = vld [vmem:[#allocation14 + $0x10] sm:$0xff]   ;;  %v2396_v27 = vld [vmem:[#allocation12] sm:$0xff]   ;;  %v2397_v28 = vld [vmem:[#allocation14 + $0x18] sm:$0xff]   ;;  %s390_s9 = scalar_lea.vmem [#allocation18], %s1958_s1  ;;  %s3223_s13 = scalar_lea.hbm %s3280_s7, %s2017_s8 }
  0xde   : > { %2116 = vmatprep.mubr.msk.bf16.mxu0 %vm2733_vm1, %v2732_v9  ;;  %v2398_v29 = vld [vmem:[#allocation12 + $0x8] sm:$0xff]   ;;  %v2399_v30 = vld [vmem:[#allocation15 + $0x10] sm:$0xff]   ;;  %v2400_v31 = vld [vmem:[#allocation12 + $0x20] sm:$0xff]   ;;  %s1807_s20 = sshll.u32 %s390_s9, 4  ;;  %s1793_s17 = scalar_lea.sflag [#allocation8], %s3042_s18  ;;  %s3225_s20 = int_to_ptr.vmem [resolvable:$true] %s1807_s20 }
  0xdf   : > { %2083 = vmatpush3.bf16.msra.mxu1 %v2389_v10  ;;  %v2401_v33 = vld [vmem:[#allocation15 + $0x18] sm:$0xff]   ;;  %v2402_v34 = vld [vmem:[#allocation12 + $0x28] sm:$0xff]   ;;  %v2403_v35 = vld [vmem:[#allocation15 + $0x20] sm:$0xff]   ;;  %s2627_s27 = scalar_lea.vmem %s3225_s20, 128  ;;  %p3303_p0 = scmp.ne.s32.totalorder %s3298_s3, 0 }
  0xe0   : > { %2115 = vmatpush3.bf16.msra.mxu0 %v2390_v11  ;;  %2088 = vmatprep.subr.bf16.mxu1 %v2732_v9  ;;  %v2404_v36 = vld [vmem:[#allocation15 + $0x28] sm:$0xff]   ;;  %v2405_v37 = vld [vmem:[#allocation15 + $0x30] sm:$0xff]   ;;  %v2406_v38 = vld [vmem:[#allocation15 + $0x38] sm:$0xff]   ;;  %p2628_p11 = scmp.ne.s32.totalorder %s3225_s20, %s2627_s27  ;;  %s2734_s15 = smov [#allocation18]  }
  0xe1   : > { %2128 = vmatprep.subr.bf16.mxu0 %v2732_v9  ;;  %v2407_v39 = vld [vmem:[#allocation12 + $0x10] sm:$0xff]   ;;  %v2408_v40 = vld [vmem:[#allocation12 + $0x18] sm:$0xff]   ;;  %s2631_s21 = sshll.u32 %s2734_s15, 4  ;;  %s2632_s21 = int_to_ptr.vmem [resolvable:$false] %s2631_s21 }
  0xe2   : > { %v2409_v41 = vld [vmem:[#allocation12 + $0x30] sm:$0xff]   ;;  %v2410_v42 = vld [vmem:[#allocation12 + $0x38] sm:$0xff]   ;;  %p2629_p5 = pnand %p2628_p11, %p3303_p0  ;;  %s2633_s11 = scalar_lea.vmem %s2632_s21, 256 }
  0xe3   : > { %p2634_p10 = scmp.lt.s32.totalorder %s3225_s20, %s2632_s21  ;;  %p2635_p13 = scmp.lt.s32.totalorder %s2633_s11, %s2627_s27 }
  0xe4   : > { %p2630_p7 = pneg %p2629_p5 }
  0xe5   : > { %p2636_p2 = por %p2635_p13, %p2634_p10 }
  0xe7   : > { %p2637_p8 = pnand %p2636_p2, %p2630_p7 }
 0x168   : > { %v400_v2 = vpop.xlane.xlu0 %399 }
 0x169   : > { %v402_v3 = vmul.f32 0.03125, %v400_v2 }
 0x16b   : > { %v403_v4 = vsub.f32 %v396_v0, %v402_v3 }
 0x16d   : > { %v404_v5 = vmul.f32 %v403_v4, %v403_v4 }
 0x16f   : > { %v405_v6 = vsel %vm397_vm0, %v404_v5, 0.0 }
 0x170   : > { %406 = vadd.xlane.f32.xlu0 %v405_v6 }
 0x1fd   : > { %v407_v12 = vpop.xlane.xlu0 %406 }
 0x1fe   : > { %v408_v13 = vmul.f32 0.03125, %v407_v12 }
 0x200   : > { %v409_v14 = vadd.f32 1e-05, %v408_v13 }
 0x202   : > { %2411 = vrsqrt.f32 %v409_v14 }
 0x20c   : > { %v2412_v15 = vpop.eup %2411 }
 0x20d   : > { %v411_v17 = vmul.f32 %v2412_v15, %v403_v4 }
 0x20f   : > { %v419_v19 = vmul.f32 %v1966_v16, %v411_v17 }
 0x211   : > { %v427_v20 = vadd.f32 %v1967_v18, %v419_v19 }
 0x213   : > { %v3076_v23 = vpack.c.bf16 %v427_v20, %v427_v20 }
 0x215   : > { %2085 = vmatmul.mubr.msk.bf16.vlgmr.msra.gmra.mrb[0].mxu1 %vm397_vm0, %v3076_v23  ;;  %2117 = vmatmul.mubr.msk.bf16.vlgmr.msra.gmra.mrb[0].mxu0 %vm397_vm0, %v3076_v23  ;;  %430 = vst.msk [vmem:[#allocation2] sm:$0xf] %vm429_vm2, %v3076_v23 }
 0x216   : > { %2089 = vmatpush3.bf16.msra.mxu1 %v2391_v21  ;;  %2129 = vmatpush3.bf16.msra.mxu0 %v2392_v22 }
 0x217   : > { %2090 = vmatprep.subr.bf16.mxu1 %v2732_v9  ;;  %2130 = vmatprep.subr.bf16.mxu0 %v2732_v9 }
 0x218   : > { %2092 = vmatprep.mubr.msk.bf16.mxu1 %vm2733_vm1, %v2732_v9  ;;  %2132 = vmatprep.mubr.msk.bf16.mxu0 %vm2733_vm1, %v2732_v9 }
 0x21a   : > { %2091 = vmatpush3.bf16.msra.mxu1 %v2393_v24  ;;  %2131 = vmatpush3.bf16.msra.mxu0 %v2394_v25 }
 0x21b   : > { %2096 = vmatprep.subr.bf16.mxu1 %v2732_v9  ;;  %2144 = vmatprep.subr.bf16.mxu0 %v2732_v9 }
 0x21c   : > { %v916_v32 = vld [vmem:[#allocation2] sm:$0xf] }
 0x21d   : > { %2093 = vmatmul.mubr.msk.bf16.vlgmr.msra.gmra.mrb[4].mxu1 %vm397_vm0, %v3076_v23  ;;  %2133 = vmatmul.mubr.msk.bf16.vlgmr.msra.gmra.mrb[4].mxu0 %vm397_vm0, %v3076_v23 }
 0x21e   : > { %2097 = vmatpush3.bf16.msra.mxu1 %v2395_v26  ;;  %2145 = vmatpush3.bf16.msra.mxu0 %v2396_v27 }
 0x21f   : > { %2098 = vmatprep.subr.bf16.mxu1 %v2732_v9  ;;  %2146 = vmatprep.subr.bf16.mxu0 %v2732_v9 }
 0x220   : > { %2100 = vmatprep.mubr.msk.bf16.mxu1 %vm2733_vm1, %v2732_v9  ;;  %2148 = vmatprep.mubr.msk.bf16.mxu0 %vm2733_vm1, %v2732_v9 }
 0x222   : > { %2099 = vmatpush3.bf16.msra.mxu1 %v2397_v28  ;;  %2147 = vmatpush3.bf16.msra.mxu0 %v2398_v29 }
 0x223   : > { %2104 = vmatprep.subr.bf16.mxu1 %v2732_v9  ;;  %2160 = vmatprep.subr.bf16.mxu0 %v2732_v9 }
 0x225   : > { %2101 = vmatmul.mubr.msk.bf16.vlgmr.msra.gmra.mrb[8].mxu1 %vm397_vm0, %v3076_v23  ;;  %2149 = vmatmul.mubr.msk.bf16.vlgmr.msra.gmra.mrb[8].mxu0 %vm397_vm0, %v916_v32 }
 0x226   : > { %2105 = vmatpush3.bf16.msra.mxu1 %v2399_v30  ;;  %2161 = vmatpush3.bf16.msra.mxu0 %v2400_v31 }
 0x227   : > { %2106 = vmatprep.subr.bf16.mxu1 %v2732_v9  ;;  %2162 = vmatprep.subr.bf16.mxu0 %v2732_v9 }
 0x228   : > { %2108 = vmatprep.mubr.msk.bf16.mxu1 %vm2733_vm1, %v2732_v9  ;;  %2164 = vmatprep.mubr.msk.bf16.mxu0 %vm2733_vm1, %v2732_v9 }
 0x22a   : > { %2107 = vmatpush3.bf16.msra.mxu1 %v2401_v33  ;;  %2163 = vmatpush3.bf16.msra.mxu0 %v2402_v34 }
 0x22b   : > { %2120 = vmatprep.subr.bf16.mxu1 %v2732_v9  ;;  %2176 = vmatprep.subr.bf16.mxu0 %v2732_v9 }
 0x22d   : > { %2109 = vmatmul.mubr.msk.bf16.vlgmr.msra.gmra.mrb[12].mxu1 %vm397_vm0, %v3076_v23  ;;  %2165 = vmatmul.mubr.msk.bf16.vlgmr.msra.gmra.mrb[12].mxu0 %vm397_vm0, %v916_v32 }
 0x22e   : > { %2121 = vmatpush3.bf16.msra.mxu1 %v2403_v35  ;;  %2124 = vmatprep.mubr.msk.bf16.mxu1 %vm2733_vm1, %v2732_v9 }
 0x22f   : > { %2122 = vmatprep.subr.bf16.mxu1 %v2732_v9  ;;  %2178 = vmatprep.mubr.msk.bf16.mxu0 %vm2733_vm1, %v2732_v9 }
 0x232   : > { %2123 = vmatpush3.bf16.msra.mxu1 %v2404_v36 }
 0x233   : > { %2136 = vmatprep.subr.bf16.mxu1 %v2732_v9 }
 0x235   : > { %2125 = vmatmul.mubr.msk.bf16.vlgmr.msra.gmra.mrb[16].mxu1 %vm397_vm0, %v3076_v23 }
 0x236   : > { %2137 = vmatpush3.bf16.msra.mxu1 %v2405_v37  ;;  %2140 = vmatprep.mubr.msk.bf16.mxu1 %vm2733_vm1, %v2732_v9 }
 0x237   : > { %2138 = vmatprep.subr.bf16.mxu1 %v2732_v9 }
 0x23a   : > { %2139 = vmatpush3.bf16.msra.mxu1 %v2406_v38 }
 0x23b   : > { %2152 = vmatprep.subr.bf16.mxu1 %v2732_v9 }
 0x23d   : > { %2141 = vmatmul.mubr.msk.bf16.vlgmr.msra.gmra.mrb[20].mxu1 %vm397_vm0, %v3076_v23 }
 0x23e   : > { %2153 = vmatpush3.bf16.msra.mxu1 %v2407_v39  ;;  %2156 = vmatprep.mubr.msk.bf16.mxu1 %vm2733_vm1, %v2732_v9 }
 0x23f   : > { %2154 = vmatprep.subr.bf16.mxu1 %v2732_v9 }
 0x242   : > { %2155 = vmatpush3.bf16.msra.mxu1 %v2408_v40 }
 0x243   : > { %2168 = vmatprep.subr.bf16.mxu1 %v2732_v9 }
 0x245   : > { %2157 = vmatmul.mubr.msk.bf16.vlgmr.msra.gmra.mrb[24].mxu1 %vm397_vm0, %v916_v32 }
 0x246   : > { %2169 = vmatpush3.bf16.msra.mxu1 %v2409_v41  ;;  %2172 = vmatprep.mubr.msk.bf16.mxu1 %vm2733_vm1, %v2732_v9 }
 0x247   : > { %2170 = vmatprep.subr.bf16.mxu1 %v2732_v9 }
 0x24a   : > { %2171 = vmatpush3.bf16.msra.mxu1 %v2410_v42 }
 0x24b   : > { %2182 = vmatprep.subr.bf16.mxu1 %v2732_v9 }
 0x24d   : > { %2173 = vmatmul.mubr.msk.bf16.vlgmr.msra.gmra.mrb[28].mxu1 %vm397_vm0, %v916_v32 }
 0x24e   : > { %2184 = vmatprep.mubr.msk.bf16.mxu1 %vm2733_vm1, %v2732_v9 }
 0x2e8   : > { %v484_v43 = vpop.f32.mrb[0].mxu1  ;;  %v722_v44 = vpop.f32.mrb[0].mxu0 }
 0x2e9   : > { %v490_v45 = vpack.c.bf16 %v484_v43, %v484_v43  ;;  %v728_v46 = vpack.c.bf16 %v722_v44, %v722_v44  ;;  %v2086_v47 = vpop.f32.mrb[1].mxu1  ;;  %v2118_v48 = vpop.f32.mrb[1].mxu0 }
 0x2ea   : > { %v487_v49 = vpop.f32.mrb[2].mxu1  ;;  %v725_v50 = vpop.f32.mrb[2].mxu0 }
 0x2eb   : > { %492 = vst.msk [vmem:[#allocation4] sm:$0xf] %vm491_vm3, %v490_v45  ;;  %730 = vst.msk [vmem:[#allocation4 + $0x8] sm:$0xf] %vm491_vm3, %v728_v46  ;;  %v2087_v51 = vpop.f32.mrb[3].mxu1  ;;  %v2119_v52 = vpop.f32.mrb[3].mxu0 }
 0x2f0   : > { %v543_v53 = vpop.f32.mrb[4].mxu1  ;;  %v842_v54 = vpop.f32.mrb[4].mxu0 }
 0x2f1   : > { %v549_v55 = vpack.c.bf16 %v543_v53, %v543_v53  ;;  %v848_v56 = vpack.c.bf16 %v842_v54, %v842_v54  ;;  %v2094_v57 = vpop.f32.mrb[5].mxu1  ;;  %v2134_v58 = vpop.f32.mrb[5].mxu0 }
 0x2f2   : > { %v546_v59 = vpop.f32.mrb[6].mxu1  ;;  %v845_v60 = vpop.f32.mrb[6].mxu0  ;;  %v1168_v61 = vld [vmem:[#allocation4] sm:$0xf]  ;;  %v1170_v22 = vld [vmem:[#allocation4 + $0x8] sm:$0xf] }
 0x2f3   : > { %550 = vst.msk [vmem:[#allocation5] sm:$0xf] %vm491_vm3, %v549_v55  ;;  %850 = vst.msk [vmem:[#allocation4 + $0xc] sm:$0xf] %vm491_vm3, %v848_v56  ;;  %v2095_v62 = vpop.f32.mrb[7].mxu1  ;;  %v2135_v63 = vpop.f32.mrb[7].mxu0 }
 0x2f4   : > { %v1181_v0 = vsel %vm1176_vm4, %v1168_v61, 0  ;;  %v1273_v28 = vsel %vm1176_vm4, %v1170_v22, 0 }
 0x2f5   : > { %2177 = vmatpush3.bf16.xpose.msra.mxu0 %v1181_v0 }
 0x2f6   : > { %2188 = vmatprep.subr.bf16.mxu0 %v2732_v9 }
 0x2f8   : > { %v602_v1 = vpop.f32.mrb[8].mxu1  ;;  %v971_v2 = vpop.f32.mrb[8].mxu0 }
 0x2f9   : > { %v608_v3 = vpack.c.bf16 %v602_v1, %v602_v1  ;;  %v977_v4 = vmul.f32 0.35355338, %v971_v2  ;;  %v2102_v5 = vpop.f32.mrb[9].mxu1  ;;  %v2150_v6 = vpop.f32.mrb[9].mxu0 }
 0x2fa   : > { %v605_v7 = vpop.f32.mrb[10].mxu1  ;;  %v974_v8 = vpop.f32.mrb[10].mxu0  ;;  %v1172_v33 = vld [vmem:[#allocation5] sm:$0xf]  ;;  %v1171_v52 = vld [vmem:[#allocation4 + $0xc] sm:$0xf] }
 0x2fb   : > { %610 = vst.msk [vmem:[#allocation4 + $0x4] sm:$0xf] %vm491_vm3, %v608_v3  ;;  %v978_v10 = vpack.c.bf16 %v977_v4, %v977_v4  ;;  %v2103_v11 = vpop.f32.mrb[11].mxu1  ;;  %v2151_v12 = vpop.f32.mrb[11].mxu0  ;;  %v1414_v36 = vsel %vm1412_vm5, %v1172_v33, 0  ;;  %v1319_v56 = vsel %vm1176_vm4, %v1171_v52, 0 }
 0x2fd   : > { %980 = vst.msk [vmem:[#allocation3] sm:$0xf] %vm491_vm3, %v978_v10 }
 0x300   : > { %v662_v13 = vpop.f32.mrb[12].mxu1  ;;  %v1093_v14 = vpop.f32.mrb[12].mxu0 }
 0x301   : > { %v668_v15 = vpack.c.bf16 %v662_v13, %v662_v13  ;;  %v1099_v16 = vmul.f32 0.35355338, %v1093_v14  ;;  %v2110_v17 = vpop.f32.mrb[13].mxu1  ;;  %v2166_v18 = vpop.f32.mrb[13].mxu0 }
 0x302   : > { %v665_v19 = vpop.f32.mrb[14].mxu1  ;;  %v1096_v20 = vpop.f32.mrb[14].mxu0  ;;  %v1169_v21 = vld [vmem:[#allocation4 + $0x4] sm:$0xf] }
 0x303   : > { %670 = vst.msk [vmem:[#allocation5 + $0x4] sm:$0xf] %vm491_vm3, %v668_v15  ;;  %v1100_v23 = vpack.c.bf16 %v1099_v16, %v1099_v16  ;;  %v2111_v24 = vpop.f32.mrb[15].mxu1  ;;  %v2167_v25 = vpop.f32.mrb[15].mxu0  ;;  %v1227_v26 = vsel %vm1176_vm4, %v1169_v21, 0 }
 0x304   : > { %2183 = vmatpush3.bf16.xpose.msra.mxu1 %v1227_v26  ;;  %v1164_v27 = vld [vmem:[#allocation3] sm:$0xf] }
 0x305   : > { %1102 = vst.msk [vmem:[#allocation3 + $0x8] sm:$0xf] %vm491_vm3, %v1100_v23  ;;  %2179 = vmatmul.mubr.msk.bf16.vlgmr.msra.gmra.mrb[16].mxu0 %vm1176_vm4, %v1164_v27  ;;  %2194 = vmatprep.subr.bf16.mxu1 %v2732_v9 }
 0x306   : > { %2189 = vmatpush3.bf16.xpose.msra.mxu0 %v1273_v28  ;;  %2190 = vmatprep.mubr.msk.bf16.mxu0 %vm2733_vm1, %v2732_v9 }
 0x307   : > { %2200 = vmatprep.subr.bf16.mxu0 %v2732_v9 }
 0x308   : > { %v782_v29 = vpop.f32.mrb[16].mxu1 }
 0x309   : > { %v788_v30 = vpack.c.bf16 %v782_v29, %v782_v29  ;;  %v2126_v31 = vpop.f32.mrb[17].mxu1 }
 0x30a   : > { %v785_v32 = vpop.f32.mrb[18].mxu1  ;;  %v1173_v57 = vld [vmem:[#allocation5 + $0x4] sm:$0xf] }
 0x30b   : > { %790 = vst.msk [vmem:[#allocation5 + $0x8] sm:$0xf] %vm491_vm3, %v788_v30  ;;  %v2127_v34 = vpop.f32.mrb[19].mxu1  ;;  %v1460_v59 = vsel %vm1412_vm5, %v1173_v57, 0 }
 0x30c   : > { %v1166_v35 = vld [vmem:[#allocation3 + $0x8] sm:$0xf] }
 0x30d   : > { %2191 = vmatmul.mubr.msk.bf16.vlgmr.msra.gmra.mrb[20].mxu0 %vm1176_vm4, %v1166_v35 }
 0x30e   : > { %2201 = vmatpush3.bf16.msra.mxu0 %v1414_v36  ;;  %2202 = vmatprep.mubr.msk.bf16.mxu0 %vm2733_vm1, %v2732_v9 }
 0x30f   : > { %2212 = vmatprep.subr.bf16.mxu0 %v2732_v9 }
 0x310   : > { %v902_v37 = vpop.f32.mrb[20].mxu1 }
 0x311   : > { %v908_v38 = vpack.c.bf16 %v902_v37, %v902_v37  ;;  %v2142_v39 = vpop.f32.mrb[21].mxu1 }
 0x312   : > { %v905_v40 = vpop.f32.mrb[22].mxu1 }
 0x313   : > { %910 = vst.msk [vmem:[#allocation5 + $0xc] sm:$0xf] %vm491_vm3, %v908_v38  ;;  %v2143_v41 = vpop.f32.mrb[23].mxu1 }
 0x318   : > { %v1032_v42 = vpop.f32.mrb[24].mxu1 }
 0x319   : > { %v1038_v43 = vmul.f32 0.35355338, %v1032_v42  ;;  %v2158_v44 = vpop.f32.mrb[25].mxu1 }
 0x31a   : > { %v1035_v45 = vpop.f32.mrb[26].mxu1 }
 0x31b   : > { %v1039_v46 = vpack.c.bf16 %v1038_v43, %v1038_v43  ;;  %v2159_v47 = vpop.f32.mrb[27].mxu1  ;;  %v1175_v43 = vld [vmem:[#allocation5 + $0xc] sm:$0xf] }
 0x31c   : > { %v1552_v47 = vsel %vm1412_vm5, %v1175_v43, 0 }
 0x31d   : > { %1041 = vst.msk [vmem:[#allocation3 + $0x4] sm:$0xf] %vm491_vm3, %v1039_v46 }
 0x320   : > { %v1154_v48 = vpop.f32.mrb[28].mxu1 }
 0x321   : > { %v1160_v49 = vmul.f32 0.35355338, %v1154_v48  ;;  %v2174_v50 = vpop.f32.mrb[29].mxu1  ;;  %v1174_v48 = vld [vmem:[#allocation5 + $0x8] sm:$0xf] }
 0x322   : > { %v1157_v51 = vpop.f32.mrb[30].mxu1 }
 0x323   : > { %v1161_v53 = vpack.c.bf16 %v1160_v49, %v1160_v49  ;;  %v2175_v54 = vpop.f32.mrb[31].mxu1 }
 0x324   : > { %v1165_v55 = vld [vmem:[#allocation3 + $0x4] sm:$0xf] }
 0x325   : > { %1163 = vst.msk [vmem:[#allocation3 + $0xc] sm:$0xf] %vm491_vm3, %v1161_v53  ;;  %2185 = vmatmul.mubr.msk.bf16.vlgmr.msra.gmra.mrb[32].mxu1 %vm1176_vm4, %v1165_v55  ;;  %v1506_v53 = vsel %vm1412_vm5, %v1174_v48, 0 }
 0x326   : > { %2195 = vmatpush3.bf16.xpose.msra.mxu1 %v1319_v56  ;;  %2196 = vmatprep.mubr.msk.bf16.mxu1 %vm2733_vm1, %v2732_v9  ;;  %v1600_v56 = vld [vmem:[#allocation17 + $0x4] sm:$0xf] }
 0x327   : > { %2206 = vmatprep.subr.bf16.mxu1 %v2732_v9 }
 0x32c   : > { %v1167_v58 = vld [vmem:[#allocation3 + $0xc] sm:$0xf] }
 0x32d   : > { %2197 = vmatmul.mubr.msk.bf16.vlgmr.msra.gmra.mrb[36].mxu1 %vm1176_vm4, %v1167_v58  ;;  %v1605_v58 = vsel %vm1412_vm5, %v1600_v56, 0 }
 0x32e   : > { %2207 = vmatpush3.bf16.msra.mxu1 %v1460_v59  ;;  %2208 = vmatprep.mubr.msk.bf16.mxu1 %vm2733_vm1, %v2732_v9  ;;  %v1598_v59 = vld [vmem:[#allocation17] sm:$0xf] }
 0x32f   : > { %2218 = vmatprep.subr.bf16.mxu1 %v2732_v9 }
 0x3d8   : > { %v1217_v60 = vpop.f32.mrb[16].mxu0 }
 0x3d9   : > { %v2180_v61 = vpop.f32.mrb[17].mxu0  ;;  %v1361_v11 = vsel %vm1176_vm4, %v1217_v60, -inf }
 0x3da   : > { %v1220_v62 = vpop.f32.mrb[18].mxu0 }
 0x3db   : > { %v2181_v63 = vpop.f32.mrb[19].mxu0 }
 0x3dc   : > { %v1651_v63 = vsel %vm1412_vm5, %v1598_v59, 0 }
 0x3e0   : > { %v1309_v0 = vpop.f32.mrb[20].mxu0 }
 0x3e1   : > { %v2192_v1 = vpop.f32.mrb[21].mxu0  ;;  %v1367_v2 = vsel %vm1176_vm4, %v1309_v0, -inf }
 0x3e2   : > { %1368 = vmax.xlane.f32.xlu0 %v1367_v2  ;;  %v1312_v3 = vpop.f32.mrb[22].mxu0 }
 0x3e3   : > { %v2193_v4 = vpop.f32.mrb[23].mxu0 }
 0x3f8   : > { %v1263_v5 = vpop.f32.mrb[32].mxu1 }
 0x3f9   : > { %v2186_v6 = vpop.f32.mrb[33].mxu1  ;;  %v1364_v7 = vsel %vm1176_vm4, %v1263_v5, -inf }
 0x3fa   : > { %1365 = vmax.xlane.f32.xlu1 %v1364_v7  ;;  %v1266_v8 = vpop.f32.mrb[34].mxu1 }
 0x3fb   : > { %v2187_v10 = vpop.f32.mrb[35].mxu1 }
 0x3fc   : > { %v1694_v10 = vld [vmem:[#allocation17 + $0x8] sm:$0xf] }
 0x3fe   : > { %1362 = vmax.xlane.f32.xlu1 %v1361_v11 }
 0x400   : > { %v1355_v12 = vpop.f32.mrb[36].mxu1 }
 0x401   : > { %v2198_v13 = vpop.f32.mrb[37].mxu1  ;;  %v1370_v14 = vsel %vm1176_vm4, %v1355_v12, -inf }
 0x402   : > { %v1358_v15 = vpop.f32.mrb[38].mxu1  ;;  %1371 = vmax.xlane.f32.xlu1 %v1370_v14 }
 0x403   : > { %v2199_v16 = vpop.f32.mrb[39].mxu1  ;;  %v1699_v15 = vsel %vm1412_vm5, %v1694_v10, 0 }
 0x46f   : > { %v1369_v17 = vpop.xlane.xlu0 %1368 }
 0x470   : > { %v1375_v18 = vsub.f32 %v1309_v0, %v1369_v17 }
 0x472   : > { %v1381_v21 = vmul.f32 1.442695, %v1375_v18  ;;  %v1743_v18 = vld [vmem:[#allocation17 + $0xc] sm:$0xf] }
 0x487   : > { %v1366_v19 = vpop.xlane.xlu1 %1365 }
 0x488   : > { %v1374_v20 = vsub.f32 %v1263_v5, %v1366_v19 }
 0x48a   : > { %v1379_v22 = vmul.f32 1.442695, %v1374_v20  ;;  %v1748_v20 = vsel %vm1412_vm5, %v1743_v18, 0 }
 0x48b   : > { %v1363_v23 = vpop.xlane.xlu1 %1362 }
 0x48c   : > { %2413 = vpow2.f32 %v1379_v22  ;;  %v1373_v24 = vsub.f32 %v1217_v60, %v1363_v23 }
 0x48d   : > { %2415 = vpow2.f32 %v1381_v21 }
 0x48e   : > { %v1377_v25 = vmul.f32 1.442695, %v1373_v24 }
 0x48f   : > { %v1372_v26 = vpop.xlane.xlu1 %1371 }
 0x490   : > { %2417 = vpow2.f32 %v1377_v25  ;;  %v1376_v27 = vsub.f32 %v1355_v12, %v1372_v26 }
 0x492   : > { %v1383_v28 = vmul.f32 1.442695, %v1376_v27 }
 0x494   : > { %2419 = vpow2.f32 %v1383_v28 }
 0x496   : > { %v2414_v29 = vpop.eup %2413 }
 0x497   : > { %v1388_v30 = vsel %vm1176_vm4, %v2414_v29, 0.0  ;;  %v2416_v31 = vpop.eup %2415 }
 0x498   : > { %1389 = vadd.xlane.f32.xlu0 %v1388_v30  ;;  %v1391_v34 = vsel %vm1176_vm4, %v2416_v31, 0.0 }
 0x49a   : > { %v2418_v32 = vpop.eup %2417 }
 0x49b   : > { %v1385_v33 = vsel %vm1176_vm4, %v2418_v32, 0.0 }
 0x49c   : > { %1386 = vadd.xlane.f32.xlu1 %v1385_v33  ;;  %1392 = vadd.xlane.f32.xlu0 %v1391_v34 }
 0x49e   : > { %v2420_v35 = vpop.eup %2419 }
 0x49f   : > { %v1394_v36 = vsel %vm1176_vm4, %v2420_v35, 0.0 }
 0x4a0   : > { %1395 = vadd.xlane.f32.xlu1 %v1394_v36 }
 0x525   : > { %v1390_v37 = vpop.xlane.xlu0 %1389 }
 0x526   : > { %2421 = vrcp.f32 %v1390_v37 }
 0x529   : > { %v1387_v38 = vpop.xlane.xlu1 %1386  ;;  %v1393_v39 = vpop.xlane.xlu0 %1392 }
 0x52a   : > { %2423 = vrcp.f32 %v1387_v38 }
 0x52b   : > { %2425 = vrcp.f32 %v1393_v39 }
 0x52d   : > { %v1396_v40 = vpop.xlane.xlu1 %1395 }
 0x52e   : > { %2427 = vrcp.f32 %v1396_v40 }
 0x530   : > { %v2422_v41 = vpop.eup %2421 }
 0x531   : > { %v1402_v42 = vmul.f32 %v2422_v41, %v2414_v29 }
 0x533   : > { %v1406_v44 = vpack.c.bf16 %v1402_v42, %v1402_v42 }
 0x534   : > { %v2424_v45 = vpop.eup %2423 }
 0x535   : > { %v1401_v46 = vmul.f32 %v2424_v45, %v2418_v32  ;;  %2209 = vmatmul.mubr.msk.bf16.vlgmr.msra.gmra.mrb[40].mxu1 %vm1176_vm4, %v1406_v44  ;;  %v2426_v49 = vpop.eup %2425 }
 0x536   : > { %2219 = vmatpush3.bf16.msra.mxu1 %v1552_v47  ;;  %2220 = vmatprep.mubr.msk.bf16.mxu1 %vm2733_vm1, %v2732_v9  ;;  %v1403_v54 = vmul.f32 %v2426_v49, %v2416_v31 }
 0x537   : > { %v1405_v50 = vpack.c.bf16 %v1401_v46, %v1401_v46 }
 0x538   : > { %v2428_v51 = vpop.eup %2427  ;;  %v1407_v57 = vpack.c.bf16 %v1403_v54, %v1403_v54 }
 0x539   : > { %v1404_v52 = vmul.f32 %v2428_v51, %v2420_v35  ;;  %2203 = vmatmul.mubr.msk.bf16.vlgmr.msra.gmra.mrb[24].mxu0 %vm1176_vm4, %v1405_v50 }
 0x53a   : > { %2213 = vmatpush3.bf16.msra.mxu0 %v1506_v53  ;;  %2214 = vmatprep.mubr.msk.bf16.mxu0 %vm2733_vm1, %v2732_v9 }
 0x53b   : > { %v1408_v55 = vpack.c.bf16 %v1404_v52, %v1404_v52  ;;  %2224 = vmatprep.subr.bf16.mxu0 %v2732_v9 }
 0x53d   : > { %2221 = vmatmul.mubr.msk.bf16.vlgmr.msra.gmra.mrb[44].mxu1 %vm1176_vm4, %v1408_v55 }
 0x541   : > { %2215 = vmatmul.mubr.msk.bf16.vlgmr.msra.gmra.mrb[28].mxu0 %vm1176_vm4, %v1407_v57 }
 0x542   : > { %2225 = vmatpush3.bf16.msra.mxu0 %v1605_v58  ;;  %2226 = vmatprep.mubr.msk.bf16.mxu0 %vm2733_vm1, %v2732_v9 }
 0x543   : > { %2230 = vmatprep.subr.bf16.mxu0 %v2732_v9 }
 0x608   : > { %v1496_v60 = vpop.f32.mrb[40].mxu1 }
 0x609   : > { %v1595_v61 = vpack.c.bf16 %v1496_v60, %v1496_v60  ;;  %v2210_v62 = vpop.f32.mrb[41].mxu1 }
 0x60a   : > { %v1499_v0 = vpop.f32.mrb[42].mxu1 }
 0x60b   : > { %v2211_v1 = vpop.f32.mrb[43].mxu1  ;;  %2227 = vmatmul.mubr.msk.bf16.vlgmr.msra.gmra.mrb[32].mxu0 %vm1176_vm4, %v1595_v61 }
 0x60c   : > { %2231 = vmatpush3.bf16.msra.mxu0 %v1651_v63  ;;  %v1450_v2 = vpop.f32.mrb[24].mxu0  ;;  %2232 = vmatprep.mubr.msk.bf16.mxu0 %vm2733_vm1, %v2732_v9 }
 0x60d   : > { %v2204_v3 = vpop.f32.mrb[25].mxu0  ;;  %2236 = vmatprep.subr.bf16.mxu0 %v2732_v9  ;;  %v1594_v13 = vpack.c.bf16 %v1450_v2, %v1450_v2 }
 0x60e   : > { %v1453_v4 = vpop.f32.mrb[26].mxu0 }
 0x60f   : > { %v2205_v5 = vpop.f32.mrb[27].mxu0 }
 0x610   : > { %v1588_v6 = vpop.f32.mrb[44].mxu1 }
 0x611   : > { %v2222_v7 = vpop.f32.mrb[45].mxu1  ;;  %v1597_v21 = vpack.c.bf16 %v1588_v6, %v1588_v6 }
 0x612   : > { %v1591_v8 = vpop.f32.mrb[46].mxu1 }
 0x613   : > { %v2223_v11 = vpop.f32.mrb[47].mxu1 }
 0x614   : > { %v1542_v12 = vpop.f32.mrb[28].mxu0 }
 0x615   : > { %v2216_v14 = vpop.f32.mrb[29].mxu0  ;;  %v1596_v19 = vpack.c.bf16 %v1542_v12, %v1542_v12 }
 0x616   : > { %v1545_v16 = vpop.f32.mrb[30].mxu0 }
 0x617   : > { %v2217_v17 = vpop.f32.mrb[31].mxu0  ;;  %2233 = vmatmul.mubr.msk.bf16.vlgmr.msra.gmra.mrb[32].mxu0 %vm1176_vm4, %v1594_v13 }
 0x618   : > { %2237 = vmatpush3.bf16.msra.mxu0 %v1699_v15  ;;  %2238 = vmatprep.mubr.msk.bf16.mxu0 %vm2733_vm1, %v2732_v9 }
 0x619   : > { %2242 = vmatprep.subr.bf16.mxu0 %v2732_v9 }
 0x623   : > { %2239 = vmatmul.mubr.msk.bf16.vlgmr.msra.gmra.mrb[32].mxu0 %vm1176_vm4, %v1596_v19 }
 0x624   : > { %2243 = vmatpush3.bf16.msra.mxu0 %v1748_v20  ;;  %2244 = vmatprep.mubr.msk.bf16.mxu0 %vm2733_vm1, %v2732_v9 }
 0x62f   : > { %2245 = vmatmul.mubr.msk.bf16.vlgmr.msra.gmra.mrb[32].mxu0 %vm1176_vm4, %v1597_v21 }
 0x702   : > { %v1784_v22 = vpop.f32.mrb[32].mxu0 }
 0x703   : > { %1791 = vst.msk [vmem:[%s390_s9] sm:$0xff] %vm397_vm0, %v1784_v22  ;;  %v2246_v9 = vpop.f32.mrb[33].mxu0 }
 0x704   : > { %v1787_v23 = vpop.f32.mrb[34].mxu0 }
 0x705   : > { %2640 = shalt.err (!%p2637_p8)
}
 0x706   : > { %s2641_s19 = scalar_lea.hbm %s3223_s13, 128  ;;  %s2645_s30 = scalar_lea.hbm %s3280_s7, 256 }
 0x707   : > { %p2642_p9 = scmp.ne.s32.totalorder %s3223_s13, %s2641_s19  ;;  %p2646_p3 = scmp.lt.u32.totalorder %s3223_s13, %s3280_s7 }
 0x708   : > { %p2647_p1 = scmp.lt.u32.totalorder %s2645_s30, %s2641_s19  ;;  %p2649_p11 = scmp.lt.u32.totalorder %s2641_s19, %s3223_s13 }
 0x709   : > { %p2643_p4 = pnand %p2642_p9, %p3303_p0 }
 0x70a   : > { %p2648_p12 = por %p2647_p1, %p2646_p3 }
 0x70b   : > { %p2644_p6 = pneg %p2643_p4 }
 0x70c   : > { %p2650_p5 = por %p2649_p11, %p2648_p12 }
 0x70e   : > { %p2651_p7 = pnand %p2650_p5, %p2644_p6 }
 0x710   : > { %2654 = shalt.err (!%p2651_p7)
}
 0x711   : > { %2286 = dma.vmem_to_hbm [thread:$0]  (%p3303_p0), %s3225_s20, 128, %s3223_s13, %s1793_s17   ;;  %v2247_v24 = vpop.f32.mrb[35].mxu0 }
 0x712 PF: > { %s1819_s9 = sand.u32 1, %s2701_s24   ;;  %p3304_p10 = scmp.ne.s32.totalorder %s3299_s12, 0 }
 0x713   : > { %p3305_p13 = scmp.ge.s32.totalorder %s2721_s29, 2  ;;  %s1820_s16 = scalar_lea.sflag [#allocation8], %s1819_s9 }
 0x715   : > { %p2312_p2 = pnand %p3305_p13, %p3304_p10 }
 0x717   : > { %2696 = dma.done.wait (!%p2312_p2), %s1820_s16, 128  }
 0x718   : > { %2698 = vsyncadd (!%p2312_p2), %s1820_s16, 4294967168  ;;  %s26_s29 = sadd.s32 1, %s2721_s29   ;;  %s3306_s24 = smov %s2705_s25 }
 0x719   : > { %p23_p8 = scmp.ge.s32.totalorder %s26_s29, 4   ;;  %s3307_s25 = smov %s2709_s26 }
 0x71a   : > { %s3308_s26 = smov %s2992_s23  ;;  %s3309_s27 = smov %s2717_s28 }
 0x71b   : > { %s3310_s28 = smov %s3312_s22  ;;  %25 = sbr.rel (!%p23_p8) target bundleno = 12 (0xc), region = 143 }
 0x722   :  { %1825 = vsyncpa [#allocation7], 1 }
 0x723   :  { %1827 = vsyncpa [#allocation7 + $0x1], 1 }
 0x724   :  { %1828 = vsyncpa [#allocation10], 1 }
 0x725   :  { %1829 = vsyncpa [#allocation13], 1 }
 0x726   :  { %1830 = vsyncpa [#allocation16], 1 }
 0x727   :  { %1831 = vsyncpa [#allocation8], 1 }
 0x728   :  { %1833 = vsyncpa [#allocation8 + $0x1], 1 }

// kernel: tpu_custom_call.1
= control target key start
LH: loop header
LB: loop body
LE: loop exit
PB: predicated region body
PF: predicated region fallthrough
CT: control target
= control target key end

     0   :  { %s3273_s0 = inlined_call_operand.hbm [shape: f32[2,8,32], index: 0, kind: input, shape index: {}]   ;;  %s3274_s1 = inlined_call_operand.hbm [shape: f32[1,32], index: 1, kind: input, shape index: {}]   ;;  %s3275_s2 = inlined_call_operand.hbm [shape: f32[1,32], index: 2, kind: input, shape index: {}]   ;;  %s3276_s3 = inlined_call_operand.hbm [shape: bf16[4,32,8], index: 3, kind: input, shape index: {}]   ;;  %s3277_s4 = inlined_call_operand.hbm [shape: bf16[4,32,8], index: 4, kind: input, shape index: {}]   ;;  %s3278_s5 = inlined_call_operand.hbm [shape: bf16[4,32,8], index: 5, kind: input, shape index: {}]   ;;  %s3279_s6 = inlined_call_operand.hbm [shape: bf16[4,8,32], index: 6, kind: input, shape index: {}]   ;;  %s3280_s7 = inlined_call_operand.hbm [shape: f32[2,8,32], index: 7, kind: output, shape index: {}]  }
   0x1   :  { %3286 = sst [smem:[#allocation24_spill]] %s3274_s1 }
   0x2   :  { %3287 = sst [smem:[#allocation25_spill]] %s3276_s3 }
   0x3   :  { %12 = vsyncpa [#allocation7], 0 }
   0x4   :  { %14 = vsyncpa [#allocation7 + $0x1], 0 }
   0x5   :  { %15 = vsyncpa [#allocation10], 0 }
   0x6   :  { %16 = vsyncpa [#allocation13], 0 }
   0x7   :  { %17 = vsyncpa [#allocation16], 0 }
   0x8   :  { %18 = vsyncpa [#allocation8], 0 }
   0x9   :  { %20 = vsyncpa [#allocation8 + $0x1], 0  ;;  %s2775_s24 = smov 0   ;;  %s2777_s25 = smov 0  }
   0xa   :  { %s2779_s26 = smov 0   ;;  %s2781_s27 = smov 0  }
   0xb   :  { %s2783_s28 = smov 0   ;;  %s2785_s29 = smov 0  }
   0xc LB: > { %s3284_s30 = sadd.s32 4294967295, %s2721_s29   ;;  %p1947_p0 = scmp.ge.s32.totalorder %s2721_s29, 1  ;;  %s2721_s29 = sphi %s2785_s29, %s26_s29   ;;  %s2717_s28 = sphi %s2783_s28, %s3310_s28   ;;  %s2713_s27 = sphi %s2781_s27, %s3309_s27   ;;  %s2709_s26 = sphi %s2779_s26, %s3308_s26   ;;  %s2705_s25 = sphi %s2777_s25, %s3307_s25   ;;  %s2701_s24 = sphi %s2775_s24, %s3306_s24  }
   0xd   : > { %p2809_p1 = scmp.eq.s32.totalorder %s3284_s30, 0  ;;  %p223_p2 = scmp.lt.s32.totalorder %s2721_s29, 3 }
   0xe   : > { %s2723_s10 = smov [#allocation9]   ;;  %s2724_s12 = smov [#allocation12]  }
   0xf   : > { %s3288_s8 = scalar_select %p2809_p1, 1, 0 }
  0x10   : > { %p2814_p3 = pnand %p1947_p0, %p223_p2  ;;  %s236_s11 = sshll.u32 %s2723_s10, 4  ;;  %s237_s11 = int_to_ptr.vmem [resolvable:$true] %s236_s11 }
  0x11   : > { %s257_s13 = sshll.u32 %s2724_s12, 4  ;;  %s2725_s15 = smov [#allocation15]   ;;  %s2827_s13 = int_to_ptr.vmem [resolvable:$true] %s257_s13 }
  0x12   : > { %s3289_s9 = scalar_select %p2814_p3, 1, 0 }
  0x13   : > { %p2288_p5 = pneg %p2814_p3  ;;  %s2829_s16 = sshll.u32 %s2725_s15, 4  ;;  %s284_s16 = int_to_ptr.vmem [resolvable:$true] %s2829_s16 }
  0x14   : > { %s3291_s1 = sld [smem:[#allocation24_spill]] }
  0x15   : > { %p2823_p6 = pnand %p2288_p5, %p2809_p1 }
  0x17   : > { %p2839_p8 = pneg %p2823_p6 }
  0x1a   : > { %s2429_s19 = scalar_lea.hbm %s3291_s1, 16 }
  0x1b   : > { %p2430_p7 = scmp.ne.s32.totalorder %s3291_s1, %s2429_s19  ;;  %p2436_p11 = scmp.lt.u32.totalorder %s2429_s19, %s3291_s1 }
  0x1d   : > { %p2432_p9 = pnand %p2839_p8, %p2430_p7 }
  0x1f   : > { %p2433_p10 = pneg %p2432_p9 }
  0x21   : > { %p2438_p12 = pnand %p2436_p11, %p2433_p10 }
  0x23   : > { %2441 = shalt.err (!%p2438_p12)
}
  0x24   : > { %s2442_s12 = scalar_lea.vmem %s237_s11, 16  ;;  %s2449_s15 = scalar_lea.vmem %s237_s11, 32 }
  0x25   : > { %p2443_p13 = scmp.ne.s32.totalorder %s237_s11, %s2442_s12  ;;  %p2450_p5 = scmp.lt.s32.totalorder %s237_s11, %s237_s11 }
  0x26   : > { %p2451_p4 = scmp.lt.s32.totalorder %s2449_s15, %s2442_s12 }
  0x27   : > { %p2445_p0 = pnand %p2443_p13, %p2839_p8 }
  0x28   : > { %p2452_p3 = por %p2451_p4, %p2450_p5 }
  0x29   : > { %p2446_p2 = pneg %p2445_p0 }
  0x2b   : > { %p2453_p1 = pnand %p2452_p3, %p2446_p2 }
  0x2d   : > { %2456 = shalt.err (!%p2453_p1)
}
  0x2e   : > { %2291 = dma.hbm_to_vmem [thread:$0]  (!%p2823_p6), %s3291_s1, 16, %s237_s11, [#allocation10]  }
  0x2f   : > { %s3293_s3 = sld [smem:[#allocation25_spill]] }
  0x35   : > { %s2457_s21 = scalar_lea.hbm %s3293_s3, 1024 }
  0x36   : > { %p2458_p7 = scmp.ne.s32.totalorder %s3293_s3, %s2457_s21  ;;  %p2464_p1 = scmp.lt.u32.totalorder %s2457_s21, %s3293_s3 }
  0x38   : > { %p2460_p9 = pnand %p2458_p7, %p2839_p8 }
  0x3a   : > { %p2461_p4 = pneg %p2460_p9 }
  0x3c   : > { %p2466_p3 = pnand %p2464_p1, %p2461_p4 }
  0x3e   : > { %2469 = shalt.err (!%p2466_p3)
}
  0x3f   : > { %s2470_s11 = scalar_lea.vmem %s2827_s13, 1024  ;;  %p2478_p13 = scmp.lt.s32.totalorder %s2827_s13, %s2827_s13 }
  0x40   : > { %p2471_p10 = scmp.ne.s32.totalorder %s2827_s13, %s2470_s11  ;;  %p2479_p0 = scmp.lt.s32.totalorder %s2470_s11, %s2470_s11 }
  0x42   : > { %p2473_p11 = pnand %p2471_p10, %p2839_p8  ;;  %p2480_p2 = por %p2479_p0, %p2478_p13 }
  0x44   : > { %p2474_p12 = pneg %p2473_p11 }
  0x46   : > { %p2481_p5 = pnand %p2480_p2, %p2474_p12 }
  0x48   : > { %2484 = shalt.err (!%p2481_p5)
}
  0x49   : > { %s2726_s17 = smov 64   ;;  %s2727_s18 = smov 4  }
  0x4a   : > { %2297 = dma.hbm_to_vmem [thread:$0]  (!%p2823_p6), %s3293_s3, 1024, %s2827_s13, [#allocation13], %s2726_s17, %s2726_s17, %s2727_s18  }
  0x4b   : > { %s2485_s10 = scalar_lea.hbm %s3278_s5, 1024 }
  0x4c   : > { %p2486_p7 = scmp.ne.s32.totalorder %s3278_s5, %s2485_s10  ;;  %p2492_p1 = scmp.lt.u32.totalorder %s2485_s10, %s3278_s5 }
  0x4e   : > { %p2488_p9 = pnand %p2486_p7, %p2839_p8 }
  0x50   : > { %p2489_p4 = pneg %p2488_p9 }
  0x52   : > { %p2494_p3 = pnand %p2492_p1, %p2489_p4 }
  0x54   : > { %2497 = shalt.err (!%p2494_p3)
}
  0x55   : > { %s2498_s19 = scalar_lea.vmem %s284_s16, 1024  ;;  %p2506_p13 = scmp.lt.s32.totalorder %s284_s16, %s284_s16 }
  0x56   : > { %p2499_p10 = scmp.ne.s32.totalorder %s284_s16, %s2498_s19  ;;  %p2507_p0 = scmp.lt.s32.totalorder %s2498_s19, %s2498_s19 }
  0x58   : > { %p2501_p11 = pnand %p2499_p10, %p2839_p8  ;;  %p2508_p2 = por %p2507_p0, %p2506_p13 }
  0x5a   : > { %p2502_p12 = pneg %p2501_p11 }
  0x5c   : > { %p2509_p5 = pnand %p2508_p2, %p2502_p12 }
  0x5e   : > { %2512 = shalt.err (!%p2509_p5)
}
  0x5f   : > { %2303 = dma.hbm_to_vmem [thread:$0]  (!%p2823_p6), %s3278_s5, 1024, %s284_s16, [#allocation16], %s2726_s17, %s2726_s17, %s2727_s18  }
  0x60   : > { %s2728_s20 = smov [#allocation11]   ;;  %s2729_s23 = smov [#allocation14]  }
  0x61   : > { %s247_s21 = sshll.u32 %s2728_s20, 4  ;;  %s270_s10 = sshll.u32 %s2729_s23, 4  ;;  %s248_s21 = int_to_ptr.vmem [resolvable:$true] %s247_s21  ;;  %s271_s10 = int_to_ptr.vmem [resolvable:$true] %s270_s10 }
  0x62   : > { %s2513_s11 = scalar_lea.hbm %s3275_s2, 16 }
  0x63   : > { %p2514_p7 = scmp.ne.s32.totalorder %s3275_s2, %s2513_s11  ;;  %p2520_p1 = scmp.lt.u32.totalorder %s2513_s11, %s3275_s2 }
  0x65   : > { %p2516_p9 = pnand %p2514_p7, %p2839_p8 }
  0x67   : > { %p2517_p4 = pneg %p2516_p9 }
  0x69   : > { %p2522_p3 = pnand %p2520_p1, %p2517_p4 }
  0x6b   : > { %2525 = shalt.err (!%p2522_p3)
}
  0x6c   : > { %s2526_s16 = scalar_lea.vmem %s248_s21, 16  ;;  %s2533_s13 = scalar_lea.vmem %s248_s21, 32 }
  0x6d   : > { %p2527_p10 = scmp.ne.s32.totalorder %s248_s21, %s2526_s16  ;;  %p2534_p13 = scmp.lt.s32.totalorder %s248_s21, %s248_s21 }
  0x6e   : > { %p2535_p0 = scmp.lt.s32.totalorder %s2533_s13, %s2526_s16 }
  0x6f   : > { %p2529_p11 = pnand %p2527_p10, %p2839_p8 }
  0x70   : > { %p2536_p2 = por %p2535_p0, %p2534_p13 }
  0x71   : > { %p2530_p12 = pneg %p2529_p11 }
  0x73   : > { %p2537_p5 = pnand %p2536_p2, %p2530_p12 }
  0x75   : > { %2540 = shalt.err (!%p2537_p5)
}
  0x76   : > { %2294 = dma.hbm_to_vmem [thread:$0]  (!%p2823_p6), %s3275_s2, 16, %s248_s21, [#allocation10]  }
  0x77   : > { %s2541_s12 = scalar_lea.hbm %s3277_s4, 1024 }
  0x78   : > { %p2542_p7 = scmp.ne.s32.totalorder %s3277_s4, %s2541_s12  ;;  %p2548_p1 = scmp.lt.u32.totalorder %s2541_s12, %s3277_s4 }
  0x7a   : > { %p2544_p9 = pnand %p2542_p7, %p2839_p8 }
  0x7c   : > { %p2545_p4 = pneg %p2544_p9 }
  0x7e   : > { %p2550_p3 = pnand %p2548_p1, %p2545_p4 }
  0x80   : > { %2553 = shalt.err (!%p2550_p3)
}
  0x81   : > { %s2554_s16 = scalar_lea.vmem %s271_s10, 1024  ;;  %p2562_p13 = scmp.lt.s32.totalorder %s271_s10, %s271_s10 }
  0x82   : > { %p2555_p10 = scmp.ne.s32.totalorder %s271_s10, %s2554_s16  ;;  %p2563_p0 = scmp.lt.s32.totalorder %s2554_s16, %s2554_s16 }
  0x84   : > { %p2557_p11 = pnand %p2555_p10, %p2839_p8  ;;  %p2564_p2 = por %p2563_p0, %p2562_p13 }
  0x86   : > { %p2558_p12 = pneg %p2557_p11 }
  0x88   : > { %p2565_p5 = pnand %p2564_p2, %p2558_p12 }
  0x8a   : > { %2568 = shalt.err (!%p2565_p5)
}
  0x8b   : > { %2300 = dma.hbm_to_vmem [thread:$0]  (!%p2823_p6), %s3277_s4, 1024, %s271_s10, [#allocation13], %s2726_s17, %s2726_s17, %s2727_s18  }
  0x8c   : > { %s2730_s1 = smov [#allocation17]   ;;  %s2569_s12 = scalar_lea.hbm %s3279_s6, 256 }
  0x8d   : > { %s296_s20 = sshll.u32 %s2730_s1, 4  ;;  %p2570_p7 = scmp.ne.s32.totalorder %s3279_s6, %s2569_s12  ;;  %s297_s20 = int_to_ptr.vmem [resolvable:$true] %s296_s20 }
  0x8e   : > { %p2576_p1 = scmp.lt.u32.totalorder %s2569_s12, %s3279_s6 }
  0x8f   : > { %p2572_p9 = pnand %p2570_p7, %p2839_p8 }
  0x91   : > { %p2573_p4 = pneg %p2572_p9 }
  0x93   : > { %p2578_p3 = pnand %p2576_p1, %p2573_p4 }
  0x95   : > { %2581 = shalt.err (!%p2578_p3)
}
  0x96   : > { %s2582_s10 = scalar_lea.vmem %s297_s20, 256  ;;  %p2590_p13 = scmp.lt.s32.totalorder %s297_s20, %s297_s20 }
  0x97   : > { %p2583_p10 = scmp.ne.s32.totalorder %s297_s20, %s2582_s10  ;;  %p2591_p0 = scmp.lt.s32.totalorder %s2582_s10, %s2582_s10 }
  0x99   : > { %p2585_p11 = pnand %p2583_p10, %p2839_p8  ;;  %p2592_p2 = por %p2591_p0, %p2590_p13 }
  0x9b   : > { %p2586_p12 = pneg %p2585_p11 }
  0x9d   : > { %p2593_p5 = pnand %p2592_p2, %p2586_p12 }
  0x9f   : > { %2596 = shalt.err (!%p2593_p5)
}
  0xa0   : > { %2306 = dma.hbm_to_vmem [thread:$0]  (!%p2823_p6), %s3279_s6, 256, %s297_s20, [#allocation16], %s2726_s17, %s2726_s17, %s2727_s18  }
  0xa1   : > { %s1946_s14 = sadd.s32 4294967294, %s2721_s29   ;;  %s38_s22 = sadd.s32 1, %s2717_s28 }
  0xa2   : > { %p40_p8 = scmp.ge.s32.totalorder %s38_s22, 2  ;;  %s45_s13 = sadd.s32 1, %s2709_s26 }
  0xa3   : > { %p52_p7 = scmp.ne.s32.totalorder %s2709_s26, %s2705_s25  ;;  %p53_p9 = scmp.eq.s32.totalorder %s2721_s29, 0 }
  0xa4   : > { %s3312_s22 = smov (%p40_p8, %s38_s22), 0  ;;  %p58_p1 = scmp.ne.s32.totalorder %s2705_s25, %s2701_s24 }
  0xa5   : > { %p2971_p4 = por %p53_p9, %p52_p7  ;;  %s42_s17 = ssub.s32 %s2717_s28, %s3312_s22 }
  0xa6   : > { %s3295_s18 = sadd.s32 4294967295, %s2721_s29   ;;  %p43_p3 = scmp.eq.s32.totalorder %s42_s17, 0 }
  0xa7   : > { %p210_p6 = scmp.eq.s32.totalorder %s3295_s18, 1  ;;  %p3296_p10 = scmp.ne.s32.totalorder %s3288_s8, 0 }
  0xa8   : > { %p216_p13 = scmp.eq.s32.totalorder %s1946_s14, 1  ;;  %p2321_p2 = scmp.lt.s32.totalorder %s2721_s29, 2 }
  0xa9   : > { %p2983_p11 = por %p3296_p10, %p58_p1  ;;  %p2987_p12 = por %p210_p6, %p52_p7 }
  0xaa   : > { %s2992_s23 = scalar_select %p43_p3, %s2709_s26, %s45_s13  }
  0xab   : > { %s3298_s3 = scalar_select %p2987_p12, 1, 0 }
  0xac   : > { %p2994_p0 = por %p216_p13, %p58_p1  ;;  %s310_s15 = sand.u32 1, %s2709_s26  }
  0xad   : > { %s1956_s11 = sshll.u32 %s2717_s28, 7  ;;  %s1955_s19 = sshll.u32 %s310_s15, 3 }
  0xae   : > { %s3299_s12 = scalar_select %p2994_p0, 1, 0 }
  0xaf   : > { %s3004_s16 = scalar_lea.hbm %s3273_s0, %s1956_s11  ;;  %s314_s21 = scalar_lea.vmem [#allocation6], %s1955_s19 }
  0xb0   : > { %s321_s14 = sshll.u32 %s314_s21, 4  ;;  %p3008_p5 = pnand %p2321_p2, %p2971_p4  ;;  %s3012_s14 = int_to_ptr.vmem [resolvable:$true] %s321_s14 }
  0xb1   : > { %s311_s17 = scalar_lea.sflag [#allocation7], %s310_s15  ;;  %s2597_s18 = scalar_lea.hbm %s3004_s16, 128 }
  0xb2   : > { %p2598_p8 = scmp.ne.s32.totalorder %s3004_s16, %s2597_s18  ;;  %p2599_p7 = pneg %p3008_p5 }
  0xb3   : > { %s2602_s1 = scalar_lea.hbm %s3273_s0, 256  ;;  %p2603_p4 = scmp.lt.u32.totalorder %s3004_s16, %s3273_s0 }
  0xb4   : > { %p2600_p9 = pnand %p2599_p7, %p2598_p8  ;;  %p2604_p6 = scmp.lt.u32.totalorder %s2602_s1, %s2597_s18 }
  0xb5   : > { %p2606_p10 = scmp.lt.u32.totalorder %s2597_s18, %s3004_s16 }
  0xb6   : > { %p2601_p1 = pneg %p2600_p9  ;;  %p2605_p3 = por %p2604_p6, %p2603_p4 }
  0xb8   : > { %p2607_p13 = por %p2606_p10, %p2605_p3 }
  0xba   : > { %p2608_p2 = pnand %p2607_p13, %p2601_p1 }
  0xbc   : > { %2611 = shalt.err (!%p2608_p2)
}
  0xbd   : > { %s2612_s15 = scalar_lea.vmem %s3012_s14, 128  ;;  %s2731_s21 = smov [#allocation6]  }
  0xbe   : > { %p2613_p8 = scmp.ne.s32.totalorder %s3012_s14, %s2612_s15  ;;  %s2617_s11 = sshll.u32 %s2731_s21, 4  ;;  %s2618_s11 = int_to_ptr.vmem [resolvable:$false] %s2617_s11 }
  0xbf   : > { %s2619_s19 = scalar_lea.vmem %s2618_s11, 256  ;;  %p2620_p12 = scmp.lt.s32.totalorder %s3012_s14, %s2618_s11 }
  0xc0   : > { %p2615_p9 = pnand %p2613_p8, %p2599_p7  ;;  %p2621_p4 = scmp.lt.s32.totalorder %s2619_s19, %s2612_s15 }
  0xc2   : > { %p2616_p0 = pneg %p2615_p9  ;;  %p2622_p6 = por %p2621_p4, %p2620_p12 }
  0xc4   : > { %p2623_p3 = pnand %p2622_p6, %p2616_p0 }
  0xc6   : > { %2626 = shalt.err (!%p2623_p3)
}
  0xc7   : > { %2310 = dma.hbm_to_vmem [thread:$0]  (!%p3008_p5), %s3004_s16, 128, %s3012_s14, %s311_s17  }
  0xc8   : > { %p3301_p1 = scmp.ne.s32.totalorder %s3289_s9, 0 }
  0xc9   : > { %s3042_s18 = sand.u32 (!%p3301_p1), 1, %s2705_s25  }
  0xca   : > { %330 = sbr.rel (%p3301_p1) target bundleno = 1810 (0x712), region = 48  ;;  %s1958_s1 = sshll.u32 (!%p3301_p1), %s3042_s18, 3 }
  0xcb   : > { %s333_s30 = scalar_lea.sflag (!%p3301_p1), [#allocation7], %s3042_s18  ;;  %s336_s10 = scalar_lea.vmem (!%p3301_p1), [#allocation6], %s1958_s1 }
  0xd1   : > { %2680 = dma.done.wait (%p2983_p11), %s333_s30, 128  }
  0xd2   : > { %2682 = vsyncadd (%p2983_p11), %s333_s30, 4294967168  ;;  %p3302_p12 = scmp.ne.s32.totalorder %s3288_s8, 0 }
  0xd4   : > { %2684 = dma.done.wait (%p3302_p12), [#allocation10], 32  }
  0xd5   : > { %2686 = vsyncadd (%p3302_p12), [#allocation10], 4294967264 }
  0xd6   : > { %2688 = dma.done.wait (%p3302_p12), [#allocation13], 2048  }
  0xd7   : > { %2690 = vsyncadd (%p3302_p12), [#allocation13], 4294965248 }
  0xd8   : > { %2692 = dma.done.wait (%p3302_p12), [#allocation16], 1280  }
  0xd9   : > { %2694 = vsyncadd (%p3302_p12), [#allocation16], 4294966016  ;;  %vm397_vm0 = vcmask 261120   ;;  %v396_v0 = vld [vmem:[%s336_s10] sm:$0xff]  ;;  %v2387_v7 = vld [vmem:[#allocation14] sm:$0xff]   ;;  %v2732_v9 = vmov 0.0  }
  0xda   : > { %v398_v1 = vsel %vm397_vm0, %v396_v0, 0.0  ;;  %v2388_v8 = vld [vmem:[#allocation14 + $0x20] sm:$0xff]   ;;  %2080 = vmatprep.subr.bf16.mxu1 %v2732_v9  ;;  %2112 = vmatprep.subr.bf16.mxu0 %v2732_v9  ;;  %v2389_v10 = vld [vmem:[#allocation14 + $0x8] sm:$0xff]   ;;  %vm2733_vm1 = vmmov 0   ;;  %v1966_v16 = vld [vmem:[#allocation9] ss:$0 sm:$0xff] }
  0xdb   : > { %399 = vadd.xlane.f32.xlu0 %v398_v1  ;;  %2081 = vmatpush3.bf16.msra.mxu1 %v2387_v7  ;;  %v2390_v11 = vld [vmem:[#allocation14 + $0x28] sm:$0xff]   ;;  %v1967_v18 = vld [vmem:[#allocation11] ss:$0 sm:$0xff]  ;;  %v2391_v21 = vld [vmem:[#allocation15] sm:$0xff]   ;;  %vm429_vm2 = vcmask 257024   ;;  %vm491_vm3 = vcmask 60416  }
  0xdc   : > { %2113 = vmatpush3.bf16.msra.mxu0 %v2388_v8  ;;  %2082 = vmatprep.subr.bf16.mxu1 %v2732_v9  ;;  %v2392_v22 = vld [vmem:[#allocation14 + $0x30] sm:$0xff]   ;;  %v2393_v24 = vld [vmem:[#allocation15 + $0x8] sm:$0xff]   ;;  %v2394_v25 = vld [vmem:[#allocation14 + $0x38] sm:$0xff]   ;;  %vm1176_vm4 = vcmask 64512   ;;  %vm1412_vm5 = vcmask 1043456   ;;  %s2017_s8 = sshll.u32 %s2713_s27, 7 }
  0xdd   : > { %2114 = vmatprep.subr.bf16.mxu0 %v2732_v9  ;;  %2084 = vmatprep.mubr.msk.bf16.mxu1 %vm2733_vm1, %v2732_v9  ;;  %v2395_v26 = vld [vmem:[#allocation14 + $0x10] sm:$0xff]   ;;  %v2396_v27 = vld [vmem:[#allocation12] sm:$0xff]   ;;  %v2397_v28 = vld [vmem:[#allocation14 + $0x18] sm:$0xff]   ;;  %s390_s9 = scalar_lea.vmem [#allocation18], %s1958_s1  ;;  %s3223_s13 = scalar_lea.hbm %s3280_s7, %s2017_s8 }
  0xde   : > { %2116 = vmatprep.mubr.msk.bf16.mxu0 %vm2733_vm1, %v2732_v9  ;;  %v2398_v29 = vld [vmem:[#allocation12 + $0x8] sm:$0xff]   ;;  %v2399_v30 = vld [vmem:[#allocation15 + $0x10] sm:$0xff]   ;;  %v2400_v31 = vld [vmem:[#allocation12 + $0x20] sm:$0xff]   ;;  %s1807_s20 = sshll.u32 %s390_s9, 4  ;;  %s1793_s17 = scalar_lea.sflag [#allocation8], %s3042_s18  ;;  %s3225_s20 = int_to_ptr.vmem [resolvable:$true] %s1807_s20 }
  0xdf   : > { %2083 = vmatpush3.bf16.msra.mxu1 %v2389_v10  ;;  %v2401_v33 = vld [vmem:[#allocation15 + $0x18] sm:$0xff]   ;;  %v2402_v34 = vld [vmem:[#allocation12 + $0x28] sm:$0xff]   ;;  %v2403_v35 = vld [vmem:[#allocation15 + $0x20] sm:$0xff]   ;;  %s2627_s27 = scalar_lea.vmem %s3225_s20, 128  ;;  %p3303_p0 = scmp.ne.s32.totalorder %s3298_s3, 0 }
  0xe0   : > { %2115 = vmatpush3.bf16.msra.mxu0 %v2390_v11  ;;  %2088 = vmatprep.subr.bf16.mxu1 %v2732_v9  ;;  %v2404_v36 = vld [vmem:[#allocation15 + $0x28] sm:$0xff]   ;;  %v2405_v37 = vld [vmem:[#allocation15 + $0x30] sm:$0xff]   ;;  %v2406_v38 = vld [vmem:[#allocation15 + $0x38] sm:$0xff]   ;;  %p2628_p11 = scmp.ne.s32.totalorder %s3225_s20, %s2627_s27  ;;  %s2734_s15 = smov [#allocation18]  }
  0xe1   : > { %2128 = vmatprep.subr.bf16.mxu0 %v2732_v9  ;;  %v2407_v39 = vld [vmem:[#allocation12 + $0x10] sm:$0xff]   ;;  %v2408_v40 = vld [vmem:[#allocation12 + $0x18] sm:$0xff]   ;;  %s2631_s21 = sshll.u32 %s2734_s15, 4  ;;  %s2632_s21 = int_to_ptr.vmem [resolvable:$false] %s2631_s21 }
  0xe2   : > { %v2409_v41 = vld [vmem:[#allocation12 + $0x30] sm:$0xff]   ;;  %v2410_v42 = vld [vmem:[#allocation12 + $0x38] sm:$0xff]   ;;  %p2629_p5 = pnand %p2628_p11, %p3303_p0  ;;  %s2633_s11 = scalar_lea.vmem %s2632_s21, 256 }
  0xe3   : > { %p2634_p10 = scmp.lt.s32.totalorder %s3225_s20, %s2632_s21  ;;  %p2635_p13 = scmp.lt.s32.totalorder %s2633_s11, %s2627_s27 }
  0xe4   : > { %p2630_p7 = pneg %p2629_p5 }
  0xe5   : > { %p2636_p2 = por %p2635_p13, %p2634_p10 }
  0xe7   : > { %p2637_p8 = pnand %p2636_p2, %p2630_p7 }
 0x168   : > { %v400_v2 = vpop.xlane.xlu0 %399 }
 0x169   : > { %v402_v3 = vmul.f32 0.03125, %v400_v2 }
 0x16b   : > { %v403_v4 = vsub.f32 %v396_v0, %v402_v3 }
 0x16d   : > { %v404_v5 = vmul.f32 %v403_v4, %v403_v4 }
 0x16f   : > { %v405_v6 = vsel %vm397_vm0, %v404_v5, 0.0 }
 0x170   : > { %406 = vadd.xlane.f32.xlu0 %v405_v6 }
 0x1fd   : > { %v407_v12 = vpop.xlane.xlu0 %406 }
 0x1fe   : > { %v408_v13 = vmul.f32 0.03125, %v407_v12 }
 0x200   : > { %v409_v14 = vadd.f32 1e-05, %v408_v13 }
 0x202   : > { %2411 = vrsqrt.f32 %v409_v14 }
 0x20c   : > { %v2412_v15 = vpop.eup %2411 }
 0x20d   : > { %v411_v17 = vmul.f32 %v2412_v15, %v403_v4 }
 0x20f   : > { %v419_v19 = vmul.f32 %v1966_v16, %v411_v17 }
 0x211   : > { %v427_v20 = vadd.f32 %v1967_v18, %v419_v19 }
 0x213   : > { %v3076_v23 = vpack.c.bf16 %v427_v20, %v427_v20 }
 0x215   : > { %2085 = vmatmul.mubr.msk.bf16.vlgmr.msra.gmra.mrb[0].mxu1 %vm397_vm0, %v3076_v23  ;;  %2117 = vmatmul.mubr.msk.bf16.vlgmr.msra.gmra.mrb[0].mxu0 %vm397_vm0, %v3076_v23  ;;  %430 = vst.msk [vmem:[#allocation2] sm:$0xf] %vm429_vm2, %v3076_v23 }
 0x216   : > { %2089 = vmatpush3.bf16.msra.mxu1 %v2391_v21  ;;  %2129 = vmatpush3.bf16.msra.mxu0 %v2392_v22 }
 0x217   : > { %2090 = vmatprep.subr.bf16.mxu1 %v2732_v9  ;;  %2130 = vmatprep.subr.bf16.mxu0 %v2732_v9 }
 0x218   : > { %2092 = vmatprep.mubr.msk.bf16.mxu1 %vm2733_vm1, %v2732_v9  ;;  %2132 = vmatprep.mubr.msk.bf16.mxu0 %vm2733_vm1, %v2732_v9 }
 0x21a   : > { %2091 = vmatpush3.bf16.msra.mxu1 %v2393_v24  ;;  %2131 = vmatpush3.bf16.msra.mxu0 %v2394_v25 }
 0x21b   : > { %2096 = vmatprep.subr.bf16.mxu1 %v2732_v9  ;;  %2144 = vmatprep.subr.bf16.mxu0 %v2732_v9 }
 0x21c   : > { %v916_v32 = vld [vmem:[#allocation2] sm:$0xf] }
 0x21d   : > { %2093 = vmatmul.mubr.msk.bf16.vlgmr.msra.gmra.mrb[4].mxu1 %vm397_vm0, %v3076_v23  ;;  %2133 = vmatmul.mubr.msk.bf16.vlgmr.msra.gmra.mrb[4].mxu0 %vm397_vm0, %v3076_v23 }
 0x21e   : > { %2097 = vmatpush3.bf16.msra.mxu1 %v2395_v26  ;;  %2145 = vmatpush3.bf16.msra.mxu0 %v2396_v27 }
 0x21f   : > { %2098 = vmatprep.subr.bf16.mxu1 %v2732_v9  ;;  %2146 = vmatprep.subr.bf16.mxu0 %v2732_v9 }
 0x220   : > { %2100 = vmatprep.mubr.msk.bf16.mxu1 %vm2733_vm1, %v2732_v9  ;;  %2148 = vmatprep.mubr.msk.bf16.mxu0 %vm2733_vm1, %v2732_v9 }
 0x222   : > { %2099 = vmatpush3.bf16.msra.mxu1 %v2397_v28  ;;  %2147 = vmatpush3.bf16.msra.mxu0 %v2398_v29 }
 0x223   : > { %2104 = vmatprep.subr.bf16.mxu1 %v2732_v9  ;;  %2160 = vmatprep.subr.bf16.mxu0 %v2732_v9 }
 0x225   : > { %2101 = vmatmul.mubr.msk.bf16.vlgmr.msra.gmra.mrb[8].mxu1 %vm397_vm0, %v3076_v23  ;;  %2149 = vmatmul.mubr.msk.bf16.vlgmr.msra.gmra.mrb[8].mxu0 %vm397_vm0, %v916_v32 }
 0x226   : > { %2105 = vmatpush3.bf16.msra.mxu1 %v2399_v30  ;;  %2161 = vmatpush3.bf16.msra.mxu0 %v2400_v31 }
 0x227   : > { %2106 = vmatprep.subr.bf16.mxu1 %v2732_v9  ;;  %2162 = vmatprep.subr.bf16.mxu0 %v2732_v9 }
 0x228   : > { %2108 = vmatprep.mubr.msk.bf16.mxu1 %vm2733_vm1, %v2732_v9  ;;  %2164 = vmatprep.mubr.msk.bf16.mxu0 %vm2733_vm1, %v2732_v9 }
 0x22a   : > { %2107 = vmatpush3.bf16.msra.mxu1 %v2401_v33  ;;  %2163 = vmatpush3.bf16.msra.mxu0 %v2402_v34 }
 0x22b   : > { %2120 = vmatprep.subr.bf16.mxu1 %v2732_v9  ;;  %2176 = vmatprep.subr.bf16.mxu0 %v2732_v9 }
 0x22d   : > { %2109 = vmatmul.mubr.msk.bf16.vlgmr.msra.gmra.mrb[12].mxu1 %vm397_vm0, %v3076_v23  ;;  %2165 = vmatmul.mubr.msk.bf16.vlgmr.msra.gmra.mrb[12].mxu0 %vm397_vm0, %v916_v32 }
 0x22e   : > { %2121 = vmatpush3.bf16.msra.mxu1 %v2403_v35  ;;  %2124 = vmatprep.mubr.msk.bf16.mxu1 %vm2733_vm1, %v2732_v9 }
 0x22f   : > { %2122 = vmatprep.subr.bf16.mxu1 %v2732_v9  ;;  %2178 = vmatprep.mubr.msk.bf16.mxu0 %vm2733_vm1, %v2732_v9 }
 0x232   : > { %2123 = vmatpush3.bf16.msra.mxu1 %v2404_v36 }
 0x233   : > { %2136 = vmatprep.subr.bf16.mxu1 %v2732_v9 }
 0x235   : > { %2125 = vmatmul.mubr.msk.bf16.vlgmr.msra.gmra.mrb[16].mxu1 %vm397_vm0, %v3076_v23 }
 0x236   : > { %2137 = vmatpush3.bf16.msra.mxu1 %v2405_v37  ;;  %2140 = vmatprep.mubr.msk.bf16.mxu1 %vm2733_vm1, %v2732_v9 }
 0x237   : > { %2138 = vmatprep.subr.bf16.mxu1 %v2732_v9 }
 0x23a   : > { %2139 = vmatpush3.bf16.msra.mxu1 %v2406_v38 }
 0x23b   : > { %2152 = vmatprep.subr.bf16.mxu1 %v2732_v9 }
 0x23d   : > { %2141 = vmatmul.mubr.msk.bf16.vlgmr.msra.gmra.mrb[20].mxu1 %vm397_vm0, %v3076_v23 }
 0x23e   : > { %2153 = vmatpush3.bf16.msra.mxu1 %v2407_v39  ;;  %2156 = vmatprep.mubr.msk.bf16.mxu1 %vm2733_vm1, %v2732_v9 }
 0x23f   : > { %2154 = vmatprep.subr.bf16.mxu1 %v2732_v9 }
 0x242   : > { %2155 = vmatpush3.bf16.msra.mxu1 %v2408_v40 }
 0x243   : > { %2168 = vmatprep.subr.bf16.mxu1 %v2732_v9 }
 0x245   : > { %2157 = vmatmul.mubr.msk.bf16.vlgmr.msra.gmra.mrb[24].mxu1 %vm397_vm0, %v916_v32 }
 0x246   : > { %2169 = vmatpush3.bf16.msra.mxu1 %v2409_v41  ;;  %2172 = vmatprep.mubr.msk.bf16.mxu1 %vm2733_vm1, %v2732_v9 }
 0x247   : > { %2170 = vmatprep.subr.bf16.mxu1 %v2732_v9 }
 0x24a   : > { %2171 = vmatpush3.bf16.msra.mxu1 %v2410_v42 }
 0x24b   : > { %2182 = vmatprep.subr.bf16.mxu1 %v2732_v9 }
 0x24d   : > { %2173 = vmatmul.mubr.msk.bf16.vlgmr.msra.gmra.mrb[28].mxu1 %vm397_vm0, %v916_v32 }
 0x24e   : > { %2184 = vmatprep.mubr.msk.bf16.mxu1 %vm2733_vm1, %v2732_v9 }
 0x2e8   : > { %v484_v43 = vpop.f32.mrb[0].mxu1  ;;  %v722_v44 = vpop.f32.mrb[0].mxu0 }
 0x2e9   : > { %v490_v45 = vpack.c.bf16 %v484_v43, %v484_v43  ;;  %v728_v46 = vpack.c.bf16 %v722_v44, %v722_v44  ;;  %v2086_v47 = vpop.f32.mrb[1].mxu1  ;;  %v2118_v48 = vpop.f32.mrb[1].mxu0 }
 0x2ea   : > { %v487_v49 = vpop.f32.mrb[2].mxu1  ;;  %v725_v50 = vpop.f32.mrb[2].mxu0 }
 0x2eb   : > { %492 = vst.msk [vmem:[#allocation4] sm:$0xf] %vm491_vm3, %v490_v45  ;;  %730 = vst.msk [vmem:[#allocation4 + $0x8] sm:$0xf] %vm491_vm3, %v728_v46  ;;  %v2087_v51 = vpop.f32.mrb[3].mxu1  ;;  %v2119_v52 = vpop.f32.mrb[3].mxu0 }
 0x2f0   : > { %v543_v53 = vpop.f32.mrb[4].mxu1  ;;  %v842_v54 = vpop.f32.mrb[4].mxu0 }
 0x2f1   : > { %v549_v55 = vpack.c.bf16 %v543_v53, %v543_v53  ;;  %v848_v56 = vpack.c.bf16 %v842_v54, %v842_v54  ;;  %v2094_v57 = vpop.f32.mrb[5].mxu1  ;;  %v2134_v58 = vpop.f32.mrb[5].mxu0 }
 0x2f2   : > { %v546_v59 = vpop.f32.mrb[6].mxu1  ;;  %v845_v60 = vpop.f32.mrb[6].mxu0  ;;  %v1168_v61 = vld [vmem:[#allocation4] sm:$0xf]  ;;  %v1170_v22 = vld [vmem:[#allocation4 + $0x8] sm:$0xf] }
 0x2f3   : > { %550 = vst.msk [vmem:[#allocation5] sm:$0xf] %vm491_vm3, %v549_v55  ;;  %850 = vst.msk [vmem:[#allocation4 + $0xc] sm:$0xf] %vm491_vm3, %v848_v56  ;;  %v2095_v62 = vpop.f32.mrb[7].mxu1  ;;  %v2135_v63 = vpop.f32.mrb[7].mxu0 }
 0x2f4   : > { %v1181_v0 = vsel %vm1176_vm4, %v1168_v61, 0  ;;  %v1273_v28 = vsel %vm1176_vm4, %v1170_v22, 0 }
 0x2f5   : > { %2177 = vmatpush3.bf16.xpose.msra.mxu0 %v1181_v0 }
 0x2f6   : > { %2188 = vmatprep.subr.bf16.mxu0 %v2732_v9 }
 0x2f8   : > { %v602_v1 = vpop.f32.mrb[8].mxu1  ;;  %v971_v2 = vpop.f32.mrb[8].mxu0 }
 0x2f9   : > { %v608_v3 = vpack.c.bf16 %v602_v1, %v602_v1  ;;  %v977_v4 = vmul.f32 0.35355338, %v971_v2  ;;  %v2102_v5 = vpop.f32.mrb[9].mxu1  ;;  %v2150_v6 = vpop.f32.mrb[9].mxu0 }
 0x2fa   : > { %v605_v7 = vpop.f32.mrb[10].mxu1  ;;  %v974_v8 = vpop.f32.mrb[10].mxu0  ;;  %v1172_v33 = vld [vmem:[#allocation5] sm:$0xf]  ;;  %v1171_v52 = vld [vmem:[#allocation4 + $0xc] sm:$0xf] }
 0x2fb   : > { %610 = vst.msk [vmem:[#allocation4 + $0x4] sm:$0xf] %vm491_vm3, %v608_v3  ;;  %v978_v10 = vpack.c.bf16 %v977_v4, %v977_v4  ;;  %v2103_v11 = vpop.f32.mrb[11].mxu1  ;;  %v2151_v12 = vpop.f32.mrb[11].mxu0  ;;  %v1414_v36 = vsel %vm1412_vm5, %v1172_v33, 0  ;;  %v1319_v56 = vsel %vm1176_vm4, %v1171_v52, 0 }
 0x2fd   : > { %980 = vst.msk [vmem:[#allocation3] sm:$0xf] %vm491_vm3, %v978_v10 }
 0x300   : > { %v662_v13 = vpop.f32.mrb[12].mxu1  ;;  %v1093_v14 = vpop.f32.mrb[12].mxu0 }
 0x301   : > { %v668_v15 = vpack.c.bf16 %v662_v13, %v662_v13  ;;  %v1099_v16 = vmul.f32 0.35355338, %v1093_v14  ;;  %v2110_v17 = vpop.f32.mrb[13].mxu1  ;;  %v2166_v18 = vpop.f32.mrb[13].mxu0 }
 0x302   : > { %v665_v19 = vpop.f32.mrb[14].mxu1  ;;  %v1096_v20 = vpop.f32.mrb[14].mxu0  ;;  %v1169_v21 = vld [vmem:[#allocation4 + $0x4] sm:$0xf] }
 0x303   : > { %670 = vst.msk [vmem:[#allocation5 + $0x4] sm:$0xf] %vm491_vm3, %v668_v15  ;;  %v1100_v23 = vpack.c.bf16 %v1099_v16, %v1099_v16  ;;  %v2111_v24 = vpop.f32.mrb[15].mxu1  ;;  %v2167_v25 = vpop.f32.mrb[15].mxu0  ;;  %v1227_v26 = vsel %vm1176_vm4, %v1169_v21, 0 }
 0x304   : > { %2183 = vmatpush3.bf16.xpose.msra.mxu1 %v1227_v26  ;;  %v1164_v27 = vld [vmem:[#allocation3] sm:$0xf] }
 0x305   : > { %1102 = vst.msk [vmem:[#allocation3 + $0x8] sm:$0xf] %vm491_vm3, %v1100_v23  ;;  %2179 = vmatmul.mubr.msk.bf16.vlgmr.msra.gmra.mrb[16].mxu0 %vm1176_vm4, %v1164_v27  ;;  %2194 = vmatprep.subr.bf16.mxu1 %v2732_v9 }
 0x306   : > { %2189 = vmatpush3.bf16.xpose.msra.mxu0 %v1273_v28  ;;  %2190 = vmatprep.mubr.msk.bf16.mxu0 %vm2733_vm1, %v2732_v9 }
 0x307   : > { %2200 = vmatprep.subr.bf16.mxu0 %v2732_v9 }
 0x308   : > { %v782_v29 = vpop.f32.mrb[16].mxu1 }
 0x309   : > { %v788_v30 = vpack.c.bf16 %v782_v29, %v782_v29  ;;  %v2126_v31 = vpop.f32.mrb[17].mxu1 }
 0x30a   : > { %v785_v32 = vpop.f32.mrb[18].mxu1  ;;  %v1173_v57 = vld [vmem:[#allocation5 + $0x4] sm:$0xf] }
 0x30b   : > { %790 = vst.msk [vmem:[#allocation5 + $0x8] sm:$0xf] %vm491_vm3, %v788_v30  ;;  %v2127_v34 = vpop.f32.mrb[19].mxu1  ;;  %v1460_v59 = vsel %vm1412_vm5, %v1173_v57, 0 }
 0x30c   : > { %v1166_v35 = vld [vmem:[#allocation3 + $0x8] sm:$0xf] }
 0x30d   : > { %2191 = vmatmul.mubr.msk.bf16.vlgmr.msra.gmra.mrb[20].mxu0 %vm1176_vm4, %v1166_v35 }
 0x30e   : > { %2201 = vmatpush3.bf16.msra.mxu0 %v1414_v36  ;;  %2202 = vmatprep.mubr.msk.bf16.mxu0 %vm2733_vm1, %v2732_v9 }
 0x30f   : > { %2212 = vmatprep.subr.bf16.mxu0 %v2732_v9 }
 0x310   : > { %v902_v37 = vpop.f32.mrb[20].mxu1 }
 0x311   : > { %v908_v38 = vpack.c.bf16 %v902_v37, %v902_v37  ;;  %v2142_v39 = vpop.f32.mrb[21].mxu1 }
 0x312   : > { %v905_v40 = vpop.f32.mrb[22].mxu1 }
 0x313   : > { %910 = vst.msk [vmem:[#allocation5 + $0xc] sm:$0xf] %vm491_vm3, %v908_v38  ;;  %v2143_v41 = vpop.f32.mrb[23].mxu1 }
 0x318   : > { %v1032_v42 = vpop.f32.mrb[24].mxu1 }
 0x319   : > { %v1038_v43 = vmul.f32 0.35355338, %v1032_v42  ;;  %v2158_v44 = vpop.f32.mrb[25].mxu1 }
 0x31a   : > { %v1035_v45 = vpop.f32.mrb[26].mxu1 }
 0x31b   : > { %v1039_v46 = vpack.c.bf16 %v1038_v43, %v1038_v43  ;;  %v2159_v47 = vpop.f32.mrb[27].mxu1  ;;  %v1175_v43 = vld [vmem:[#allocation5 + $0xc] sm:$0xf] }
 0x31c   : > { %v1552_v47 = vsel %vm1412_vm5, %v1175_v43, 0 }
 0x31d   : > { %1041 = vst.msk [vmem:[#allocation3 + $0x4] sm:$0xf] %vm491_vm3, %v1039_v46 }
 0x320   : > { %v1154_v48 = vpop.f32.mrb[28].mxu1 }
 0x321   : > { %v1160_v49 = vmul.f32 0.35355338, %v1154_v48  ;;  %v2174_v50 = vpop.f32.mrb[29].mxu1  ;;  %v1174_v48 = vld [vmem:[#allocation5 + $0x8] sm:$0xf] }
 0x322   : > { %v1157_v51 = vpop.f32.mrb[30].mxu1 }
 0x323   : > { %v1161_v53 = vpack.c.bf16 %v1160_v49, %v1160_v49  ;;  %v2175_v54 = vpop.f32.mrb[31].mxu1 }
 0x324   : > { %v1165_v55 = vld [vmem:[#allocation3 + $0x4] sm:$0xf] }
 0x325   : > { %1163 = vst.msk [vmem:[#allocation3 + $0xc] sm:$0xf] %vm491_vm3, %v1161_v53  ;;  %2185 = vmatmul.mubr.msk.bf16.vlgmr.msra.gmra.mrb[32].mxu1 %vm1176_vm4, %v1165_v55  ;;  %v1506_v53 = vsel %vm1412_vm5, %v1174_v48, 0 }
 0x326   : > { %2195 = vmatpush3.bf16.xpose.msra.mxu1 %v1319_v56  ;;  %2196 = vmatprep.mubr.msk.bf16.mxu1 %vm2733_vm1, %v2732_v9  ;;  %v1600_v56 = vld [vmem:[#allocation17 + $0x4] sm:$0xf] }
 0x327   : > { %2206 = vmatprep.subr.bf16.mxu1 %v2732_v9 }
 0x32c   : > { %v1167_v58 = vld [vmem:[#allocation3 + $0xc] sm:$0xf] }
 0x32d   : > { %2197 = vmatmul.mubr.msk.bf16.vlgmr.msra.gmra.mrb[36].mxu1 %vm1176_vm4, %v1167_v58  ;;  %v1605_v58 = vsel %vm1412_vm5, %v1600_v56, 0 }
 0x32e   : > { %2207 = vmatpush3.bf16.msra.mxu1 %v1460_v59  ;;  %2208 = vmatprep.mubr.msk.bf16.mxu1 %vm2733_vm1, %v2732_v9  ;;  %v1598_v59 = vld [vmem:[#allocation17] sm:$0xf] }
 0x32f   : > { %2218 = vmatprep.subr.bf16.mxu1 %v2732_v9 }
 0x3d8   : > { %v1217_v60 = vpop.f32.mrb[16].mxu0 }
 0x3d9   : > { %v2180_v61 = vpop.f32.mrb[17].mxu0  ;;  %v1361_v11 = vsel %vm1176_vm4, %v1217_v60, -inf }
 0x3da   : > { %v1220_v62 = vpop.f32.mrb[18].mxu0 }
 0x3db   : > { %v2181_v63 = vpop.f32.mrb[19].mxu0 }
 0x3dc   : > { %v1651_v63 = vsel %vm1412_vm5, %v1598_v59, 0 }
 0x3e0   : > { %v1309_v0 = vpop.f32.mrb[20].mxu0 }
 0x3e1   : > { %v2192_v1 = vpop.f32.mrb[21].mxu0  ;;  %v1367_v2 = vsel %vm1176_vm4, %v1309_v0, -inf }
 0x3e2   : > { %1368 = vmax.xlane.f32.xlu0 %v1367_v2  ;;  %v1312_v3 = vpop.f32.mrb[22].mxu0 }
 0x3e3   : > { %v2193_v4 = vpop.f32.mrb[23].mxu0 }
 0x3f8   : > { %v1263_v5 = vpop.f32.mrb[32].mxu1 }
 0x3f9   : > { %v2186_v6 = vpop.f32.mrb[33].mxu1  ;;  %v1364_v7 = vsel %vm1176_vm4, %v1263_v5, -inf }
 0x3fa   : > { %1365 = vmax.xlane.f32.xlu1 %v1364_v7  ;;  %v1266_v8 = vpop.f32.mrb[34].mxu1 }
 0x3fb   : > { %v2187_v10 = vpop.f32.mrb[35].mxu1 }
 0x3fc   : > { %v1694_v10 = vld [vmem:[#allocation17 + $0x8] sm:$0xf] }
 0x3fe   : > { %1362 = vmax.xlane.f32.xlu1 %v1361_v11 }
 0x400   : > { %v1355_v12 = vpop.f32.mrb[36].mxu1 }
 0x401   : > { %v2198_v13 = vpop.f32.mrb[37].mxu1  ;;  %v1370_v14 = vsel %vm1176_vm4, %v1355_v12, -inf }
 0x402   : > { %v1358_v15 = vpop.f32.mrb[38].mxu1  ;;  %1371 = vmax.xlane.f32.xlu1 %v1370_v14 }
 0x403   : > { %v2199_v16 = vpop.f32.mrb[39].mxu1  ;;  %v1699_v15 = vsel %vm1412_vm5, %v1694_v10, 0 }
 0x46f   : > { %v1369_v17 = vpop.xlane.xlu0 %1368 }
 0x470   : > { %v1375_v18 = vsub.f32 %v1309_v0, %v1369_v17 }
 0x472   : > { %v1381_v21 = vmul.f32 1.442695, %v1375_v18  ;;  %v1743_v18 = vld [vmem:[#allocation17 + $0xc] sm:$0xf] }
 0x487   : > { %v1366_v19 = vpop.xlane.xlu1 %1365 }
 0x488   : > { %v1374_v20 = vsub.f32 %v1263_v5, %v1366_v19 }
 0x48a   : > { %v1379_v22 = vmul.f32 1.442695, %v1374_v20  ;;  %v1748_v20 = vsel %vm1412_vm5, %v1743_v18, 0 }
 0x48b   : > { %v1363_v23 = vpop.xlane.xlu1 %1362 }
 0x48c   : > { %2413 = vpow2.f32 %v1379_v22  ;;  %v1373_v24 = vsub.f32 %v1217_v60, %v1363_v23 }
 0x48d   : > { %2415 = vpow2.f32 %v1381_v21 }
 0x48e   : > { %v1377_v25 = vmul.f32 1.442695, %v1373_v24 }
 0x48f   : > { %v1372_v26 = vpop.xlane.xlu1 %1371 }
 0x490   : > { %2417 = vpow2.f32 %v1377_v25  ;;  %v1376_v27 = vsub.f32 %v1355_v12, %v1372_v26 }
 0x492   : > { %v1383_v28 = vmul.f32 1.442695, %v1376_v27 }
 0x494   : > { %2419 = vpow2.f32 %v1383_v28 }
 0x496   : > { %v2414_v29 = vpop.eup %2413 }
 0x497   : > { %v1388_v30 = vsel %vm1176_vm4, %v2414_v29, 0.0  ;;  %v2416_v31 = vpop.eup %2415 }
 0x498   : > { %1389 = vadd.xlane.f32.xlu0 %v1388_v30  ;;  %v1391_v34 = vsel %vm1176_vm4, %v2416_v31, 0.0 }
 0x49a   : > { %v2418_v32 = vpop.eup %2417 }
 0x49b   : > { %v1385_v33 = vsel %vm1176_vm4, %v2418_v32, 0.0 }
 0x49c   : > { %1386 = vadd.xlane.f32.xlu1 %v1385_v33  ;;  %1392 = vadd.xlane.f32.xlu0 %v1391_v34 }
 0x49e   : > { %v2420_v35 = vpop.eup %2419 }
 0x49f   : > { %v1394_v36 = vsel %vm1176_vm4, %v2420_v35, 0.0 }
 0x4a0   : > { %1395 = vadd.xlane.f32.xlu1 %v1394_v36 }
 0x525   : > { %v1390_v37 = vpop.xlane.xlu0 %1389 }
 0x526   : > { %2421 = vrcp.f32 %v1390_v37 }
 0x529   : > { %v1387_v38 = vpop.xlane.xlu1 %1386  ;;  %v1393_v39 = vpop.xlane.xlu0 %1392 }
 0x52a   : > { %2423 = vrcp.f32 %v1387_v38 }
 0x52b   : > { %2425 = vrcp.f32 %v1393_v39 }
 0x52d   : > { %v1396_v40 = vpop.xlane.xlu1 %1395 }
 0x52e   : > { %2427 = vrcp.f32 %v1396_v40 }
 0x530   : > { %v2422_v41 = vpop.eup %2421 }
 0x531   : > { %v1402_v42 = vmul.f32 %v2422_v41, %v2414_v29 }
 0x533   : > { %v1406_v44 = vpack.c.bf16 %v1402_v42, %v1402_v42 }
 0x534   : > { %v2424_v45 = vpop.eup %2423 }
 0x535   : > { %v1401_v46 = vmul.f32 %v2424_v45, %v2418_v32  ;;  %2209 = vmatmul.mubr.msk.bf16.vlgmr.msra.gmra.mrb[40].mxu1 %vm1176_vm4, %v1406_v44  ;;  %v2426_v49 = vpop.eup %2425 }
 0x536   : > { %2219 = vmatpush3.bf16.msra.mxu1 %v1552_v47  ;;  %2220 = vmatprep.mubr.msk.bf16.mxu1 %vm2733_vm1, %v2732_v9  ;;  %v1403_v54 = vmul.f32 %v2426_v49, %v2416_v31 }
 0x537   : > { %v1405_v50 = vpack.c.bf16 %v1401_v46, %v1401_v46 }
 0x538   : > { %v2428_v51 = vpop.eup %2427  ;;  %v1407_v57 = vpack.c.bf16 %v1403_v54, %v1403_v54 }
 0x539   : > { %v1404_v52 = vmul.f32 %v2428_v51, %v2420_v35  ;;  %2203 = vmatmul.mubr.msk.bf16.vlgmr.msra.gmra.mrb[24].mxu0 %vm1176_vm4, %v1405_v50 }
 0x53a   : > { %2213 = vmatpush3.bf16.msra.mxu0 %v1506_v53  ;;  %2214 = vmatprep.mubr.msk.bf16.mxu0 %vm2733_vm1, %v2732_v9 }
 0x53b   : > { %v1408_v55 = vpack.c.bf16 %v1404_v52, %v1404_v52  ;;  %2224 = vmatprep.subr.bf16.mxu0 %v2732_v9 }
 0x53d   : > { %2221 = vmatmul.mubr.msk.bf16.vlgmr.msra.gmra.mrb[44].mxu1 %vm1176_vm4, %v1408_v55 }
 0x541   : > { %2215 = vmatmul.mubr.msk.bf16.vlgmr.msra.gmra.mrb[28].mxu0 %vm1176_vm4, %v1407_v57 }
 0x542   : > { %2225 = vmatpush3.bf16.msra.mxu0 %v1605_v58  ;;  %2226 = vmatprep.mubr.msk.bf16.mxu0 %vm2733_vm1, %v2732_v9 }
 0x543   : > { %2230 = vmatprep.subr.bf16.mxu0 %v2732_v9 }
 0x608   : > { %v1496_v60 = vpop.f32.mrb[40].mxu1 }
 0x609   : > { %v1595_v61 = vpack.c.bf16 %v1496_v60, %v1496_v60  ;;  %v2210_v62 = vpop.f32.mrb[41].mxu1 }
 0x60a   : > { %v1499_v0 = vpop.f32.mrb[42].mxu1 }
 0x60b   : > { %v2211_v1 = vpop.f32.mrb[43].mxu1  ;;  %2227 = vmatmul.mubr.msk.bf16.vlgmr.msra.gmra.mrb[32].mxu0 %vm1176_vm4, %v1595_v61 }
 0x60c   : > { %2231 = vmatpush3.bf16.msra.mxu0 %v1651_v63  ;;  %v1450_v2 = vpop.f32.mrb[24].mxu0  ;;  %2232 = vmatprep.mubr.msk.bf16.mxu0 %vm2733_vm1, %v2732_v9 }
 0x60d   : > { %v2204_v3 = vpop.f32.mrb[25].mxu0  ;;  %2236 = vmatprep.subr.bf16.mxu0 %v2732_v9  ;;  %v1594_v13 = vpack.c.bf16 %v1450_v2, %v1450_v2 }
 0x60e   : > { %v1453_v4 = vpop.f32.mrb[26].mxu0 }
 0x60f   : > { %v2205_v5 = vpop.f32.mrb[27].mxu0 }
 0x610   : > { %v1588_v6 = vpop.f32.mrb[44].mxu1 }
 0x611   : > { %v2222_v7 = vpop.f32.mrb[45].mxu1  ;;  %v1597_v21 = vpack.c.bf16 %v1588_v6, %v1588_v6 }
 0x612   : > { %v1591_v8 = vpop.f32.mrb[46].mxu1 }
 0x613   : > { %v2223_v11 = vpop.f32.mrb[47].mxu1 }
 0x614   : > { %v1542_v12 = vpop.f32.mrb[28].mxu0 }
 0x615   : > { %v2216_v14 = vpop.f32.mrb[29].mxu0  ;;  %v1596_v19 = vpack.c.bf16 %v1542_v12, %v1542_v12 }
 0x616   : > { %v1545_v16 = vpop.f32.mrb[30].mxu0 }
 0x617   : > { %v2217_v17 = vpop.f32.mrb[31].mxu0  ;;  %2233 = vmatmul.mubr.msk.bf16.vlgmr.msra.gmra.mrb[32].mxu0 %vm1176_vm4, %v1594_v13 }
 0x618   : > { %2237 = vmatpush3.bf16.msra.mxu0 %v1699_v15  ;;  %2238 = vmatprep.mubr.msk.bf16.mxu0 %vm2733_vm1, %v2732_v9 }
 0x619   : > { %2242 = vmatprep.subr.bf16.mxu0 %v2732_v9 }
 0x623   : > { %2239 = vmatmul.mubr.msk.bf16.vlgmr.msra.gmra.mrb[32].mxu0 %vm1176_vm4, %v1596_v19 }
 0x624   : > { %2243 = vmatpush3.bf16.msra.mxu0 %v1748_v20  ;;  %2244 = vmatprep.mubr.msk.bf16.mxu0 %vm2733_vm1, %v2732_v9 }
 0x62f   : > { %2245 = vmatmul.mubr.msk.bf16.vlgmr.msra.gmra.mrb[32].mxu0 %vm1176_vm4, %v1597_v21 }
 0x702   : > { %v1784_v22 = vpop.f32.mrb[32].mxu0 }
 0x703   : > { %1791 = vst.msk [vmem:[%s390_s9] sm:$0xff] %vm397_vm0, %v1784_v22  ;;  %v2246_v9 = vpop.f32.mrb[33].mxu0 }
 0x704   : > { %v1787_v23 = vpop.f32.mrb[34].mxu0 }
 0x705   : > { %2640 = shalt.err (!%p2637_p8)
}
 0x706   : > { %s2641_s19 = scalar_lea.hbm %s3223_s13, 128  ;;  %s2645_s30 = scalar_lea.hbm %s3280_s7, 256 }
 0x707   : > { %p2642_p9 = scmp.ne.s32.totalorder %s3223_s13, %s2641_s19  ;;  %p2646_p3 = scmp.lt.u32.totalorder %s3223_s13, %s3280_s7 }
 0x708   : > { %p2647_p1 = scmp.lt.u32.totalorder %s2645_s30, %s2641_s19  ;;  %p2649_p11 = scmp.lt.u32.totalorder %s2641_s19, %s3223_s13 }
 0x709   : > { %p2643_p4 = pnand %p2642_p9, %p3303_p0 }
 0x70a   : > { %p2648_p12 = por %p2647_p1, %p2646_p3 }
 0x70b   : > { %p2644_p6 = pneg %p2643_p4 }
 0x70c   : > { %p2650_p5 = por %p2649_p11, %p2648_p12 }
 0x70e   : > { %p2651_p7 = pnand %p2650_p5, %p2644_p6 }
 0x710   : > { %2654 = shalt.err (!%p2651_p7)
}
 0x711   : > { %2286 = dma.vmem_to_hbm [thread:$0]  (%p3303_p0), %s3225_s20, 128, %s3223_s13, %s1793_s17   ;;  %v2247_v24 = vpop.f32.mrb[35].mxu0 }
 0x712 PF: > { %s1819_s9 = sand.u32 1, %s2701_s24   ;;  %p3304_p10 = scmp.ne.s32.totalorder %s3299_s12, 0 }
 0x713   : > { %p3305_p13 = scmp.ge.s32.totalorder %s2721_s29, 2  ;;  %s1820_s16 = scalar_lea.sflag [#allocation8], %s1819_s9 }
 0x715   : > { %p2312_p2 = pnand %p3305_p13, %p3304_p10 }
 0x717   : > { %2696 = dma.done.wait (!%p2312_p2), %s1820_s16, 128  }
 0x718   : > { %2698 = vsyncadd (!%p2312_p2), %s1820_s16, 4294967168  ;;  %s26_s29 = sadd.s32 1, %s2721_s29   ;;  %s3306_s24 = smov %s2705_s25 }
 0x719   : > { %p23_p8 = scmp.ge.s32.totalorder %s26_s29, 4   ;;  %s3307_s25 = smov %s2709_s26 }
 0x71a   : > { %s3308_s26 = smov %s2992_s23  ;;  %s3309_s27 = smov %s2717_s28 }
 0x71b   : > { %s3310_s28 = smov %s3312_s22  ;;  %25 = sbr.rel (!%p23_p8) target bundleno = 12 (0xc), region = 143 }
 0x722   :  { %1825 = vsyncpa [#allocation7], 1 }
 0x723   :  { %1827 = vsyncpa [#allocation7 + $0x1], 1 }
 0x724   :  { %1828 = vsyncpa [#allocation10], 1 }
 0x725   :  { %1829 = vsyncpa [#allocation13], 1 }
 0x726   :  { %1830 = vsyncpa [#allocation16], 1 }
 0x727   :  { %1831 = vsyncpa [#allocation8], 1 }
 0x728   :  { %1833 = vsyncpa [#allocation8 + $0x1], 1 }

</bundles_post_ra>
